<compile_context>
chip_gen: v5e
topology: v5e:2x2
jax: 0.10.0
libtpu: 0.0.40
codegen_flags: <defaults>
</compile_context>

<pallas_src>
import functools

import jax
import jax.numpy as jnp
from jax.experimental import pallas as pl
from jax.experimental.pallas import tpu as pltpu


def _round_up(x, m):
    return (x + m - 1) // m * m


# ----------------------------------------------------------------------------
# Kernel 1: fused CharCNN (conv + pool-then-tanh) + Highway stack
# ----------------------------------------------------------------------------

def _cnn_highway_kernel(kernels, kernel_features, emb_ref, *refs):
    n = len(kernels)
    w_refs = refs[:n]                  # each (k*Ep, Fk) bf16
    b_refs = refs[n:2 * n]             # each (1, Fk) f32
    hw_w_ref = refs[2 * n]             # (n_hw, D, 2D) bf16
    hw_b_ref = refs[2 * n + 1]         # (n_hw, 1, 2D) f32
    out_ref = refs[2 * n + 2]          # (tb, D) bf16

    L = emb_ref.shape[0]
    Ep = emb_ref.shape[2]
    tb = out_ref.shape[0]

    feats = []
    for idx, (k, Fk) in enumerate(zip(kernels, kernel_features)):
        T = L - k + 1
        # im2col: lane-concat the k shifted windows -> one matmul with K = k*Ep.
        if k == 1:
            xcat = emb_ref[pl.ds(0, T)]                                 # (T, tb, Ep)
        else:
            xcat = jnp.concatenate([emb_ref[pl.ds(j, T)] for j in range(k)],
                                   axis=-1)                             # (T, tb, k*Ep)
        xcat = xcat.reshape(T * tb, k * Ep)                             # bf16
        acc = jnp.dot(xcat, w_refs[idx][...],
                      preferred_element_type=jnp.float32).reshape(T, tb, Fk)
        # Pool BEFORE bias + tanh (exact: tanh monotone, bias per-feature constant).
        pooled = acc[0]
        for tt in range(1, T):
            pooled = jnp.maximum(pooled, acc[tt])
        feats.append(jnp.tanh(pooled + b_refs[idx][...]))               # (tb, Fk) f32
    h = jnp.concatenate(feats, axis=-1)                                 # (tb, D) f32

    D = h.shape[-1]
    n_hw = hw_w_ref.shape[0]
    for l in range(n_hw):
        # Single (D, 2D) matmul: cols [0:D] = transform gate, [D:2D] = relu path.
        th = jnp.dot(h.astype(jnp.bfloat16), hw_w_ref[l],
                     preferred_element_type=jnp.float32) + hw_b_ref[l]
        t_gate = jax.nn.sigmoid(th[:, :D])
        g = jnp.maximum(th[:, D:], 0.0)
        h = t_gate * g + (1.0 - t_gate) * h
    out_ref[...] = h.astype(out_ref.dtype)


def char_cnn_highway(emb, conv_w, conv_b, hw_w, hw_b, kernels, kernel_features, tb=256):
    """emb: (L, NW, Ep) bf16, time-major.  Returns (NW, sum(F)) bf16 highway output."""
    L, NW, Ep = emb.shape
    D = sum(kernel_features)
    tb = min(tb, NW)
    # Keep >= 2 blocks on the parallel axis when possible (v7x second TensorCore).
    if NW % 2 == 0 and (NW // 2) % 8 == 0:
        tb = min(tb, NW // 2)
    assert NW % tb == 0

    in_specs = [pl.BlockSpec((L, tb, Ep), lambda i: (0, i, 0))]
    in_specs += [pl.BlockSpec(w.shape, lambda i: (0, 0)) for w in conv_w]
    in_specs += [pl.BlockSpec(b.shape, lambda i: (0, 0)) for b in conv_b]
    in_specs += [pl.BlockSpec(hw_w.shape, lambda i: (0, 0, 0)),
                 pl.BlockSpec(hw_b.shape, lambda i: (0, 0, 0))]

    return pl.pallas_call(
        functools.partial(_cnn_highway_kernel, tuple(kernels), tuple(kernel_features)),
        out_shape=jax.ShapeDtypeStruct((NW, D), jnp.bfloat16),
        grid=(NW // tb,),
        in_specs=in_specs,
        out_specs=pl.BlockSpec((tb, D), lambda i: (i, 0)),
        compiler_params=pltpu.CompilerParams(dimension_semantics=("parallel",)),
    )(emb, *conv_w, *conv_b, hw_w, hw_b)


# ----------------------------------------------------------------------------
# Kernel 2: fused multi-layer LSTM (full time loop) + output projection.
# Gate columns are pre-reordered to (i, f, o, g) at param-prep time.
# ----------------------------------------------------------------------------

def _lstm_proj_kernel(n_layers, *refs):
    x_ref, wih0_ref, whh0_ref, b0_ref = refs[0:4]
    pos = 4
    upper = []                                   # layers 1..n-1: (W=[W_ih;W_hh], b)
    for _ in range(n_layers - 1):
        upper.append((refs[pos], refs[pos + 1]))
        pos += 2
    h0_ref, c0_ref, pw_ref, pb_ref = refs[pos:pos + 4]
    logits_ref, hn_ref, cn_ref = refs[pos + 4:pos + 7]

    T, Bp, D = x_ref.shape
    H = whh0_ref.shape[0]
    Vp = pw_ref.shape[1]

    # Hoisted layer-0 input projection: one (T*Bp, D) @ (D, 4H) matmul for all steps.
    xproj = jnp.dot(x_ref[...].reshape(T * Bp, D), wih0_ref[...],
                    preferred_element_type=jnp.float32)                 # (T*Bp, 4H) f32

    def cell(gates, c_prev):
        # gates columns are (i, f, o, g): one sigmoid over a contiguous 3H lane slice.
        s = jax.nn.sigmoid(gates[:, :3 * H])
        g = jnp.tanh(gates[:, 3 * H:])
        i, f, o = s[:, :H], s[:, H:2 * H], s[:, 2 * H:]
        c = f * c_prev + i * g
        h = o * jnp.tanh(c)
        return h, c

    hs = [h0_ref[l] for l in range(n_layers)]
    cs = [c0_ref[l] for l in range(n_layers)]
    top = []
    for t in range(T):                            # static unroll (T is small here)
        g0 = (xproj[t * Bp:(t + 1) * Bp]
              + jnp.dot(hs[0].astype(jnp.bfloat16), whh0_ref[...],
                        preferred_element_type=jnp.float32)
              + b0_ref[...])
        hs[0], cs[0] = cell(g0, cs[0])
        for l in range(1, n_layers):
            wl_ref, bl_ref = upper[l - 1]
            # Fused gate matmul: [h_below | h_prev] @ [W_ih ; W_hh]  (K = 2H).
            xh = jnp.concatenate([hs[l - 1], hs[l]], axis=-1).astype(jnp.bfloat16)
            gl = jnp.dot(xh, wl_ref[...], preferred_element_type=jnp.float32) + bl_ref[...]
            hs[l], cs[l] = cell(gl, cs[l])
        top.append(hs[n_layers - 1])
    # TODO(synk): nn.LSTM inter-layer dropout (p=0.5) is train-mode only; omitted (eval).

    for l in range(n_layers):
        hn_ref[l] = hs[l]
        cn_ref[l] = cs[l]

    # Fused output projection on the VMEM-resident top-layer activations.
    h_top = jnp.concatenate(top, axis=0).astype(jnp.bfloat16)           # (T*Bp, H)
    logits = (jnp.dot(h_top, pw_ref[...], preferred_element_type=jnp.float32)
              + pb_ref[...])                                            # (T*Bp, Vp)
    logits_ref[...] = logits.reshape(T, Bp, Vp)


def lstm_proj(x, lstm_params, h0, c0, proj_w, proj_b):
    """x:(T,Bp,D) bf16; lstm_params[0]=(Wih0,Whh0,b0); [l>0]=([Wih;Whh], b);
    h0,c0:(n_layers,Bp,H) f32; proj_w:(H,Vp) bf16; proj_b:(1,Vp) f32."""
    T, Bp, _ = x.shape
    n_layers = len(lstm_params)
    H = h0.shape[-1]
    Vp = proj_w.shape[-1]

    wih0, whh0, b0 = lstm_params[0]
    rest = []
    for (wl, bl) in lstm_params[1:]:
        rest += [wl, bl]

    return pl.pallas_call(
        functools.partial(_lstm_proj_kernel, n_layers),
        out_shape=(jax.ShapeDtypeStruct((T, Bp, Vp), jnp.float32),
                   jax.ShapeDtypeStruct((n_layers, Bp, H), jnp.float32),
                   jax.ShapeDtypeStruct((n_layers, Bp, H), jnp.float32)),
    )(x, wih0, whh0, b0, *rest, h0, c0, proj_w, proj_b)


# ----------------------------------------------------------------------------
# Model forward (glue in JAX, hot paths in the two fused Pallas kernels)
# ----------------------------------------------------------------------------

def model_forward(params, x, hidden, *, kernels, kernel_features, word_vocab):
    batch, steps, L = x.shape
    ids = x.reshape(-1, L)                                        # (NW, L)

    # Character embedding lookup (XLA gather); table is pre-padded + pre-cast to bf16.
    emb = jnp.take(params["char_emb"], ids.T, axis=0)             # (L, NW, Ep) bf16

    # Fused CharCNN + Highway (one launch, lane-dense 128-wide bf16 output).
    h = char_cnn_highway(emb, params["conv_w"], params["conv_b"],
                         params["hw_w"], params["hw_b"],
                         kernels, kernel_features)                # (NW, cnn_size) bf16

    # Time-major LSTM input (matches rnn_input.transpose(0, 1)); pad batch to 8 sublanes.
    D = h.shape[-1]
    rnn_in = h.reshape(batch, steps, D).transpose(1, 0, 2)        # (T, B, D)
    h0, c0 = hidden
    Bp = _round_up(max(batch, 8), 8)
    pad_b = Bp - batch
    xin = jnp.pad(rnn_in, ((0, 0), (0, pad_b), (0, 0)))
    h0p = jnp.pad(h0, ((0, 0), (0, pad_b), (0, 0)))
    c0p = jnp.pad(c0, ((0, 0), (0, pad_b), (0, 0)))

    # Fused 2-layer LSTM (T-loop inside) + output projection, one launch.
    logits_p, hn_p, cn_p = lstm_proj(xin, params["lstm"], h0p, c0p,
                                     params["proj_w"], params["proj_b"])

    logits = logits_p[:, :batch, :word_vocab].reshape(steps * batch, word_vocab)
    return logits, (hn_p[:, :batch, :], cn_p[:, :batch, :])


# ----------------------------------------------------------------------------
# Deterministic parameter init (synthetic; mirrors the module's shapes) + prep
# (pad contraction/lane dims, fuse/reorder weights, cast matmul operands to bf16).
# ----------------------------------------------------------------------------

def init_params(key, char_vocab, word_vocab, E, kernels, kernel_features,
                H, num_highway, num_rnn):
    keys = iter(jax.random.split(key, 256))

    def nrm(shape, scale=0.1):
        return (scale * jax.random.normal(next(keys), shape)).astype(jnp.float32)

    char_emb = nrm((char_vocab, E)).at[0].set(0.0)   # row 0 zeroed, as in the module

    conv = [(nrm((k, E, f)), nrm((1, f))) for k, f in zip(kernels, kernel_features)]
    cnn_size = sum(kernel_features)

    highway = [(nrm((cnn_size, cnn_size)),
                jnp.full((1, cnn_size), -2.0, jnp.float32),      # carry-biased gate
                nrm((cnn_size, cnn_size)),
                nrm((1, cnn_size))) for _ in range(num_highway)]

    lstm = []
    din = cnn_size
    for _ in range(num_rnn):
        lstm.append((nrm((din, 4 * H)),          # W_ih^T  (gate order i,f,g,o)
                     nrm((H, 4 * H)),            # W_hh^T
                     nrm((1, 4 * H))))           # b_ih + b_hh combined
        din = H

    return {"char_emb": char_emb, "conv": conv, "highway": highway, "lstm": lstm,
            "proj_w": nrm((H, word_vocab)), "proj_b": nrm((1, word_vocab))}


def prepare_params(params):
    E = params["char_emb"].shape[1]
    Ep = _round_up(E, 8)
    # Pre-pad + pre-cast the embedding table (halves gather bytes, no per-step cast).
    char_emb = jnp.pad(params["char_emb"], ((0, 0), (0, Ep - E))).astype(jnp.bfloat16)

    conv_w, conv_b = [], []
    for (w, b) in params["conv"]:
        k = w.shape[0]
        wp = jnp.pad(w, ((0, 0), (0, Ep - E), (0, 0)))           # (k, Ep, Fk)
        conv_w.append(wp.reshape(k * Ep, -1).astype(jnp.bfloat16))   # im2col layout
        conv_b.append(b)

    hw_w = jnp.stack([jnp.concatenate([wt, wh], axis=1)
                      for (wt, bt, wh, bh) in params["highway"]]).astype(jnp.bfloat16)
    hw_b = jnp.stack([jnp.concatenate([bt, bh], axis=1)
                      for (wt, bt, wh, bh) in params["highway"]])

    H = params["lstm"][0][1].shape[0]

    def reorder(w):   # gate columns (i,f,g,o) -> (i,f,o,g)
        return jnp.concatenate([w[..., :2 * H], w[..., 3 * H:], w[..., 2 * H:3 * H]],
                               axis=-1)

    lstm = []
    for l, (wih, whh, b) in enumerate(params["lstm"]):
        if l == 0:
            lstm.append((reorder(wih).astype(jnp.bfloat16),
                         reorder(whh).astype(jnp.bfloat16),
                         reorder(b)))
        else:
            wcomb = jnp.concatenate([wih, whh], axis=0)          # (2H, 4H)
            lstm.append((reorder(wcomb).astype(jnp.bfloat16), reorder(b)))

    V = params["proj_w"].shape[1]
    Vp = _round_up(V, 128)
    proj_w = jnp.pad(params["proj_w"], ((0, 0), (0, Vp - V))).astype(jnp.bfloat16)
    proj_b = jnp.pad(params["proj_b"], ((0, 0), (0, Vp - V)))

    return {"char_emb": char_emb, "conv_w": conv_w, "conv_b": conv_b,
            "hw_w": hw_w, "hw_b": hw_b, "lstm": lstm,
            "proj_w": proj_w, "proj_b": proj_b}


# ----------------------------------------------------------------------------

if __name__ == "__main__":
    CHAR_VOCAB, WORD_VOCAB = 50, 100
    E = 15                                   # char_embedding_size (module default)
    KERNELS = [1, 2, 3, 4, 5]
    KERNEL_FEATURES = [16, 16, 32, 32, 32]   # cnn_size = 128 (lane-dense)
    H = 32                                   # hidden_dimension (small)
    NUM_HW, NUM_RNN = 2, 2
    BATCH, STEPS, L = 2, 8, 12               # batch, num_unroll_steps, max_word_length

    key = jax.random.PRNGKey(0)
    kp, kx = jax.random.split(key)
    params = init_params(kp, CHAR_VOCAB, WORD_VOCAB, E, KERNELS, KERNEL_FEATURES,
                         H, NUM_HW, NUM_RNN)
    prepared = prepare_params(params)

    x = jax.random.randint(kx, (BATCH, STEPS, L), 1, CHAR_VOCAB, dtype=jnp.int32)
    hidden = (jnp.zeros((NUM_RNN, BATCH, H), jnp.float32),
              jnp.zeros((NUM_RNN, BATCH, H), jnp.float32))

    fwd = jax.jit(functools.partial(model_forward,
                                    kernels=tuple(KERNELS),
                                    kernel_features=tuple(KERNEL_FEATURES),
                                    word_vocab=WORD_VOCAB))
    logits, (hn, cn) = fwd(prepared, x, hidden)
    jax.block_until_ready((logits, hn, cn))

    assert logits.shape == (STEPS * BATCH, WORD_VOCAB)
    assert hn.shape == (NUM_RNN, BATCH, H) and cn.shape == (NUM_RNN, BATCH, H)
    assert bool(jnp.all(jnp.isfinite(logits)))
    print("KERNEL_OK")
</pallas_src>

<mosaic_0001>
module attributes {stable_mosaic.version = 11 : i64} {
  func.func @_lstm_proj_kernel(%arg0: memref<8x8x128xbf16, #tpu.memory_space<vmem>>, %arg1: memref<128x128xbf16, #tpu.memory_space<vmem>>, %arg2: memref<32x128xbf16, #tpu.memory_space<vmem>>, %arg3: memref<1x128xf32, #tpu.memory_space<vmem>>, %arg4: memref<64x128xbf16, #tpu.memory_space<vmem>>, %arg5: memref<1x128xf32, #tpu.memory_space<vmem>>, %arg6: memref<2x8x32xf32, #tpu.memory_space<vmem>>, %arg7: memref<2x8x32xf32, #tpu.memory_space<vmem>>, %arg8: memref<32x128xbf16, #tpu.memory_space<vmem>>, %arg9: memref<1x128xf32, #tpu.memory_space<vmem>>, %arg10: memref<8x8x128xf32, #tpu.memory_space<vmem>>, %arg11: memref<2x8x32xf32, #tpu.memory_space<vmem>>, %arg12: memref<2x8x32xf32, #tpu.memory_space<vmem>>) attributes {dimension_semantics = [], scalar_prefetch = 0 : i64, scratch_operands = 0 : i64, tpu.core_type = #tpu.core_type<tc>} {
    %c0 = arith.constant 0 : index
    %c0_0 = arith.constant 0 : index
    %c0_1 = arith.constant 0 : index
    %0 = vector.load %arg0[%c0, %c0_0, %c0_1] : memref<8x8x128xbf16, #tpu.memory_space<vmem>>, vector<8x8x128xbf16>
    %1 = vector.shape_cast %0 : vector<8x8x128xbf16> to vector<64x128xbf16>
    %c0_2 = arith.constant 0 : index
    %c0_3 = arith.constant 0 : index
    %2 = vector.load %arg1[%c0_2, %c0_3] : memref<128x128xbf16, #tpu.memory_space<vmem>>, vector<128x128xbf16>
    %cst = arith.constant dense<0.000000e+00> : vector<64x128xf32>
    %3 = tpu.matmul %1, %2, %cst {dimension_numbers = #tpu.dot_dimension_numbers<[1], [0], [0], [1], [0, 0, 1, 1], [], []>} : vector<64x128xbf16>, vector<128x128xbf16>, vector<64x128xf32> -> vector<64x128xf32>
    %c0_4 = arith.constant 0 : index
    %c0_5 = arith.constant 0 : index
    %c0_6 = arith.constant 0 : index
    %4 = vector.load %arg6[%c0_4, %c0_5, %c0_6] : memref<2x8x32xf32, #tpu.memory_space<vmem>>, vector<1x8x32xf32>
    %5 = vector.shape_cast %4 : vector<1x8x32xf32> to vector<8x32xf32>
    %c1 = arith.constant 1 : index
    %c0_7 = arith.constant 0 : index
    %c0_8 = arith.constant 0 : index
    %6 = vector.load %arg6[%c1, %c0_7, %c0_8] : memref<2x8x32xf32, #tpu.memory_space<vmem>>, vector<1x8x32xf32>
    %7 = vector.shape_cast %6 : vector<1x8x32xf32> to vector<8x32xf32>
    %c0_9 = arith.constant 0 : index
    %c0_10 = arith.constant 0 : index
    %c0_11 = arith.constant 0 : index
    %8 = vector.load %arg7[%c0_9, %c0_10, %c0_11] : memref<2x8x32xf32, #tpu.memory_space<vmem>>, vector<1x8x32xf32>
    %9 = vector.shape_cast %8 : vector<1x8x32xf32> to vector<8x32xf32>
    %c1_12 = arith.constant 1 : index
    %c0_13 = arith.constant 0 : index
    %c0_14 = arith.constant 0 : index
    %10 = vector.load %arg7[%c1_12, %c0_13, %c0_14] : memref<2x8x32xf32, #tpu.memory_space<vmem>>, vector<1x8x32xf32>
    %11 = vector.shape_cast %10 : vector<1x8x32xf32> to vector<8x32xf32>
    %12 = vector.extract_strided_slice %3 {offsets = [0, 0], sizes = [8, 128], strides = [1, 1]} : vector<64x128xf32> to vector<8x128xf32>
    %13 = arith.truncf %5 : vector<8x32xf32> to vector<8x32xbf16>
    %c0_15 = arith.constant 0 : index
    %c0_16 = arith.constant 0 : index
    %14 = vector.load %arg2[%c0_15, %c0_16] : memref<32x128xbf16, #tpu.memory_space<vmem>>, vector<32x128xbf16>
    %cst_17 = arith.constant dense<0.000000e+00> : vector<8x128xf32>
    %15 = tpu.matmul %13, %14, %cst_17 {dimension_numbers = #tpu.dot_dimension_numbers<[1], [0], [0], [1], [0, 0, 1, 1], [], []>} : vector<8x32xbf16>, vector<32x128xbf16>, vector<8x128xf32> -> vector<8x128xf32>
    %16 = arith.addf %12, %15 : vector<8x128xf32>
    %c0_18 = arith.constant 0 : index
    %c0_19 = arith.constant 0 : index
    %17 = vector.load %arg3[%c0_18, %c0_19] : memref<1x128xf32, #tpu.memory_space<vmem>>, vector<1x128xf32>
    %18 = vector.broadcast %17 : vector<1x128xf32> to vector<8x128xf32>
    %19 = arith.addf %16, %18 : vector<8x128xf32>
    %20 = vector.extract_strided_slice %19 {offsets = [0, 0], sizes = [8, 96], strides = [1, 1]} : vector<8x128xf32> to vector<8x96xf32>
    %21 = arith.negf %20 : vector<8x96xf32>
    %22 = math.exp %21 : vector<8x96xf32>
    %cst_20 = arith.constant 1.000000e+00 : f32
    %23 = vector.broadcast %cst_20 : f32 to vector<8x96xf32>
    %24 = arith.addf %23, %22 : vector<8x96xf32>
    %25 = arith.divf %23, %24 : vector<8x96xf32>
    %26 = vector.extract_strided_slice %19 {offsets = [0, 96], sizes = [8, 32], strides = [1, 1]} : vector<8x128xf32> to vector<8x32xf32>
    %27 = math.tanh %26 : vector<8x32xf32>
    %28 = vector.extract_strided_slice %25 {offsets = [0, 0], sizes = [8, 32], strides = [1, 1]} : vector<8x96xf32> to vector<8x32xf32>
    %29 = vector.extract_strided_slice %25 {offsets = [0, 32], sizes = [8, 32], strides = [1, 1]} : vector<8x96xf32> to vector<8x32xf32>
    %30 = vector.extract_strided_slice %25 {offsets = [0, 64], sizes = [8, 32], strides = [1, 1]} : vector<8x96xf32> to vector<8x32xf32>
    %31 = arith.mulf %29, %9 : vector<8x32xf32>
    %32 = arith.mulf %28, %27 : vector<8x32xf32>
    %33 = arith.addf %31, %32 : vector<8x32xf32>
    %34 = math.tanh %33 : vector<8x32xf32>
    %35 = arith.mulf %30, %34 : vector<8x32xf32>
    %36 = tpu.concatenate %35, %7 in 1 : vector<8x32xf32>, vector<8x32xf32> -> vector<8x64xf32>
    %37 = arith.truncf %36 : vector<8x64xf32> to vector<8x64xbf16>
    %c0_21 = arith.constant 0 : index
    %c0_22 = arith.constant 0 : index
    %38 = vector.load %arg4[%c0_21, %c0_22] : memref<64x128xbf16, #tpu.memory_space<vmem>>, vector<64x128xbf16>
    %cst_23 = arith.constant dense<0.000000e+00> : vector<8x128xf32>
    %39 = tpu.matmul %37, %38, %cst_23 {dimension_numbers = #tpu.dot_dimension_numbers<[1], [0], [0], [1], [0, 0, 1, 1], [], []>} : vector<8x64xbf16>, vector<64x128xbf16>, vector<8x128xf32> -> vector<8x128xf32>
    %c0_24 = arith.constant 0 : index
    %c0_25 = arith.constant 0 : index
    %40 = vector.load %arg5[%c0_24, %c0_25] : memref<1x128xf32, #tpu.memory_space<vmem>>, vector<1x128xf32>
    %41 = vector.broadcast %40 : vector<1x128xf32> to vector<8x128xf32>
    %42 = arith.addf %39, %41 : vector<8x128xf32>
    %43 = vector.extract_strided_slice %42 {offsets = [0, 0], sizes = [8, 96], strides = [1, 1]} : vector<8x128xf32> to vector<8x96xf32>
    %44 = arith.negf %43 : vector<8x96xf32>
    %45 = math.exp %44 : vector<8x96xf32>
    %cst_26 = arith.constant 1.000000e+00 : f32
    %46 = vector.broadcast %cst_26 : f32 to vector<8x96xf32>
    %47 = arith.addf %46, %45 : vector<8x96xf32>
    %48 = arith.divf %46, %47 : vector<8x96xf32>
    %49 = vector.extract_strided_slice %42 {offsets = [0, 96], sizes = [8, 32], strides = [1, 1]} : vector<8x128xf32> to vector<8x32xf32>
    %50 = math.tanh %49 : vector<8x32xf32>
    %51 = vector.extract_strided_slice %48 {offsets = [0, 0], sizes = [8, 32], strides = [1, 1]} : vector<8x96xf32> to vector<8x32xf32>
    %52 = vector.extract_strided_slice %48 {offsets = [0, 32], sizes = [8, 32], strides = [1, 1]} : vector<8x96xf32> to vector<8x32xf32>
    %53 = vector.extract_strided_slice %48 {offsets = [0, 64], sizes = [8, 32], strides = [1, 1]} : vector<8x96xf32> to vector<8x32xf32>
    %54 = arith.mulf %52, %11 : vector<8x32xf32>
    %55 = arith.mulf %51, %50 : vector<8x32xf32>
    %56 = arith.addf %54, %55 : vector<8x32xf32>
    %57 = math.tanh %56 : vector<8x32xf32>
    %58 = arith.mulf %53, %57 : vector<8x32xf32>
    %59 = vector.extract_strided_slice %3 {offsets = [8, 0], sizes = [8, 128], strides = [1, 1]} : vector<64x128xf32> to vector<8x128xf32>
    %60 = arith.truncf %35 : vector<8x32xf32> to vector<8x32xbf16>
    %c0_27 = arith.constant 0 : index
    %c0_28 = arith.constant 0 : index
    %61 = vector.load %arg2[%c0_27, %c0_28] : memref<32x128xbf16, #tpu.memory_space<vmem>>, vector<32x128xbf16>
    %cst_29 = arith.constant dense<0.000000e+00> : vector<8x128xf32>
    %62 = tpu.matmul %60, %61, %cst_29 {dimension_numbers = #tpu.dot_dimension_numbers<[1], [0], [0], [1], [0, 0, 1, 1], [], []>} : vector<8x32xbf16>, vector<32x128xbf16>, vector<8x128xf32> -> vector<8x128xf32>
    %63 = arith.addf %59, %62 : vector<8x128xf32>
    %c0_30 = arith.constant 0 : index
    %c0_31 = arith.constant 0 : index
    %64 = vector.load %arg3[%c0_30, %c0_31] : memref<1x128xf32, #tpu.memory_space<vmem>>, vector<1x128xf32>
    %65 = vector.broadcast %64 : vector<1x128xf32> to vector<8x128xf32>
    %66 = arith.addf %63, %65 : vector<8x128xf32>
    %67 = vector.extract_strided_slice %66 {offsets = [0, 0], sizes = [8, 96], strides = [1, 1]} : vector<8x128xf32> to vector<8x96xf32>
    %68 = arith.negf %67 : vector<8x96xf32>
    %69 = math.exp %68 : vector<8x96xf32>
    %cst_32 = arith.constant 1.000000e+00 : f32
    %70 = vector.broadcast %cst_32 : f32 to vector<8x96xf32>
    %71 = arith.addf %70, %69 : vector<8x96xf32>
    %72 = arith.divf %70, %71 : vector<8x96xf32>
    %73 = vector.extract_strided_slice %66 {offsets = [0, 96], sizes = [8, 32], strides = [1, 1]} : vector<8x128xf32> to vector<8x32xf32>
    %74 = math.tanh %73 : vector<8x32xf32>
    %75 = vector.extract_strided_slice %72 {offsets = [0, 0], sizes = [8, 32], strides = [1, 1]} : vector<8x96xf32> to vector<8x32xf32>
    %76 = vector.extract_strided_slice %72 {offsets = [0, 32], sizes = [8, 32], strides = [1, 1]} : vector<8x96xf32> to vector<8x32xf32>
    %77 = vector.extract_strided_slice %72 {offsets = [0, 64], sizes = [8, 32], strides = [1, 1]} : vector<8x96xf32> to vector<8x32xf32>
    %78 = arith.mulf %76, %33 : vector<8x32xf32>
    %79 = arith.mulf %75, %74 : vector<8x32xf32>
    %80 = arith.addf %78, %79 : vector<8x32xf32>
    %81 = math.tanh %80 : vector<8x32xf32>
    %82 = arith.mulf %77, %81 : vector<8x32xf32>
    %83 = tpu.concatenate %82, %58 in 1 : vector<8x32xf32>, vector<8x32xf32> -> vector<8x64xf32>
    %84 = arith.truncf %83 : vector<8x64xf32> to vector<8x64xbf16>
    %c0_33 = arith.constant 0 : index
    %c0_34 = arith.constant 0 : index
    %85 = vector.load %arg4[%c0_33, %c0_34] : memref<64x128xbf16, #tpu.memory_space<vmem>>, vector<64x128xbf16>
    %cst_35 = arith.constant dense<0.000000e+00> : vector<8x128xf32>
    %86 = tpu.matmul %84, %85, %cst_35 {dimension_numbers = #tpu.dot_dimension_numbers<[1], [0], [0], [1], [0, 0, 1, 1], [], []>} : vector<8x64xbf16>, vector<64x128xbf16>, vector<8x128xf32> -> vector<8x128xf32>
    %c0_36 = arith.constant 0 : index
    %c0_37 = arith.constant 0 : index
    %87 = vector.load %arg5[%c0_36, %c0_37] : memref<1x128xf32, #tpu.memory_space<vmem>>, vector<1x128xf32>
    %88 = vector.broadcast %87 : vector<1x128xf32> to vector<8x128xf32>
    %89 = arith.addf %86, %88 : vector<8x128xf32>
    %90 = vector.extract_strided_slice %89 {offsets = [0, 0], sizes = [8, 96], strides = [1, 1]} : vector<8x128xf32> to vector<8x96xf32>
    %91 = arith.negf %90 : vector<8x96xf32>
    %92 = math.exp %91 : vector<8x96xf32>
    %cst_38 = arith.constant 1.000000e+00 : f32
    %93 = vector.broadcast %cst_38 : f32 to vector<8x96xf32>
    %94 = arith.addf %93, %92 : vector<8x96xf32>
    %95 = arith.divf %93, %94 : vector<8x96xf32>
    %96 = vector.extract_strided_slice %89 {offsets = [0, 96], sizes = [8, 32], strides = [1, 1]} : vector<8x128xf32> to vector<8x32xf32>
    %97 = math.tanh %96 : vector<8x32xf32>
    %98 = vector.extract_strided_slice %95 {offsets = [0, 0], sizes = [8, 32], strides = [1, 1]} : vector<8x96xf32> to vector<8x32xf32>
    %99 = vector.extract_strided_slice %95 {offsets = [0, 32], sizes = [8, 32], strides = [1, 1]} : vector<8x96xf32> to vector<8x32xf32>
    %100 = vector.extract_strided_slice %95 {offsets = [0, 64], sizes = [8, 32], strides = [1, 1]} : vector<8x96xf32> to vector<8x32xf32>
    %101 = arith.mulf %99, %56 : vector<8x32xf32>
    %102 = arith.mulf %98, %97 : vector<8x32xf32>
    %103 = arith.addf %101, %102 : vector<8x32xf32>
    %104 = math.tanh %103 : vector<8x32xf32>
    %105 = arith.mulf %100, %104 : vector<8x32xf32>
    %106 = vector.extract_strided_slice %3 {offsets = [16, 0], sizes = [8, 128], strides = [1, 1]} : vector<64x128xf32> to vector<8x128xf32>
    %107 = arith.truncf %82 : vector<8x32xf32> to vector<8x32xbf16>
    %c0_39 = arith.constant 0 : index
    %c0_40 = arith.constant 0 : index
    %108 = vector.load %arg2[%c0_39, %c0_40] : memref<32x128xbf16, #tpu.memory_space<vmem>>, vector<32x128xbf16>
    %cst_41 = arith.constant dense<0.000000e+00> : vector<8x128xf32>
    %109 = tpu.matmul %107, %108, %cst_41 {dimension_numbers = #tpu.dot_dimension_numbers<[1], [0], [0], [1], [0, 0, 1, 1], [], []>} : vector<8x32xbf16>, vector<32x128xbf16>, vector<8x128xf32> -> vector<8x128xf32>
    %110 = arith.addf %106, %109 : vector<8x128xf32>
    %c0_42 = arith.constant 0 : index
    %c0_43 = arith.constant 0 : index
    %111 = vector.load %arg3[%c0_42, %c0_43] : memref<1x128xf32, #tpu.memory_space<vmem>>, vector<1x128xf32>
    %112 = vector.broadcast %111 : vector<1x128xf32> to vector<8x128xf32>
    %113 = arith.addf %110, %112 : vector<8x128xf32>
    %114 = vector.extract_strided_slice %113 {offsets = [0, 0], sizes = [8, 96], strides = [1, 1]} : vector<8x128xf32> to vector<8x96xf32>
    %115 = arith.negf %114 : vector<8x96xf32>
    %116 = math.exp %115 : vector<8x96xf32>
    %cst_44 = arith.constant 1.000000e+00 : f32
    %117 = vector.broadcast %cst_44 : f32 to vector<8x96xf32>
    %118 = arith.addf %117, %116 : vector<8x96xf32>
    %119 = arith.divf %117, %118 : vector<8x96xf32>
    %120 = vector.extract_strided_slice %113 {offsets = [0, 96], sizes = [8, 32], strides = [1, 1]} : vector<8x128xf32> to vector<8x32xf32>
    %121 = math.tanh %120 : vector<8x32xf32>
    %122 = vector.extract_strided_slice %119 {offsets = [0, 0], sizes = [8, 32], strides = [1, 1]} : vector<8x96xf32> to vector<8x32xf32>
    %123 = vector.extract_strided_slice %119 {offsets = [0, 32], sizes = [8, 32], strides = [1, 1]} : vector<8x96xf32> to vector<8x32xf32>
    %124 = vector.extract_strided_slice %119 {offsets = [0, 64], sizes = [8, 32], strides = [1, 1]} : vector<8x96xf32> to vector<8x32xf32>
    %125 = arith.mulf %123, %80 : vector<8x32xf32>
    %126 = arith.mulf %122, %121 : vector<8x32xf32>
    %127 = arith.addf %125, %126 : vector<8x32xf32>
    %128 = math.tanh %127 : vector<8x32xf32>
    %129 = arith.mulf %124, %128 : vector<8x32xf32>
    %130 = tpu.concatenate %129, %105 in 1 : vector<8x32xf32>, vector<8x32xf32> -> vector<8x64xf32>
    %131 = arith.truncf %130 : vector<8x64xf32> to vector<8x64xbf16>
    %c0_45 = arith.constant 0 : index
    %c0_46 = arith.constant 0 : index
    %132 = vector.load %arg4[%c0_45, %c0_46] : memref<64x128xbf16, #tpu.memory_space<vmem>>, vector<64x128xbf16>
    %cst_47 = arith.constant dense<0.000000e+00> : vector<8x128xf32>
    %133 = tpu.matmul %131, %132, %cst_47 {dimension_numbers = #tpu.dot_dimension_numbers<[1], [0], [0], [1], [0, 0, 1, 1], [], []>} : vector<8x64xbf16>, vector<64x128xbf16>, vector<8x128xf32> -> vector<8x128xf32>
    %c0_48 = arith.constant 0 : index
    %c0_49 = arith.constant 0 : index
    %134 = vector.load %arg5[%c0_48, %c0_49] : memref<1x128xf32, #tpu.memory_space<vmem>>, vector<1x128xf32>
    %135 = vector.broadcast %134 : vector<1x128xf32> to vector<8x128xf32>
    %136 = arith.addf %133, %135 : vector<8x128xf32>
    %137 = vector.extract_strided_slice %136 {offsets = [0, 0], sizes = [8, 96], strides = [1, 1]} : vector<8x128xf32> to vector<8x96xf32>
    %138 = arith.negf %137 : vector<8x96xf32>
    %139 = math.exp %138 : vector<8x96xf32>
    %cst_50 = arith.constant 1.000000e+00 : f32
    %140 = vector.broadcast %cst_50 : f32 to vector<8x96xf32>
    %141 = arith.addf %140, %139 : vector<8x96xf32>
    %142 = arith.divf %140, %141 : vector<8x96xf32>
    %143 = vector.extract_strided_slice %136 {offsets = [0, 96], sizes = [8, 32], strides = [1, 1]} : vector<8x128xf32> to vector<8x32xf32>
    %144 = math.tanh %143 : vector<8x32xf32>
    %145 = vector.extract_strided_slice %142 {offsets = [0, 0], sizes = [8, 32], strides = [1, 1]} : vector<8x96xf32> to vector<8x32xf32>
    %146 = vector.extract_strided_slice %142 {offsets = [0, 32], sizes = [8, 32], strides = [1, 1]} : vector<8x96xf32> to vector<8x32xf32>
    %147 = vector.extract_strided_slice %142 {offsets = [0, 64], sizes = [8, 32], strides = [1, 1]} : vector<8x96xf32> to vector<8x32xf32>
    %148 = arith.mulf %146, %103 : vector<8x32xf32>
    %149 = arith.mulf %145, %144 : vector<8x32xf32>
    %150 = arith.addf %148, %149 : vector<8x32xf32>
    %151 = math.tanh %150 : vector<8x32xf32>
    %152 = arith.mulf %147, %151 : vector<8x32xf32>
    %153 = vector.extract_strided_slice %3 {offsets = [24, 0], sizes = [8, 128], strides = [1, 1]} : vector<64x128xf32> to vector<8x128xf32>
    %154 = arith.truncf %129 : vector<8x32xf32> to vector<8x32xbf16>
    %c0_51 = arith.constant 0 : index
    %c0_52 = arith.constant 0 : index
    %155 = vector.load %arg2[%c0_51, %c0_52] : memref<32x128xbf16, #tpu.memory_space<vmem>>, vector<32x128xbf16>
    %cst_53 = arith.constant dense<0.000000e+00> : vector<8x128xf32>
    %156 = tpu.matmul %154, %155, %cst_53 {dimension_numbers = #tpu.dot_dimension_numbers<[1], [0], [0], [1], [0, 0, 1, 1], [], []>} : vector<8x32xbf16>, vector<32x128xbf16>, vector<8x128xf32> -> vector<8x128xf32>
    %157 = arith.addf %153, %156 : vector<8x128xf32>
    %c0_54 = arith.constant 0 : index
    %c0_55 = arith.constant 0 : index
    %158 = vector.load %arg3[%c0_54, %c0_55] : memref<1x128xf32, #tpu.memory_space<vmem>>, vector<1x128xf32>
    %159 = vector.broadcast %158 : vector<1x128xf32> to vector<8x128xf32>
    %160 = arith.addf %157, %159 : vector<8x128xf32>
    %161 = vector.extract_strided_slice %160 {offsets = [0, 0], sizes = [8, 96], strides = [1, 1]} : vector<8x128xf32> to vector<8x96xf32>
    %162 = arith.negf %161 : vector<8x96xf32>
    %163 = math.exp %162 : vector<8x96xf32>
    %cst_56 = arith.constant 1.000000e+00 : f32
    %164 = vector.broadcast %cst_56 : f32 to vector<8x96xf32>
    %165 = arith.addf %164, %163 : vector<8x96xf32>
    %166 = arith.divf %164, %165 : vector<8x96xf32>
    %167 = vector.extract_strided_slice %160 {offsets = [0, 96], sizes = [8, 32], strides = [1, 1]} : vector<8x128xf32> to vector<8x32xf32>
    %168 = math.tanh %167 : vector<8x32xf32>
    %169 = vector.extract_strided_slice %166 {offsets = [0, 0], sizes = [8, 32], strides = [1, 1]} : vector<8x96xf32> to vector<8x32xf32>
    %170 = vector.extract_strided_slice %166 {offsets = [0, 32], sizes = [8, 32], strides = [1, 1]} : vector<8x96xf32> to vector<8x32xf32>
    %171 = vector.extract_strided_slice %166 {offsets = [0, 64], sizes = [8, 32], strides = [1, 1]} : vector<8x96xf32> to vector<8x32xf32>
    %172 = arith.mulf %170, %127 : vector<8x32xf32>
    %173 = arith.mulf %169, %168 : vector<8x32xf32>
    %174 = arith.addf %172, %173 : vector<8x32xf32>
    %175 = math.tanh %174 : vector<8x32xf32>
    %176 = arith.mulf %171, %175 : vector<8x32xf32>
    %177 = tpu.concatenate %176, %152 in 1 : vector<8x32xf32>, vector<8x32xf32> -> vector<8x64xf32>
    %178 = arith.truncf %177 : vector<8x64xf32> to vector<8x64xbf16>
    %c0_57 = arith.constant 0 : index
    %c0_58 = arith.constant 0 : index
    %179 = vector.load %arg4[%c0_57, %c0_58] : memref<64x128xbf16, #tpu.memory_space<vmem>>, vector<64x128xbf16>
    %cst_59 = arith.constant dense<0.000000e+00> : vector<8x128xf32>
    %180 = tpu.matmul %178, %179, %cst_59 {dimension_numbers = #tpu.dot_dimension_numbers<[1], [0], [0], [1], [0, 0, 1, 1], [], []>} : vector<8x64xbf16>, vector<64x128xbf16>, vector<8x128xf32> -> vector<8x128xf32>
    %c0_60 = arith.constant 0 : index
    %c0_61 = arith.constant 0 : index
    %181 = vector.load %arg5[%c0_60, %c0_61] : memref<1x128xf32, #tpu.memory_space<vmem>>, vector<1x128xf32>
    %182 = vector.broadcast %181 : vector<1x128xf32> to vector<8x128xf32>
    %183 = arith.addf %180, %182 : vector<8x128xf32>
    %184 = vector.extract_strided_slice %183 {offsets = [0, 0], sizes = [8, 96], strides = [1, 1]} : vector<8x128xf32> to vector<8x96xf32>
    %185 = arith.negf %184 : vector<8x96xf32>
    %186 = math.exp %185 : vector<8x96xf32>
    %cst_62 = arith.constant 1.000000e+00 : f32
    %187 = vector.broadcast %cst_62 : f32 to vector<8x96xf32>
    %188 = arith.addf %187, %186 : vector<8x96xf32>
    %189 = arith.divf %187, %188 : vector<8x96xf32>
    %190 = vector.extract_strided_slice %183 {offsets = [0, 96], sizes = [8, 32], strides = [1, 1]} : vector<8x128xf32> to vector<8x32xf32>
    %191 = math.tanh %190 : vector<8x32xf32>
    %192 = vector.extract_strided_slice %189 {offsets = [0, 0], sizes = [8, 32], strides = [1, 1]} : vector<8x96xf32> to vector<8x32xf32>
    %193 = vector.extract_strided_slice %189 {offsets = [0, 32], sizes = [8, 32], strides = [1, 1]} : vector<8x96xf32> to vector<8x32xf32>
    %194 = vector.extract_strided_slice %189 {offsets = [0, 64], sizes = [8, 32], strides = [1, 1]} : vector<8x96xf32> to vector<8x32xf32>
    %195 = arith.mulf %193, %150 : vector<8x32xf32>
    %196 = arith.mulf %192, %191 : vector<8x32xf32>
    %197 = arith.addf %195, %196 : vector<8x32xf32>
    %198 = math.tanh %197 : vector<8x32xf32>
    %199 = arith.mulf %194, %198 : vector<8x32xf32>
    %200 = vector.extract_strided_slice %3 {offsets = [32, 0], sizes = [8, 128], strides = [1, 1]} : vector<64x128xf32> to vector<8x128xf32>
    %201 = arith.truncf %176 : vector<8x32xf32> to vector<8x32xbf16>
    %c0_63 = arith.constant 0 : index
    %c0_64 = arith.constant 0 : index
    %202 = vector.load %arg2[%c0_63, %c0_64] : memref<32x128xbf16, #tpu.memory_space<vmem>>, vector<32x128xbf16>
    %cst_65 = arith.constant dense<0.000000e+00> : vector<8x128xf32>
    %203 = tpu.matmul %201, %202, %cst_65 {dimension_numbers = #tpu.dot_dimension_numbers<[1], [0], [0], [1], [0, 0, 1, 1], [], []>} : vector<8x32xbf16>, vector<32x128xbf16>, vector<8x128xf32> -> vector<8x128xf32>
    %204 = arith.addf %200, %203 : vector<8x128xf32>
    %c0_66 = arith.constant 0 : index
    %c0_67 = arith.constant 0 : index
    %205 = vector.load %arg3[%c0_66, %c0_67] : memref<1x128xf32, #tpu.memory_space<vmem>>, vector<1x128xf32>
    %206 = vector.broadcast %205 : vector<1x128xf32> to vector<8x128xf32>
    %207 = arith.addf %204, %206 : vector<8x128xf32>
    %208 = vector.extract_strided_slice %207 {offsets = [0, 0], sizes = [8, 96], strides = [1, 1]} : vector<8x128xf32> to vector<8x96xf32>
    %209 = arith.negf %208 : vector<8x96xf32>
    %210 = math.exp %209 : vector<8x96xf32>
    %cst_68 = arith.constant 1.000000e+00 : f32
    %211 = vector.broadcast %cst_68 : f32 to vector<8x96xf32>
    %212 = arith.addf %211, %210 : vector<8x96xf32>
    %213 = arith.divf %211, %212 : vector<8x96xf32>
    %214 = vector.extract_strided_slice %207 {offsets = [0, 96], sizes = [8, 32], strides = [1, 1]} : vector<8x128xf32> to vector<8x32xf32>
    %215 = math.tanh %214 : vector<8x32xf32>
    %216 = vector.extract_strided_slice %213 {offsets = [0, 0], sizes = [8, 32], strides = [1, 1]} : vector<8x96xf32> to vector<8x32xf32>
    %217 = vector.extract_strided_slice %213 {offsets = [0, 32], sizes = [8, 32], strides = [1, 1]} : vector<8x96xf32> to vector<8x32xf32>
    %218 = vector.extract_strided_slice %213 {offsets = [0, 64], sizes = [8, 32], strides = [1, 1]} : vector<8x96xf32> to vector<8x32xf32>
    %219 = arith.mulf %217, %174 : vector<8x32xf32>
    %220 = arith.mulf %216, %215 : vector<8x32xf32>
    %221 = arith.addf %219, %220 : vector<8x32xf32>
    %222 = math.tanh %221 : vector<8x32xf32>
    %223 = arith.mulf %218, %222 : vector<8x32xf32>
    %224 = tpu.concatenate %223, %199 in 1 : vector<8x32xf32>, vector<8x32xf32> -> vector<8x64xf32>
    %225 = arith.truncf %224 : vector<8x64xf32> to vector<8x64xbf16>
    %c0_69 = arith.constant 0 : index
    %c0_70 = arith.constant 0 : index
    %226 = vector.load %arg4[%c0_69, %c0_70] : memref<64x128xbf16, #tpu.memory_space<vmem>>, vector<64x128xbf16>
    %cst_71 = arith.constant dense<0.000000e+00> : vector<8x128xf32>
    %227 = tpu.matmul %225, %226, %cst_71 {dimension_numbers = #tpu.dot_dimension_numbers<[1], [0], [0], [1], [0, 0, 1, 1], [], []>} : vector<8x64xbf16>, vector<64x128xbf16>, vector<8x128xf32> -> vector<8x128xf32>
    %c0_72 = arith.constant 0 : index
    %c0_73 = arith.constant 0 : index
    %228 = vector.load %arg5[%c0_72, %c0_73] : memref<1x128xf32, #tpu.memory_space<vmem>>, vector<1x128xf32>
    %229 = vector.broadcast %228 : vector<1x128xf32> to vector<8x128xf32>
    %230 = arith.addf %227, %229 : vector<8x128xf32>
    %231 = vector.extract_strided_slice %230 {offsets = [0, 0], sizes = [8, 96], strides = [1, 1]} : vector<8x128xf32> to vector<8x96xf32>
    %232 = arith.negf %231 : vector<8x96xf32>
    %233 = math.exp %232 : vector<8x96xf32>
    %cst_74 = arith.constant 1.000000e+00 : f32
    %234 = vector.broadcast %cst_74 : f32 to vector<8x96xf32>
    %235 = arith.addf %234, %233 : vector<8x96xf32>
    %236 = arith.divf %234, %235 : vector<8x96xf32>
    %237 = vector.extract_strided_slice %230 {offsets = [0, 96], sizes = [8, 32], strides = [1, 1]} : vector<8x128xf32> to vector<8x32xf32>
    %238 = math.tanh %237 : vector<8x32xf32>
    %239 = vector.extract_strided_slice %236 {offsets = [0, 0], sizes = [8, 32], strides = [1, 1]} : vector<8x96xf32> to vector<8x32xf32>
    %240 = vector.extract_strided_slice %236 {offsets = [0, 32], sizes = [8, 32], strides = [1, 1]} : vector<8x96xf32> to vector<8x32xf32>
    %241 = vector.extract_strided_slice %236 {offsets = [0, 64], sizes = [8, 32], strides = [1, 1]} : vector<8x96xf32> to vector<8x32xf32>
    %242 = arith.mulf %240, %197 : vector<8x32xf32>
    %243 = arith.mulf %239, %238 : vector<8x32xf32>
    %244 = arith.addf %242, %243 : vector<8x32xf32>
    %245 = math.tanh %244 : vector<8x32xf32>
    %246 = arith.mulf %241, %245 : vector<8x32xf32>
    %247 = vector.extract_strided_slice %3 {offsets = [40, 0], sizes = [8, 128], strides = [1, 1]} : vector<64x128xf32> to vector<8x128xf32>
    %248 = arith.truncf %223 : vector<8x32xf32> to vector<8x32xbf16>
    %c0_75 = arith.constant 0 : index
    %c0_76 = arith.constant 0 : index
    %249 = vector.load %arg2[%c0_75, %c0_76] : memref<32x128xbf16, #tpu.memory_space<vmem>>, vector<32x128xbf16>
    %cst_77 = arith.constant dense<0.000000e+00> : vector<8x128xf32>
    %250 = tpu.matmul %248, %249, %cst_77 {dimension_numbers = #tpu.dot_dimension_numbers<[1], [0], [0], [1], [0, 0, 1, 1], [], []>} : vector<8x32xbf16>, vector<32x128xbf16>, vector<8x128xf32> -> vector<8x128xf32>
    %251 = arith.addf %247, %250 : vector<8x128xf32>
    %c0_78 = arith.constant 0 : index
    %c0_79 = arith.constant 0 : index
    %252 = vector.load %arg3[%c0_78, %c0_79] : memref<1x128xf32, #tpu.memory_space<vmem>>, vector<1x128xf32>
    %253 = vector.broadcast %252 : vector<1x128xf32> to vector<8x128xf32>
    %254 = arith.addf %251, %253 : vector<8x128xf32>
    %255 = vector.extract_strided_slice %254 {offsets = [0, 0], sizes = [8, 96], strides = [1, 1]} : vector<8x128xf32> to vector<8x96xf32>
    %256 = arith.negf %255 : vector<8x96xf32>
    %257 = math.exp %256 : vector<8x96xf32>
    %cst_80 = arith.constant 1.000000e+00 : f32
    %258 = vector.broadcast %cst_80 : f32 to vector<8x96xf32>
    %259 = arith.addf %258, %257 : vector<8x96xf32>
    %260 = arith.divf %258, %259 : vector<8x96xf32>
    %261 = vector.extract_strided_slice %254 {offsets = [0, 96], sizes = [8, 32], strides = [1, 1]} : vector<8x128xf32> to vector<8x32xf32>
    %262 = math.tanh %261 : vector<8x32xf32>
    %263 = vector.extract_strided_slice %260 {offsets = [0, 0], sizes = [8, 32], strides = [1, 1]} : vector<8x96xf32> to vector<8x32xf32>
    %264 = vector.extract_strided_slice %260 {offsets = [0, 32], sizes = [8, 32], strides = [1, 1]} : vector<8x96xf32> to vector<8x32xf32>
    %265 = vector.extract_strided_slice %260 {offsets = [0, 64], sizes = [8, 32], strides = [1, 1]} : vector<8x96xf32> to vector<8x32xf32>
    %266 = arith.mulf %264, %221 : vector<8x32xf32>
    %267 = arith.mulf %263, %262 : vector<8x32xf32>
    %268 = arith.addf %266, %267 : vector<8x32xf32>
    %269 = math.tanh %268 : vector<8x32xf32>
    %270 = arith.mulf %265, %269 : vector<8x32xf32>
    %271 = tpu.concatenate %270, %246 in 1 : vector<8x32xf32>, vector<8x32xf32> -> vector<8x64xf32>
    %272 = arith.truncf %271 : vector<8x64xf32> to vector<8x64xbf16>
    %c0_81 = arith.constant 0 : index
    %c0_82 = arith.constant 0 : index
    %273 = vector.load %arg4[%c0_81, %c0_82] : memref<64x128xbf16, #tpu.memory_space<vmem>>, vector<64x128xbf16>
    %cst_83 = arith.constant dense<0.000000e+00> : vector<8x128xf32>
    %274 = tpu.matmul %272, %273, %cst_83 {dimension_numbers = #tpu.dot_dimension_numbers<[1], [0], [0], [1], [0, 0, 1, 1], [], []>} : vector<8x64xbf16>, vector<64x128xbf16>, vector<8x128xf32> -> vector<8x128xf32>
    %c0_84 = arith.constant 0 : index
    %c0_85 = arith.constant 0 : index
    %275 = vector.load %arg5[%c0_84, %c0_85] : memref<1x128xf32, #tpu.memory_space<vmem>>, vector<1x128xf32>
    %276 = vector.broadcast %275 : vector<1x128xf32> to vector<8x128xf32>
    %277 = arith.addf %274, %276 : vector<8x128xf32>
    %278 = vector.extract_strided_slice %277 {offsets = [0, 0], sizes = [8, 96], strides = [1, 1]} : vector<8x128xf32> to vector<8x96xf32>
    %279 = arith.negf %278 : vector<8x96xf32>
    %280 = math.exp %279 : vector<8x96xf32>
    %cst_86 = arith.constant 1.000000e+00 : f32
    %281 = vector.broadcast %cst_86 : f32 to vector<8x96xf32>
    %282 = arith.addf %281, %280 : vector<8x96xf32>
    %283 = arith.divf %281, %282 : vector<8x96xf32>
    %284 = vector.extract_strided_slice %277 {offsets = [0, 96], sizes = [8, 32], strides = [1, 1]} : vector<8x128xf32> to vector<8x32xf32>
    %285 = math.tanh %284 : vector<8x32xf32>
    %286 = vector.extract_strided_slice %283 {offsets = [0, 0], sizes = [8, 32], strides = [1, 1]} : vector<8x96xf32> to vector<8x32xf32>
    %287 = vector.extract_strided_slice %283 {offsets = [0, 32], sizes = [8, 32], strides = [1, 1]} : vector<8x96xf32> to vector<8x32xf32>
    %288 = vector.extract_strided_slice %283 {offsets = [0, 64], sizes = [8, 32], strides = [1, 1]} : vector<8x96xf32> to vector<8x32xf32>
    %289 = arith.mulf %287, %244 : vector<8x32xf32>
    %290 = arith.mulf %286, %285 : vector<8x32xf32>
    %291 = arith.addf %289, %290 : vector<8x32xf32>
    %292 = math.tanh %291 : vector<8x32xf32>
    %293 = arith.mulf %288, %292 : vector<8x32xf32>
    %294 = vector.extract_strided_slice %3 {offsets = [48, 0], sizes = [8, 128], strides = [1, 1]} : vector<64x128xf32> to vector<8x128xf32>
    %295 = arith.truncf %270 : vector<8x32xf32> to vector<8x32xbf16>
    %c0_87 = arith.constant 0 : index
    %c0_88 = arith.constant 0 : index
    %296 = vector.load %arg2[%c0_87, %c0_88] : memref<32x128xbf16, #tpu.memory_space<vmem>>, vector<32x128xbf16>
    %cst_89 = arith.constant dense<0.000000e+00> : vector<8x128xf32>
    %297 = tpu.matmul %295, %296, %cst_89 {dimension_numbers = #tpu.dot_dimension_numbers<[1], [0], [0], [1], [0, 0, 1, 1], [], []>} : vector<8x32xbf16>, vector<32x128xbf16>, vector<8x128xf32> -> vector<8x128xf32>
    %298 = arith.addf %294, %297 : vector<8x128xf32>
    %c0_90 = arith.constant 0 : index
    %c0_91 = arith.constant 0 : index
    %299 = vector.load %arg3[%c0_90, %c0_91] : memref<1x128xf32, #tpu.memory_space<vmem>>, vector<1x128xf32>
    %300 = vector.broadcast %299 : vector<1x128xf32> to vector<8x128xf32>
    %301 = arith.addf %298, %300 : vector<8x128xf32>
    %302 = vector.extract_strided_slice %301 {offsets = [0, 0], sizes = [8, 96], strides = [1, 1]} : vector<8x128xf32> to vector<8x96xf32>
    %303 = arith.negf %302 : vector<8x96xf32>
    %304 = math.exp %303 : vector<8x96xf32>
    %cst_92 = arith.constant 1.000000e+00 : f32
    %305 = vector.broadcast %cst_92 : f32 to vector<8x96xf32>
    %306 = arith.addf %305, %304 : vector<8x96xf32>
    %307 = arith.divf %305, %306 : vector<8x96xf32>
    %308 = vector.extract_strided_slice %301 {offsets = [0, 96], sizes = [8, 32], strides = [1, 1]} : vector<8x128xf32> to vector<8x32xf32>
    %309 = math.tanh %308 : vector<8x32xf32>
    %310 = vector.extract_strided_slice %307 {offsets = [0, 0], sizes = [8, 32], strides = [1, 1]} : vector<8x96xf32> to vector<8x32xf32>
    %311 = vector.extract_strided_slice %307 {offsets = [0, 32], sizes = [8, 32], strides = [1, 1]} : vector<8x96xf32> to vector<8x32xf32>
    %312 = vector.extract_strided_slice %307 {offsets = [0, 64], sizes = [8, 32], strides = [1, 1]} : vector<8x96xf32> to vector<8x32xf32>
    %313 = arith.mulf %311, %268 : vector<8x32xf32>
    %314 = arith.mulf %310, %309 : vector<8x32xf32>
    %315 = arith.addf %313, %314 : vector<8x32xf32>
    %316 = math.tanh %315 : vector<8x32xf32>
    %317 = arith.mulf %312, %316 : vector<8x32xf32>
    %318 = tpu.concatenate %317, %293 in 1 : vector<8x32xf32>, vector<8x32xf32> -> vector<8x64xf32>
    %319 = arith.truncf %318 : vector<8x64xf32> to vector<8x64xbf16>
    %c0_93 = arith.constant 0 : index
    %c0_94 = arith.constant 0 : index
    %320 = vector.load %arg4[%c0_93, %c0_94] : memref<64x128xbf16, #tpu.memory_space<vmem>>, vector<64x128xbf16>
    %cst_95 = arith.constant dense<0.000000e+00> : vector<8x128xf32>
    %321 = tpu.matmul %319, %320, %cst_95 {dimension_numbers = #tpu.dot_dimension_numbers<[1], [0], [0], [1], [0, 0, 1, 1], [], []>} : vector<8x64xbf16>, vector<64x128xbf16>, vector<8x128xf32> -> vector<8x128xf32>
    %c0_96 = arith.constant 0 : index
    %c0_97 = arith.constant 0 : index
    %322 = vector.load %arg5[%c0_96, %c0_97] : memref<1x128xf32, #tpu.memory_space<vmem>>, vector<1x128xf32>
    %323 = vector.broadcast %322 : vector<1x128xf32> to vector<8x128xf32>
    %324 = arith.addf %321, %323 : vector<8x128xf32>
    %325 = vector.extract_strided_slice %324 {offsets = [0, 0], sizes = [8, 96], strides = [1, 1]} : vector<8x128xf32> to vector<8x96xf32>
    %326 = arith.negf %325 : vector<8x96xf32>
    %327 = math.exp %326 : vector<8x96xf32>
    %cst_98 = arith.constant 1.000000e+00 : f32
    %328 = vector.broadcast %cst_98 : f32 to vector<8x96xf32>
    %329 = arith.addf %328, %327 : vector<8x96xf32>
    %330 = arith.divf %328, %329 : vector<8x96xf32>
    %331 = vector.extract_strided_slice %324 {offsets = [0, 96], sizes = [8, 32], strides = [1, 1]} : vector<8x128xf32> to vector<8x32xf32>
    %332 = math.tanh %331 : vector<8x32xf32>
    %333 = vector.extract_strided_slice %330 {offsets = [0, 0], sizes = [8, 32], strides = [1, 1]} : vector<8x96xf32> to vector<8x32xf32>
    %334 = vector.extract_strided_slice %330 {offsets = [0, 32], sizes = [8, 32], strides = [1, 1]} : vector<8x96xf32> to vector<8x32xf32>
    %335 = vector.extract_strided_slice %330 {offsets = [0, 64], sizes = [8, 32], strides = [1, 1]} : vector<8x96xf32> to vector<8x32xf32>
    %336 = arith.mulf %334, %291 : vector<8x32xf32>
    %337 = arith.mulf %333, %332 : vector<8x32xf32>
    %338 = arith.addf %336, %337 : vector<8x32xf32>
    %339 = math.tanh %338 : vector<8x32xf32>
    %340 = arith.mulf %335, %339 : vector<8x32xf32>
    %341 = vector.extract_strided_slice %3 {offsets = [56, 0], sizes = [8, 128], strides = [1, 1]} : vector<64x128xf32> to vector<8x128xf32>
    %342 = arith.truncf %317 : vector<8x32xf32> to vector<8x32xbf16>
    %c0_99 = arith.constant 0 : index
    %c0_100 = arith.constant 0 : index
    %343 = vector.load %arg2[%c0_99, %c0_100] : memref<32x128xbf16, #tpu.memory_space<vmem>>, vector<32x128xbf16>
    %cst_101 = arith.constant dense<0.000000e+00> : vector<8x128xf32>
    %344 = tpu.matmul %342, %343, %cst_101 {dimension_numbers = #tpu.dot_dimension_numbers<[1], [0], [0], [1], [0, 0, 1, 1], [], []>} : vector<8x32xbf16>, vector<32x128xbf16>, vector<8x128xf32> -> vector<8x128xf32>
    %345 = arith.addf %341, %344 : vector<8x128xf32>
    %c0_102 = arith.constant 0 : index
    %c0_103 = arith.constant 0 : index
    %346 = vector.load %arg3[%c0_102, %c0_103] : memref<1x128xf32, #tpu.memory_space<vmem>>, vector<1x128xf32>
    %347 = vector.broadcast %346 : vector<1x128xf32> to vector<8x128xf32>
    %348 = arith.addf %345, %347 : vector<8x128xf32>
    %349 = vector.extract_strided_slice %348 {offsets = [0, 0], sizes = [8, 96], strides = [1, 1]} : vector<8x128xf32> to vector<8x96xf32>
    %350 = arith.negf %349 : vector<8x96xf32>
    %351 = math.exp %350 : vector<8x96xf32>
    %cst_104 = arith.constant 1.000000e+00 : f32
    %352 = vector.broadcast %cst_104 : f32 to vector<8x96xf32>
    %353 = arith.addf %352, %351 : vector<8x96xf32>
    %354 = arith.divf %352, %353 : vector<8x96xf32>
    %355 = vector.extract_strided_slice %348 {offsets = [0, 96], sizes = [8, 32], strides = [1, 1]} : vector<8x128xf32> to vector<8x32xf32>
    %356 = math.tanh %355 : vector<8x32xf32>
    %357 = vector.extract_strided_slice %354 {offsets = [0, 0], sizes = [8, 32], strides = [1, 1]} : vector<8x96xf32> to vector<8x32xf32>
    %358 = vector.extract_strided_slice %354 {offsets = [0, 32], sizes = [8, 32], strides = [1, 1]} : vector<8x96xf32> to vector<8x32xf32>
    %359 = vector.extract_strided_slice %354 {offsets = [0, 64], sizes = [8, 32], strides = [1, 1]} : vector<8x96xf32> to vector<8x32xf32>
    %360 = arith.mulf %358, %315 : vector<8x32xf32>
    %361 = arith.mulf %357, %356 : vector<8x32xf32>
    %362 = arith.addf %360, %361 : vector<8x32xf32>
    %363 = math.tanh %362 : vector<8x32xf32>
    %364 = arith.mulf %359, %363 : vector<8x32xf32>
    %365 = tpu.concatenate %364, %340 in 1 : vector<8x32xf32>, vector<8x32xf32> -> vector<8x64xf32>
    %366 = arith.truncf %365 : vector<8x64xf32> to vector<8x64xbf16>
    %c0_105 = arith.constant 0 : index
    %c0_106 = arith.constant 0 : index
    %367 = vector.load %arg4[%c0_105, %c0_106] : memref<64x128xbf16, #tpu.memory_space<vmem>>, vector<64x128xbf16>
    %cst_107 = arith.constant dense<0.000000e+00> : vector<8x128xf32>
    %368 = tpu.matmul %366, %367, %cst_107 {dimension_numbers = #tpu.dot_dimension_numbers<[1], [0], [0], [1], [0, 0, 1, 1], [], []>} : vector<8x64xbf16>, vector<64x128xbf16>, vector<8x128xf32> -> vector<8x128xf32>
    %c0_108 = arith.constant 0 : index
    %c0_109 = arith.constant 0 : index
    %369 = vector.load %arg5[%c0_108, %c0_109] : memref<1x128xf32, #tpu.memory_space<vmem>>, vector<1x128xf32>
    %370 = vector.broadcast %369 : vector<1x128xf32> to vector<8x128xf32>
    %371 = arith.addf %368, %370 : vector<8x128xf32>
    %372 = vector.extract_strided_slice %371 {offsets = [0, 0], sizes = [8, 96], strides = [1, 1]} : vector<8x128xf32> to vector<8x96xf32>
    %373 = arith.negf %372 : vector<8x96xf32>
    %374 = math.exp %373 : vector<8x96xf32>
    %cst_110 = arith.constant 1.000000e+00 : f32
    %375 = vector.broadcast %cst_110 : f32 to vector<8x96xf32>
    %376 = arith.addf %375, %374 : vector<8x96xf32>
    %377 = arith.divf %375, %376 : vector<8x96xf32>
    %378 = vector.extract_strided_slice %371 {offsets = [0, 96], sizes = [8, 32], strides = [1, 1]} : vector<8x128xf32> to vector<8x32xf32>
    %379 = math.tanh %378 : vector<8x32xf32>
    %380 = vector.extract_strided_slice %377 {offsets = [0, 0], sizes = [8, 32], strides = [1, 1]} : vector<8x96xf32> to vector<8x32xf32>
    %381 = vector.extract_strided_slice %377 {offsets = [0, 32], sizes = [8, 32], strides = [1, 1]} : vector<8x96xf32> to vector<8x32xf32>
    %382 = vector.extract_strided_slice %377 {offsets = [0, 64], sizes = [8, 32], strides = [1, 1]} : vector<8x96xf32> to vector<8x32xf32>
    %383 = arith.mulf %381, %338 : vector<8x32xf32>
    %384 = arith.mulf %380, %379 : vector<8x32xf32>
    %385 = arith.addf %383, %384 : vector<8x32xf32>
    %386 = math.tanh %385 : vector<8x32xf32>
    %387 = arith.mulf %382, %386 : vector<8x32xf32>
    %c0_111 = arith.constant 0 : index
    %c0_112 = arith.constant 0 : index
    %c0_113 = arith.constant 0 : index
    %388 = vector.load %arg11[%c0_111, %c0_112, %c0_113] : memref<2x8x32xf32, #tpu.memory_space<vmem>>, vector<1x8x32xf32>
    %389 = vector.shape_cast %388 : vector<1x8x32xf32> to vector<8x32xf32>
    %390 = vector.shape_cast %364 : vector<8x32xf32> to vector<1x8x32xf32>
    tpu.vector_store %arg11[%c0_111, %c0_112, %c0_113], %390 {strides = array<i32>} : memref<2x8x32xf32, #tpu.memory_space<vmem>>, vector<1x8x32xf32>,
    %c0_114 = arith.constant 0 : index
    %c0_115 = arith.constant 0 : index
    %c0_116 = arith.constant 0 : index
    %391 = vector.load %arg12[%c0_114, %c0_115, %c0_116] : memref<2x8x32xf32, #tpu.memory_space<vmem>>, vector<1x8x32xf32>
    %392 = vector.shape_cast %391 : vector<1x8x32xf32> to vector<8x32xf32>
    %393 = vector.shape_cast %362 : vector<8x32xf32> to vector<1x8x32xf32>
    tpu.vector_store %arg12[%c0_114, %c0_115, %c0_116], %393 {strides = array<i32>} : memref<2x8x32xf32, #tpu.memory_space<vmem>>, vector<1x8x32xf32>,
    %c1_117 = arith.constant 1 : index
    %c0_118 = arith.constant 0 : index
    %c0_119 = arith.constant 0 : index
    %394 = vector.load %arg11[%c1_117, %c0_118, %c0_119] : memref<2x8x32xf32, #tpu.memory_space<vmem>>, vector<1x8x32xf32>
    %395 = vector.shape_cast %394 : vector<1x8x32xf32> to vector<8x32xf32>
    %396 = vector.shape_cast %387 : vector<8x32xf32> to vector<1x8x32xf32>
    tpu.vector_store %arg11[%c1_117, %c0_118, %c0_119], %396 {strides = array<i32>} : memref<2x8x32xf32, #tpu.memory_space<vmem>>, vector<1x8x32xf32>,
    %c1_120 = arith.constant 1 : index
    %c0_121 = arith.constant 0 : index
    %c0_122 = arith.constant 0 : index
    %397 = vector.load %arg12[%c1_120, %c0_121, %c0_122] : memref<2x8x32xf32, #tpu.memory_space<vmem>>, vector<1x8x32xf32>
    %398 = vector.shape_cast %397 : vector<1x8x32xf32> to vector<8x32xf32>
    %399 = vector.shape_cast %385 : vector<8x32xf32> to vector<1x8x32xf32>
    tpu.vector_store %arg12[%c1_120, %c0_121, %c0_122], %399 {strides = array<i32>} : memref<2x8x32xf32, #tpu.memory_space<vmem>>, vector<1x8x32xf32>,
    %400 = tpu.concatenate %58, %105, %152, %199, %246, %293, %340, %387 in 0 : vector<8x32xf32>, vector<8x32xf32>, vector<8x32xf32>, vector<8x32xf32>, vector<8x32xf32>, vector<8x32xf32>, vector<8x32xf32>, vector<8x32xf32> -> vector<64x32xf32>
    %401 = arith.truncf %400 : vector<64x32xf32> to vector<64x32xbf16>
    %c0_123 = arith.constant 0 : index
    %c0_124 = arith.constant 0 : index
    %402 = vector.load %arg8[%c0_123, %c0_124] : memref<32x128xbf16, #tpu.memory_space<vmem>>, vector<32x128xbf16>
    %cst_125 = arith.constant dense<0.000000e+00> : vector<64x128xf32>
    %403 = tpu.matmul %401, %402, %cst_125 {dimension_numbers = #tpu.dot_dimension_numbers<[1], [0], [0], [1], [0, 0, 1, 1], [], []>} : vector<64x32xbf16>, vector<32x128xbf16>, vector<64x128xf32> -> vector<64x128xf32>
    %c0_126 = arith.constant 0 : index
    %c0_127 = arith.constant 0 : index
    %404 = vector.load %arg9[%c0_126, %c0_127] : memref<1x128xf32, #tpu.memory_space<vmem>>, vector<1x128xf32>
    %405 = vector.broadcast %404 : vector<1x128xf32> to vector<64x128xf32>
    %406 = arith.addf %403, %405 : vector<64x128xf32>
    %407 = vector.shape_cast %406 : vector<64x128xf32> to vector<8x8x128xf32>
    %c0_128 = arith.constant 0 : index
    %c0_129 = arith.constant 0 : index
    %c0_130 = arith.constant 0 : index
    %408 = vector.load %arg10[%c0_128, %c0_129, %c0_130] : memref<8x8x128xf32, #tpu.memory_space<vmem>>, vector<8x8x128xf32>
    tpu.vector_store %arg10[%c0_128, %c0_129, %c0_130], %407 {strides = array<i32>} : memref<8x8x128xf32, #tpu.memory_space<vmem>>, vector<8x8x128xf32>,
    return
  }
}

module attributes {stable_mosaic.version = 11 : i64} {
  func.func @_cnn_highway_kernel(%arg0: i32, %arg1: memref<12x8x16xbf16, #tpu.memory_space<vmem>>, %arg2: memref<16x16xbf16, #tpu.memory_space<vmem>>, %arg3: memref<32x16xbf16, #tpu.memory_space<vmem>>, %arg4: memref<48x32xbf16, #tpu.memory_space<vmem>>, %arg5: memref<64x32xbf16, #tpu.memory_space<vmem>>, %arg6: memref<80x32xbf16, #tpu.memory_space<vmem>>, %arg7: memref<1x16xf32, #tpu.memory_space<vmem>>, %arg8: memref<1x16xf32, #tpu.memory_space<vmem>>, %arg9: memref<1x32xf32, #tpu.memory_space<vmem>>, %arg10: memref<1x32xf32, #tpu.memory_space<vmem>>, %arg11: memref<1x32xf32, #tpu.memory_space<vmem>>, %arg12: memref<2x128x256xbf16, #tpu.memory_space<vmem>>, %arg13: memref<2x1x256xf32, #tpu.memory_space<vmem>>, %arg14: memref<8x128xbf16, #tpu.memory_space<vmem>>) attributes {dimension_semantics = [#tpu.dimension_semantics<parallel>], iteration_bounds = array<i64: 2>, scalar_prefetch = 0 : i64, scratch_operands = 0 : i64, tpu.core_type = #tpu.core_type<tc>, window_params = [{transform_indices = @transform_0, window_bounds = array<i64: 12, 8, 16>}, {pipeline_mode = #tpu.pipeline_mode<synchronous>, transform_indices = @transform_1, window_bounds = array<i64: 16, 16>}, {pipeline_mode = #tpu.pipeline_mode<synchronous>, transform_indices = @transform_2, window_bounds = array<i64: 32, 16>}, {pipeline_mode = #tpu.pipeline_mode<synchronous>, transform_indices = @transform_3, window_bounds = array<i64: 48, 32>}, {pipeline_mode = #tpu.pipeline_mode<synchronous>, transform_indices = @transform_4, window_bounds = array<i64: 64, 32>}, {pipeline_mode = #tpu.pipeline_mode<synchronous>, transform_indices = @transform_5, window_bounds = array<i64: 80, 32>}, {pipeline_mode = #tpu.pipeline_mode<synchronous>, transform_indices = @transform_6, window_bounds = array<i64: 1, 16>}, {pipeline_mode = #tpu.pipeline_mode<synchronous>, transform_indices = @transform_7, window_bounds = array<i64: 1, 16>}, {pipeline_mode = #tpu.pipeline_mode<synchronous>, transform_indices = @transform_8, window_bounds = array<i64: 1, 32>}, {pipeline_mode = #tpu.pipeline_mode<synchronous>, transform_indices = @transform_9, window_bounds = array<i64: 1, 32>}, {pipeline_mode = #tpu.pipeline_mode<synchronous>, transform_indices = @transform_10, window_bounds = array<i64: 1, 32>}, {pipeline_mode = #tpu.pipeline_mode<synchronous>, transform_indices = @transform_11, window_bounds = array<i64: 2, 128, 256>}, {pipeline_mode = #tpu.pipeline_mode<synchronous>, transform_indices = @transform_12, window_bounds = array<i64: 2, 1, 256>}, {transform_indices = @transform_13, window_bounds = array<i64: 8, 128>}]} {
    %c0 = arith.constant 0 : index
    %c0_0 = arith.constant 0 : index
    %c0_1 = arith.constant 0 : index
    %0 = vector.load %arg1[%c0, %c0_0, %c0_1] : memref<12x8x16xbf16, #tpu.memory_space<vmem>>, vector<12x8x16xbf16>
    %1 = vector.shape_cast %0 : vector<12x8x16xbf16> to vector<96x16xbf16>
    %c0_2 = arith.constant 0 : index
    %c0_3 = arith.constant 0 : index
    %2 = vector.load %arg2[%c0_2, %c0_3] : memref<16x16xbf16, #tpu.memory_space<vmem>>, vector<16x16xbf16>
    %cst = arith.constant dense<0.000000e+00> : vector<96x16xf32>
    %3 = tpu.matmul %1, %2, %cst {dimension_numbers = #tpu.dot_dimension_numbers<[1], [0], [0], [1], [0, 0, 1, 1], [], []>} : vector<96x16xbf16>, vector<16x16xbf16>, vector<96x16xf32> -> vector<96x16xf32>
    %4 = vector.shape_cast %3 : vector<96x16xf32> to vector<12x8x16xf32>
    %5 = vector.extract_strided_slice %4 {offsets = [0, 0, 0], sizes = [1, 8, 16], strides = [1, 1, 1]} : vector<12x8x16xf32> to vector<1x8x16xf32>
    %6 = vector.shape_cast %5 : vector<1x8x16xf32> to vector<8x16xf32>
    %7 = vector.extract_strided_slice %4 {offsets = [1, 0, 0], sizes = [1, 8, 16], strides = [1, 1, 1]} : vector<12x8x16xf32> to vector<1x8x16xf32>
    %8 = vector.shape_cast %7 : vector<1x8x16xf32> to vector<8x16xf32>
    %9 = arith.maximumf %6, %8 : vector<8x16xf32>
    %10 = vector.extract_strided_slice %4 {offsets = [2, 0, 0], sizes = [1, 8, 16], strides = [1, 1, 1]} : vector<12x8x16xf32> to vector<1x8x16xf32>
    %11 = vector.shape_cast %10 : vector<1x8x16xf32> to vector<8x16xf32>
    %12 = arith.maximumf %9, %11 : vector<8x16xf32>
    %13 = vector.extract_strided_slice %4 {offsets = [3, 0, 0], sizes = [1, 8, 16], strides = [1, 1, 1]} : vector<12x8x16xf32> to vector<1x8x16xf32>
    %14 = vector.shape_cast %13 : vector<1x8x16xf32> to vector<8x16xf32>
    %15 = arith.maximumf %12, %14 : vector<8x16xf32>
    %16 = vector.extract_strided_slice %4 {offsets = [4, 0, 0], sizes = [1, 8, 16], strides = [1, 1, 1]} : vector<12x8x16xf32> to vector<1x8x16xf32>
    %17 = vector.shape_cast %16 : vector<1x8x16xf32> to vector<8x16xf32>
    %18 = arith.maximumf %15, %17 : vector<8x16xf32>
    %19 = vector.extract_strided_slice %4 {offsets = [5, 0, 0], sizes = [1, 8, 16], strides = [1, 1, 1]} : vector<12x8x16xf32> to vector<1x8x16xf32>
    %20 = vector.shape_cast %19 : vector<1x8x16xf32> to vector<8x16xf32>
    %21 = arith.maximumf %18, %20 : vector<8x16xf32>
    %22 = vector.extract_strided_slice %4 {offsets = [6, 0, 0], sizes = [1, 8, 16], strides = [1, 1, 1]} : vector<12x8x16xf32> to vector<1x8x16xf32>
    %23 = vector.shape_cast %22 : vector<1x8x16xf32> to vector<8x16xf32>
    %24 = arith.maximumf %21, %23 : vector<8x16xf32>
    %25 = vector.extract_strided_slice %4 {offsets = [7, 0, 0], sizes = [1, 8, 16], strides = [1, 1, 1]} : vector<12x8x16xf32> to vector<1x8x16xf32>
    %26 = vector.shape_cast %25 : vector<1x8x16xf32> to vector<8x16xf32>
    %27 = arith.maximumf %24, %26 : vector<8x16xf32>
    %28 = vector.extract_strided_slice %4 {offsets = [8, 0, 0], sizes = [1, 8, 16], strides = [1, 1, 1]} : vector<12x8x16xf32> to vector<1x8x16xf32>
    %29 = vector.shape_cast %28 : vector<1x8x16xf32> to vector<8x16xf32>
    %30 = arith.maximumf %27, %29 : vector<8x16xf32>
    %31 = vector.extract_strided_slice %4 {offsets = [9, 0, 0], sizes = [1, 8, 16], strides = [1, 1, 1]} : vector<12x8x16xf32> to vector<1x8x16xf32>
    %32 = vector.shape_cast %31 : vector<1x8x16xf32> to vector<8x16xf32>
    %33 = arith.maximumf %30, %32 : vector<8x16xf32>
    %34 = vector.extract_strided_slice %4 {offsets = [10, 0, 0], sizes = [1, 8, 16], strides = [1, 1, 1]} : vector<12x8x16xf32> to vector<1x8x16xf32>
    %35 = vector.shape_cast %34 : vector<1x8x16xf32> to vector<8x16xf32>
    %36 = arith.maximumf %33, %35 : vector<8x16xf32>
    %37 = vector.extract_strided_slice %4 {offsets = [11, 0, 0], sizes = [1, 8, 16], strides = [1, 1, 1]} : vector<12x8x16xf32> to vector<1x8x16xf32>
    %38 = vector.shape_cast %37 : vector<1x8x16xf32> to vector<8x16xf32>
    %39 = arith.maximumf %36, %38 : vector<8x16xf32>
    %c0_4 = arith.constant 0 : index
    %c0_5 = arith.constant 0 : index
    %40 = vector.load %arg7[%c0_4, %c0_5] : memref<1x16xf32, #tpu.memory_space<vmem>>, vector<1x16xf32>
    %41 = vector.broadcast %40 : vector<1x16xf32> to vector<8x16xf32>
    %42 = arith.addf %39, %41 : vector<8x16xf32>
    %43 = math.tanh %42 : vector<8x16xf32>
    %c0_6 = arith.constant 0 : index
    %c0_7 = arith.constant 0 : index
    %c0_8 = arith.constant 0 : index
    %44 = vector.load %arg1[%c0_6, %c0_7, %c0_8] : memref<12x8x16xbf16, #tpu.memory_space<vmem>>, vector<11x8x16xbf16>
    %c1 = arith.constant 1 : index
    %c0_9 = arith.constant 0 : index
    %c0_10 = arith.constant 0 : index
    %45 = vector.load %arg1[%c1, %c0_9, %c0_10] : memref<12x8x16xbf16, #tpu.memory_space<vmem>>, vector<11x8x16xbf16>
    %46 = tpu.concatenate %44, %45 in 2 : vector<11x8x16xbf16>, vector<11x8x16xbf16> -> vector<11x8x32xbf16>
    %47 = vector.shape_cast %46 : vector<11x8x32xbf16> to vector<88x32xbf16>
    %c0_11 = arith.constant 0 : index
    %c0_12 = arith.constant 0 : index
    %48 = vector.load %arg3[%c0_11, %c0_12] : memref<32x16xbf16, #tpu.memory_space<vmem>>, vector<32x16xbf16>
    %cst_13 = arith.constant dense<0.000000e+00> : vector<88x16xf32>
    %49 = tpu.matmul %47, %48, %cst_13 {dimension_numbers = #tpu.dot_dimension_numbers<[1], [0], [0], [1], [0, 0, 1, 1], [], []>} : vector<88x32xbf16>, vector<32x16xbf16>, vector<88x16xf32> -> vector<88x16xf32>
    %50 = vector.shape_cast %49 : vector<88x16xf32> to vector<11x8x16xf32>
    %51 = vector.extract_strided_slice %50 {offsets = [0, 0, 0], sizes = [1, 8, 16], strides = [1, 1, 1]} : vector<11x8x16xf32> to vector<1x8x16xf32>
    %52 = vector.shape_cast %51 : vector<1x8x16xf32> to vector<8x16xf32>
    %53 = vector.extract_strided_slice %50 {offsets = [1, 0, 0], sizes = [1, 8, 16], strides = [1, 1, 1]} : vector<11x8x16xf32> to vector<1x8x16xf32>
    %54 = vector.shape_cast %53 : vector<1x8x16xf32> to vector<8x16xf32>
    %55 = arith.maximumf %52, %54 : vector<8x16xf32>
    %56 = vector.extract_strided_slice %50 {offsets = [2, 0, 0], sizes = [1, 8, 16], strides = [1, 1, 1]} : vector<11x8x16xf32> to vector<1x8x16xf32>
    %57 = vector.shape_cast %56 : vector<1x8x16xf32> to vector<8x16xf32>
    %58 = arith.maximumf %55, %57 : vector<8x16xf32>
    %59 = vector.extract_strided_slice %50 {offsets = [3, 0, 0], sizes = [1, 8, 16], strides = [1, 1, 1]} : vector<11x8x16xf32> to vector<1x8x16xf32>
    %60 = vector.shape_cast %59 : vector<1x8x16xf32> to vector<8x16xf32>
    %61 = arith.maximumf %58, %60 : vector<8x16xf32>
    %62 = vector.extract_strided_slice %50 {offsets = [4, 0, 0], sizes = [1, 8, 16], strides = [1, 1, 1]} : vector<11x8x16xf32> to vector<1x8x16xf32>
    %63 = vector.shape_cast %62 : vector<1x8x16xf32> to vector<8x16xf32>
    %64 = arith.maximumf %61, %63 : vector<8x16xf32>
    %65 = vector.extract_strided_slice %50 {offsets = [5, 0, 0], sizes = [1, 8, 16], strides = [1, 1, 1]} : vector<11x8x16xf32> to vector<1x8x16xf32>
    %66 = vector.shape_cast %65 : vector<1x8x16xf32> to vector<8x16xf32>
    %67 = arith.maximumf %64, %66 : vector<8x16xf32>
    %68 = vector.extract_strided_slice %50 {offsets = [6, 0, 0], sizes = [1, 8, 16], strides = [1, 1, 1]} : vector<11x8x16xf32> to vector<1x8x16xf32>
    %69 = vector.shape_cast %68 : vector<1x8x16xf32> to vector<8x16xf32>
    %70 = arith.maximumf %67, %69 : vector<8x16xf32>
    %71 = vector.extract_strided_slice %50 {offsets = [7, 0, 0], sizes = [1, 8, 16], strides = [1, 1, 1]} : vector<11x8x16xf32> to vector<1x8x16xf32>
    %72 = vector.shape_cast %71 : vector<1x8x16xf32> to vector<8x16xf32>
    %73 = arith.maximumf %70, %72 : vector<8x16xf32>
    %74 = vector.extract_strided_slice %50 {offsets = [8, 0, 0], sizes = [1, 8, 16], strides = [1, 1, 1]} : vector<11x8x16xf32> to vector<1x8x16xf32>
    %75 = vector.shape_cast %74 : vector<1x8x16xf32> to vector<8x16xf32>
    %76 = arith.maximumf %73, %75 : vector<8x16xf32>
    %77 = vector.extract_strided_slice %50 {offsets = [9, 0, 0], sizes = [1, 8, 16], strides = [1, 1, 1]} : vector<11x8x16xf32> to vector<1x8x16xf32>
    %78 = vector.shape_cast %77 : vector<1x8x16xf32> to vector<8x16xf32>
    %79 = arith.maximumf %76, %78 : vector<8x16xf32>
    %80 = vector.extract_strided_slice %50 {offsets = [10, 0, 0], sizes = [1, 8, 16], strides = [1, 1, 1]} : vector<11x8x16xf32> to vector<1x8x16xf32>
    %81 = vector.shape_cast %80 : vector<1x8x16xf32> to vector<8x16xf32>
    %82 = arith.maximumf %79, %81 : vector<8x16xf32>
    %c0_14 = arith.constant 0 : index
    %c0_15 = arith.constant 0 : index
    %83 = vector.load %arg8[%c0_14, %c0_15] : memref<1x16xf32, #tpu.memory_space<vmem>>, vector<1x16xf32>
    %84 = vector.broadcast %83 : vector<1x16xf32> to vector<8x16xf32>
    %85 = arith.addf %82, %84 : vector<8x16xf32>
    %86 = math.tanh %85 : vector<8x16xf32>
    %c0_16 = arith.constant 0 : index
    %c0_17 = arith.constant 0 : index
    %c0_18 = arith.constant 0 : index
    %87 = vector.load %arg1[%c0_16, %c0_17, %c0_18] : memref<12x8x16xbf16, #tpu.memory_space<vmem>>, vector<10x8x16xbf16>
    %c1_19 = arith.constant 1 : index
    %c0_20 = arith.constant 0 : index
    %c0_21 = arith.constant 0 : index
    %88 = vector.load %arg1[%c1_19, %c0_20, %c0_21] : memref<12x8x16xbf16, #tpu.memory_space<vmem>>, vector<10x8x16xbf16>
    %c2 = arith.constant 2 : index
    %c0_22 = arith.constant 0 : index
    %c0_23 = arith.constant 0 : index
    %89 = vector.load %arg1[%c2, %c0_22, %c0_23] : memref<12x8x16xbf16, #tpu.memory_space<vmem>>, vector<10x8x16xbf16>
    %90 = tpu.concatenate %87, %88, %89 in 2 : vector<10x8x16xbf16>, vector<10x8x16xbf16>, vector<10x8x16xbf16> -> vector<10x8x48xbf16>
    %91 = vector.shape_cast %90 : vector<10x8x48xbf16> to vector<80x48xbf16>
    %c0_24 = arith.constant 0 : index
    %c0_25 = arith.constant 0 : index
    %92 = vector.load %arg4[%c0_24, %c0_25] : memref<48x32xbf16, #tpu.memory_space<vmem>>, vector<48x32xbf16>
    %cst_26 = arith.constant dense<0.000000e+00> : vector<80x32xf32>
    %93 = tpu.matmul %91, %92, %cst_26 {dimension_numbers = #tpu.dot_dimension_numbers<[1], [0], [0], [1], [0, 0, 1, 1], [], []>} : vector<80x48xbf16>, vector<48x32xbf16>, vector<80x32xf32> -> vector<80x32xf32>
    %94 = vector.shape_cast %93 : vector<80x32xf32> to vector<10x8x32xf32>
    %95 = vector.extract_strided_slice %94 {offsets = [0, 0, 0], sizes = [1, 8, 32], strides = [1, 1, 1]} : vector<10x8x32xf32> to vector<1x8x32xf32>
    %96 = vector.shape_cast %95 : vector<1x8x32xf32> to vector<8x32xf32>
    %97 = vector.extract_strided_slice %94 {offsets = [1, 0, 0], sizes = [1, 8, 32], strides = [1, 1, 1]} : vector<10x8x32xf32> to vector<1x8x32xf32>
    %98 = vector.shape_cast %97 : vector<1x8x32xf32> to vector<8x32xf32>
    %99 = arith.maximumf %96, %98 : vector<8x32xf32>
    %100 = vector.extract_strided_slice %94 {offsets = [2, 0, 0], sizes = [1, 8, 32], strides = [1, 1, 1]} : vector<10x8x32xf32> to vector<1x8x32xf32>
    %101 = vector.shape_cast %100 : vector<1x8x32xf32> to vector<8x32xf32>
    %102 = arith.maximumf %99, %101 : vector<8x32xf32>
    %103 = vector.extract_strided_slice %94 {offsets = [3, 0, 0], sizes = [1, 8, 32], strides = [1, 1, 1]} : vector<10x8x32xf32> to vector<1x8x32xf32>
    %104 = vector.shape_cast %103 : vector<1x8x32xf32> to vector<8x32xf32>
    %105 = arith.maximumf %102, %104 : vector<8x32xf32>
    %106 = vector.extract_strided_slice %94 {offsets = [4, 0, 0], sizes = [1, 8, 32], strides = [1, 1, 1]} : vector<10x8x32xf32> to vector<1x8x32xf32>
    %107 = vector.shape_cast %106 : vector<1x8x32xf32> to vector<8x32xf32>
    %108 = arith.maximumf %105, %107 : vector<8x32xf32>
    %109 = vector.extract_strided_slice %94 {offsets = [5, 0, 0], sizes = [1, 8, 32], strides = [1, 1, 1]} : vector<10x8x32xf32> to vector<1x8x32xf32>
    %110 = vector.shape_cast %109 : vector<1x8x32xf32> to vector<8x32xf32>
    %111 = arith.maximumf %108, %110 : vector<8x32xf32>
    %112 = vector.extract_strided_slice %94 {offsets = [6, 0, 0], sizes = [1, 8, 32], strides = [1, 1, 1]} : vector<10x8x32xf32> to vector<1x8x32xf32>
    %113 = vector.shape_cast %112 : vector<1x8x32xf32> to vector<8x32xf32>
    %114 = arith.maximumf %111, %113 : vector<8x32xf32>
    %115 = vector.extract_strided_slice %94 {offsets = [7, 0, 0], sizes = [1, 8, 32], strides = [1, 1, 1]} : vector<10x8x32xf32> to vector<1x8x32xf32>
    %116 = vector.shape_cast %115 : vector<1x8x32xf32> to vector<8x32xf32>
    %117 = arith.maximumf %114, %116 : vector<8x32xf32>
    %118 = vector.extract_strided_slice %94 {offsets = [8, 0, 0], sizes = [1, 8, 32], strides = [1, 1, 1]} : vector<10x8x32xf32> to vector<1x8x32xf32>
    %119 = vector.shape_cast %118 : vector<1x8x32xf32> to vector<8x32xf32>
    %120 = arith.maximumf %117, %119 : vector<8x32xf32>
    %121 = vector.extract_strided_slice %94 {offsets = [9, 0, 0], sizes = [1, 8, 32], strides = [1, 1, 1]} : vector<10x8x32xf32> to vector<1x8x32xf32>
    %122 = vector.shape_cast %121 : vector<1x8x32xf32> to vector<8x32xf32>
    %123 = arith.maximumf %120, %122 : vector<8x32xf32>
    %c0_27 = arith.constant 0 : index
    %c0_28 = arith.constant 0 : index
    %124 = vector.load %arg9[%c0_27, %c0_28] : memref<1x32xf32, #tpu.memory_space<vmem>>, vector<1x32xf32>
    %125 = vector.broadcast %124 : vector<1x32xf32> to vector<8x32xf32>
    %126 = arith.addf %123, %125 : vector<8x32xf32>
    %127 = math.tanh %126 : vector<8x32xf32>
    %c0_29 = arith.constant 0 : index
    %c0_30 = arith.constant 0 : index
    %c0_31 = arith.constant 0 : index
    %128 = vector.load %arg1[%c0_29, %c0_30, %c0_31] : memref<12x8x16xbf16, #tpu.memory_space<vmem>>, vector<9x8x16xbf16>
    %c1_32 = arith.constant 1 : index
    %c0_33 = arith.constant 0 : index
    %c0_34 = arith.constant 0 : index
    %129 = vector.load %arg1[%c1_32, %c0_33, %c0_34] : memref<12x8x16xbf16, #tpu.memory_space<vmem>>, vector<9x8x16xbf16>
    %c2_35 = arith.constant 2 : index
    %c0_36 = arith.constant 0 : index
    %c0_37 = arith.constant 0 : index
    %130 = vector.load %arg1[%c2_35, %c0_36, %c0_37] : memref<12x8x16xbf16, #tpu.memory_space<vmem>>, vector<9x8x16xbf16>
    %c3 = arith.constant 3 : index
    %c0_38 = arith.constant 0 : index
    %c0_39 = arith.constant 0 : index
    %131 = vector.load %arg1[%c3, %c0_38, %c0_39] : memref<12x8x16xbf16, #tpu.memory_space<vmem>>, vector<9x8x16xbf16>
    %132 = tpu.concatenate %128, %129, %130, %131 in 2 : vector<9x8x16xbf16>, vector<9x8x16xbf16>, vector<9x8x16xbf16>, vector<9x8x16xbf16> -> vector<9x8x64xbf16>
    %133 = vector.shape_cast %132 : vector<9x8x64xbf16> to vector<72x64xbf16>
    %c0_40 = arith.constant 0 : index
    %c0_41 = arith.constant 0 : index
    %134 = vector.load %arg5[%c0_40, %c0_41] : memref<64x32xbf16, #tpu.memory_space<vmem>>, vector<64x32xbf16>
    %cst_42 = arith.constant dense<0.000000e+00> : vector<72x32xf32>
    %135 = tpu.matmul %133, %134, %cst_42 {dimension_numbers = #tpu.dot_dimension_numbers<[1], [0], [0], [1], [0, 0, 1, 1], [], []>} : vector<72x64xbf16>, vector<64x32xbf16>, vector<72x32xf32> -> vector<72x32xf32>
    %136 = vector.shape_cast %135 : vector<72x32xf32> to vector<9x8x32xf32>
    %137 = vector.extract_strided_slice %136 {offsets = [0, 0, 0], sizes = [1, 8, 32], strides = [1, 1, 1]} : vector<9x8x32xf32> to vector<1x8x32xf32>
    %138 = vector.shape_cast %137 : vector<1x8x32xf32> to vector<8x32xf32>
    %139 = vector.extract_strided_slice %136 {offsets = [1, 0, 0], sizes = [1, 8, 32], strides = [1, 1, 1]} : vector<9x8x32xf32> to vector<1x8x32xf32>
    %140 = vector.shape_cast %139 : vector<1x8x32xf32> to vector<8x32xf32>
    %141 = arith.maximumf %138, %140 : vector<8x32xf32>
    %142 = vector.extract_strided_slice %136 {offsets = [2, 0, 0], sizes = [1, 8, 32], strides = [1, 1, 1]} : vector<9x8x32xf32> to vector<1x8x32xf32>
    %143 = vector.shape_cast %142 : vector<1x8x32xf32> to vector<8x32xf32>
    %144 = arith.maximumf %141, %143 : vector<8x32xf32>
    %145 = vector.extract_strided_slice %136 {offsets = [3, 0, 0], sizes = [1, 8, 32], strides = [1, 1, 1]} : vector<9x8x32xf32> to vector<1x8x32xf32>
    %146 = vector.shape_cast %145 : vector<1x8x32xf32> to vector<8x32xf32>
    %147 = arith.maximumf %144, %146 : vector<8x32xf32>
    %148 = vector.extract_strided_slice %136 {offsets = [4, 0, 0], sizes = [1, 8, 32], strides = [1, 1, 1]} : vector<9x8x32xf32> to vector<1x8x32xf32>
    %149 = vector.shape_cast %148 : vector<1x8x32xf32> to vector<8x32xf32>
    %150 = arith.maximumf %147, %149 : vector<8x32xf32>
    %151 = vector.extract_strided_slice %136 {offsets = [5, 0, 0], sizes = [1, 8, 32], strides = [1, 1, 1]} : vector<9x8x32xf32> to vector<1x8x32xf32>
    %152 = vector.shape_cast %151 : vector<1x8x32xf32> to vector<8x32xf32>
    %153 = arith.maximumf %150, %152 : vector<8x32xf32>
    %154 = vector.extract_strided_slice %136 {offsets = [6, 0, 0], sizes = [1, 8, 32], strides = [1, 1, 1]} : vector<9x8x32xf32> to vector<1x8x32xf32>
    %155 = vector.shape_cast %154 : vector<1x8x32xf32> to vector<8x32xf32>
    %156 = arith.maximumf %153, %155 : vector<8x32xf32>
    %157 = vector.extract_strided_slice %136 {offsets = [7, 0, 0], sizes = [1, 8, 32], strides = [1, 1, 1]} : vector<9x8x32xf32> to vector<1x8x32xf32>
    %158 = vector.shape_cast %157 : vector<1x8x32xf32> to vector<8x32xf32>
    %159 = arith.maximumf %156, %158 : vector<8x32xf32>
    %160 = vector.extract_strided_slice %136 {offsets = [8, 0, 0], sizes = [1, 8, 32], strides = [1, 1, 1]} : vector<9x8x32xf32> to vector<1x8x32xf32>
    %161 = vector.shape_cast %160 : vector<1x8x32xf32> to vector<8x32xf32>
    %162 = arith.maximumf %159, %161 : vector<8x32xf32>
    %c0_43 = arith.constant 0 : index
    %c0_44 = arith.constant 0 : index
    %163 = vector.load %arg10[%c0_43, %c0_44] : memref<1x32xf32, #tpu.memory_space<vmem>>, vector<1x32xf32>
    %164 = vector.broadcast %163 : vector<1x32xf32> to vector<8x32xf32>
    %165 = arith.addf %162, %164 : vector<8x32xf32>
    %166 = math.tanh %165 : vector<8x32xf32>
    %c0_45 = arith.constant 0 : index
    %c0_46 = arith.constant 0 : index
    %c0_47 = arith.constant 0 : index
    %167 = vector.load %arg1[%c0_45, %c0_46, %c0_47] : memref<12x8x16xbf16, #tpu.memory_space<vmem>>, vector<8x8x16xbf16>
    %c1_48 = arith.constant 1 : index
    %c0_49 = arith.constant 0 : index
    %c0_50 = arith.constant 0 : index
    %168 = vector.load %arg1[%c1_48, %c0_49, %c0_50] : memref<12x8x16xbf16, #tpu.memory_space<vmem>>, vector<8x8x16xbf16>
    %c2_51 = arith.constant 2 : index
    %c0_52 = arith.constant 0 : index
    %c0_53 = arith.constant 0 : index
    %169 = vector.load %arg1[%c2_51, %c0_52, %c0_53] : memref<12x8x16xbf16, #tpu.memory_space<vmem>>, vector<8x8x16xbf16>
    %c3_54 = arith.constant 3 : index
    %c0_55 = arith.constant 0 : index
    %c0_56 = arith.constant 0 : index
    %170 = vector.load %arg1[%c3_54, %c0_55, %c0_56] : memref<12x8x16xbf16, #tpu.memory_space<vmem>>, vector<8x8x16xbf16>
    %c4 = arith.constant 4 : index
    %c0_57 = arith.constant 0 : index
    %c0_58 = arith.constant 0 : index
    %171 = vector.load %arg1[%c4, %c0_57, %c0_58] : memref<12x8x16xbf16, #tpu.memory_space<vmem>>, vector<8x8x16xbf16>
    %172 = tpu.concatenate %167, %168, %169, %170, %171 in 2 : vector<8x8x16xbf16>, vector<8x8x16xbf16>, vector<8x8x16xbf16>, vector<8x8x16xbf16>, vector<8x8x16xbf16> -> vector<8x8x80xbf16>
    %173 = vector.shape_cast %172 : vector<8x8x80xbf16> to vector<64x80xbf16>
    %c0_59 = arith.constant 0 : index
    %c0_60 = arith.constant 0 : index
    %174 = vector.load %arg6[%c0_59, %c0_60] : memref<80x32xbf16, #tpu.memory_space<vmem>>, vector<80x32xbf16>
    %cst_61 = arith.constant dense<0.000000e+00> : vector<64x32xf32>
    %175 = tpu.matmul %173, %174, %cst_61 {dimension_numbers = #tpu.dot_dimension_numbers<[1], [0], [0], [1], [0, 0, 1, 1], [], []>} : vector<64x80xbf16>, vector<80x32xbf16>, vector<64x32xf32> -> vector<64x32xf32>
    %176 = vector.shape_cast %175 : vector<64x32xf32> to vector<8x8x32xf32>
    %177 = vector.extract_strided_slice %176 {offsets = [0, 0, 0], sizes = [1, 8, 32], strides = [1, 1, 1]} : vector<8x8x32xf32> to vector<1x8x32xf32>
    %178 = vector.shape_cast %177 : vector<1x8x32xf32> to vector<8x32xf32>
    %179 = vector.extract_strided_slice %176 {offsets = [1, 0, 0], sizes = [1, 8, 32], strides = [1, 1, 1]} : vector<8x8x32xf32> to vector<1x8x32xf32>
    %180 = vector.shape_cast %179 : vector<1x8x32xf32> to vector<8x32xf32>
    %181 = arith.maximumf %178, %180 : vector<8x32xf32>
    %182 = vector.extract_strided_slice %176 {offsets = [2, 0, 0], sizes = [1, 8, 32], strides = [1, 1, 1]} : vector<8x8x32xf32> to vector<1x8x32xf32>
    %183 = vector.shape_cast %182 : vector<1x8x32xf32> to vector<8x32xf32>
    %184 = arith.maximumf %181, %183 : vector<8x32xf32>
    %185 = vector.extract_strided_slice %176 {offsets = [3, 0, 0], sizes = [1, 8, 32], strides = [1, 1, 1]} : vector<8x8x32xf32> to vector<1x8x32xf32>
    %186 = vector.shape_cast %185 : vector<1x8x32xf32> to vector<8x32xf32>
    %187 = arith.maximumf %184, %186 : vector<8x32xf32>
    %188 = vector.extract_strided_slice %176 {offsets = [4, 0, 0], sizes = [1, 8, 32], strides = [1, 1, 1]} : vector<8x8x32xf32> to vector<1x8x32xf32>
    %189 = vector.shape_cast %188 : vector<1x8x32xf32> to vector<8x32xf32>
    %190 = arith.maximumf %187, %189 : vector<8x32xf32>
    %191 = vector.extract_strided_slice %176 {offsets = [5, 0, 0], sizes = [1, 8, 32], strides = [1, 1, 1]} : vector<8x8x32xf32> to vector<1x8x32xf32>
    %192 = vector.shape_cast %191 : vector<1x8x32xf32> to vector<8x32xf32>
    %193 = arith.maximumf %190, %192 : vector<8x32xf32>
    %194 = vector.extract_strided_slice %176 {offsets = [6, 0, 0], sizes = [1, 8, 32], strides = [1, 1, 1]} : vector<8x8x32xf32> to vector<1x8x32xf32>
    %195 = vector.shape_cast %194 : vector<1x8x32xf32> to vector<8x32xf32>
    %196 = arith.maximumf %193, %195 : vector<8x32xf32>
    %197 = vector.extract_strided_slice %176 {offsets = [7, 0, 0], sizes = [1, 8, 32], strides = [1, 1, 1]} : vector<8x8x32xf32> to vector<1x8x32xf32>
    %198 = vector.shape_cast %197 : vector<1x8x32xf32> to vector<8x32xf32>
    %199 = arith.maximumf %196, %198 : vector<8x32xf32>
    %c0_62 = arith.constant 0 : index
    %c0_63 = arith.constant 0 : index
    %200 = vector.load %arg11[%c0_62, %c0_63] : memref<1x32xf32, #tpu.memory_space<vmem>>, vector<1x32xf32>
    %201 = vector.broadcast %200 : vector<1x32xf32> to vector<8x32xf32>
    %202 = arith.addf %199, %201 : vector<8x32xf32>
    %203 = math.tanh %202 : vector<8x32xf32>
    %204 = tpu.concatenate %43, %86, %127, %166, %203 in 1 : vector<8x16xf32>, vector<8x16xf32>, vector<8x32xf32>, vector<8x32xf32>, vector<8x32xf32> -> vector<8x128xf32>
    %205 = arith.truncf %204 : vector<8x128xf32> to vector<8x128xbf16>
    %c0_64 = arith.constant 0 : index
    %c0_65 = arith.constant 0 : index
    %c0_66 = arith.constant 0 : index
    %206 = vector.load %arg12[%c0_64, %c0_65, %c0_66] : memref<2x128x256xbf16, #tpu.memory_space<vmem>>, vector<1x128x256xbf16>
    %207 = vector.shape_cast %206 : vector<1x128x256xbf16> to vector<128x256xbf16>
    %cst_67 = arith.constant dense<0.000000e+00> : vector<8x256xf32>
    %208 = tpu.matmul %205, %207, %cst_67 {dimension_numbers = #tpu.dot_dimension_numbers<[1], [0], [0], [1], [0, 0, 1, 1], [], []>} : vector<8x128xbf16>, vector<128x256xbf16>, vector<8x256xf32> -> vector<8x256xf32>
    %c0_68 = arith.constant 0 : index
    %c0_69 = arith.constant 0 : index
    %c0_70 = arith.constant 0 : index
    %209 = vector.load %arg13[%c0_68, %c0_69, %c0_70] : memref<2x1x256xf32, #tpu.memory_space<vmem>>, vector<1x1x256xf32>
    %210 = vector.shape_cast %209 : vector<1x1x256xf32> to vector<1x256xf32>
    %211 = vector.broadcast %210 : vector<1x256xf32> to vector<8x256xf32>
    %212 = arith.addf %208, %211 : vector<8x256xf32>
    %213 = vector.extract_strided_slice %212 {offsets = [0, 0], sizes = [8, 128], strides = [1, 1]} : vector<8x256xf32> to vector<8x128xf32>
    %214 = arith.negf %213 : vector<8x128xf32>
    %215 = math.exp %214 : vector<8x128xf32>
    %cst_71 = arith.constant 1.000000e+00 : f32
    %216 = vector.broadcast %cst_71 : f32 to vector<8x128xf32>
    %217 = arith.addf %216, %215 : vector<8x128xf32>
    %218 = arith.divf %216, %217 : vector<8x128xf32>
    %219 = vector.extract_strided_slice %212 {offsets = [0, 128], sizes = [8, 128], strides = [1, 1]} : vector<8x256xf32> to vector<8x128xf32>
    %cst_72 = arith.constant 0.000000e+00 : f32
    %220 = vector.broadcast %cst_72 : f32 to vector<8x128xf32>
    %221 = arith.maximumf %219, %220 : vector<8x128xf32>
    %222 = arith.mulf %218, %221 : vector<8x128xf32>
    %cst_73 = arith.constant 1.000000e+00 : f32
    %223 = vector.broadcast %cst_73 : f32 to vector<8x128xf32>
    %224 = arith.subf %223, %218 : vector<8x128xf32>
    %225 = arith.mulf %224, %204 : vector<8x128xf32>
    %226 = arith.addf %222, %225 : vector<8x128xf32>
    %227 = arith.truncf %226 : vector<8x128xf32> to vector<8x128xbf16>
    %c1_74 = arith.constant 1 : index
    %c0_75 = arith.constant 0 : index
    %c0_76 = arith.constant 0 : index
    %228 = vector.load %arg12[%c1_74, %c0_75, %c0_76] : memref<2x128x256xbf16, #tpu.memory_space<vmem>>, vector<1x128x256xbf16>
    %229 = vector.shape_cast %228 : vector<1x128x256xbf16> to vector<128x256xbf16>
    %cst_77 = arith.constant dense<0.000000e+00> : vector<8x256xf32>
    %230 = tpu.matmul %227, %229, %cst_77 {dimension_numbers = #tpu.dot_dimension_numbers<[1], [0], [0], [1], [0, 0, 1, 1], [], []>} : vector<8x128xbf16>, vector<128x256xbf16>, vector<8x256xf32> -> vector<8x256xf32>
    %c1_78 = arith.constant 1 : index
    %c0_79 = arith.constant 0 : index
    %c0_80 = arith.constant 0 : index
    %231 = vector.load %arg13[%c1_78, %c0_79, %c0_80] : memref<2x1x256xf32, #tpu.memory_space<vmem>>, vector<1x1x256xf32>
    %232 = vector.shape_cast %231 : vector<1x1x256xf32> to vector<1x256xf32>
    %233 = vector.broadcast %232 : vector<1x256xf32> to vector<8x256xf32>
    %234 = arith.addf %230, %233 : vector<8x256xf32>
    %235 = vector.extract_strided_slice %234 {offsets = [0, 0], sizes = [8, 128], strides = [1, 1]} : vector<8x256xf32> to vector<8x128xf32>
    %236 = arith.negf %235 : vector<8x128xf32>
    %237 = math.exp %236 : vector<8x128xf32>
    %cst_81 = arith.constant 1.000000e+00 : f32
    %238 = vector.broadcast %cst_81 : f32 to vector<8x128xf32>
    %239 = arith.addf %238, %237 : vector<8x128xf32>
    %240 = arith.divf %238, %239 : vector<8x128xf32>
    %241 = vector.extract_strided_slice %234 {offsets = [0, 128], sizes = [8, 128], strides = [1, 1]} : vector<8x256xf32> to vector<8x128xf32>
    %cst_82 = arith.constant 0.000000e+00 : f32
    %242 = vector.broadcast %cst_82 : f32 to vector<8x128xf32>
    %243 = arith.maximumf %241, %242 : vector<8x128xf32>
    %244 = arith.mulf %240, %243 : vector<8x128xf32>
    %cst_83 = arith.constant 1.000000e+00 : f32
    %245 = vector.broadcast %cst_83 : f32 to vector<8x128xf32>
    %246 = arith.subf %245, %240 : vector<8x128xf32>
    %247 = arith.mulf %246, %226 : vector<8x128xf32>
    %248 = arith.addf %244, %247 : vector<8x128xf32>
    %249 = arith.truncf %248 : vector<8x128xf32> to vector<8x128xbf16>
    %c0_84 = arith.constant 0 : index
    %c0_85 = arith.constant 0 : index
    %250 = vector.load %arg14[%c0_84, %c0_85] : memref<8x128xbf16, #tpu.memory_space<vmem>>, vector<8x128xbf16>
    tpu.vector_store %arg14[%c0_84, %c0_85], %249 {strides = array<i32>} : memref<8x128xbf16, #tpu.memory_space<vmem>>, vector<8x128xbf16>,
    return
  }
  func.func @transform_0(%arg0: i32) -> (i32, i32, i32) {
    %c0_i32 = arith.constant 0 : i32
    %c0_i32_0 = arith.constant 0 : i32
    %c0_i32_1 = arith.constant 0 : i32
    return %c0_i32, %arg0, %c0_i32_0 : i32, i32, i32
  }
  func.func @transform_1(%arg0: i32) -> (i32, i32) {
    %c0_i32 = arith.constant 0 : i32
    %c0_i32_0 = arith.constant 0 : i32
    %c0_i32_1 = arith.constant 0 : i32
    return %c0_i32, %c0_i32_0 : i32, i32
  }
  func.func @transform_2(%arg0: i32) -> (i32, i32) {
    %c0_i32 = arith.constant 0 : i32
    %c0_i32_0 = arith.constant 0 : i32
    %c0_i32_1 = arith.constant 0 : i32
    return %c0_i32, %c0_i32_0 : i32, i32
  }
  func.func @transform_3(%arg0: i32) -> (i32, i32) {
    %c0_i32 = arith.constant 0 : i32
    %c0_i32_0 = arith.constant 0 : i32
    %c0_i32_1 = arith.constant 0 : i32
    return %c0_i32, %c0_i32_0 : i32, i32
  }
  func.func @transform_4(%arg0: i32) -> (i32, i32) {
    %c0_i32 = arith.constant 0 : i32
    %c0_i32_0 = arith.constant 0 : i32
    %c0_i32_1 = arith.constant 0 : i32
    return %c0_i32, %c0_i32_0 : i32, i32
  }
  func.func @transform_5(%arg0: i32) -> (i32, i32) {
    %c0_i32 = arith.constant 0 : i32
    %c0_i32_0 = arith.constant 0 : i32
    %c0_i32_1 = arith.constant 0 : i32
    return %c0_i32, %c0_i32_0 : i32, i32
  }
  func.func @transform_6(%arg0: i32) -> (i32, i32) {
    %c0_i32 = arith.constant 0 : i32
    %c0_i32_0 = arith.constant 0 : i32
    %c0_i32_1 = arith.constant 0 : i32
    return %c0_i32, %c0_i32_0 : i32, i32
  }
  func.func @transform_7(%arg0: i32) -> (i32, i32) {
    %c0_i32 = arith.constant 0 : i32
    %c0_i32_0 = arith.constant 0 : i32
    %c0_i32_1 = arith.constant 0 : i32
    return %c0_i32, %c0_i32_0 : i32, i32
  }
  func.func @transform_8(%arg0: i32) -> (i32, i32) {
    %c0_i32 = arith.constant 0 : i32
    %c0_i32_0 = arith.constant 0 : i32
    %c0_i32_1 = arith.constant 0 : i32
    return %c0_i32, %c0_i32_0 : i32, i32
  }
  func.func @transform_9(%arg0: i32) -> (i32, i32) {
    %c0_i32 = arith.constant 0 : i32
    %c0_i32_0 = arith.constant 0 : i32
    %c0_i32_1 = arith.constant 0 : i32
    return %c0_i32, %c0_i32_0 : i32, i32
  }
  func.func @transform_10(%arg0: i32) -> (i32, i32) {
    %c0_i32 = arith.constant 0 : i32
    %c0_i32_0 = arith.constant 0 : i32
    %c0_i32_1 = arith.constant 0 : i32
    return %c0_i32, %c0_i32_0 : i32, i32
  }
  func.func @transform_11(%arg0: i32) -> (i32, i32, i32) {
    %c0_i32 = arith.constant 0 : i32
    %c0_i32_0 = arith.constant 0 : i32
    %c0_i32_1 = arith.constant 0 : i32
    %c0_i32_2 = arith.constant 0 : i32
    return %c0_i32, %c0_i32_0, %c0_i32_1 : i32, i32, i32
  }
  func.func @transform_12(%arg0: i32) -> (i32, i32, i32) {
    %c0_i32 = arith.constant 0 : i32
    %c0_i32_0 = arith.constant 0 : i32
    %c0_i32_1 = arith.constant 0 : i32
    %c0_i32_2 = arith.constant 0 : i32
    return %c0_i32, %c0_i32_0, %c0_i32_1 : i32, i32, i32
  }
  func.func @transform_13(%arg0: i32) -> (i32, i32) {
    %c0_i32 = arith.constant 0 : i32
    %c0_i32_0 = arith.constant 0 : i32
    return %arg0, %c0_i32 : i32, i32
  }
}

</mosaic_0001>

<bundles_post_ra>
// kernel: model_forward.3
= control target key start
LH: loop header
LB: loop body
LE: loop exit
PB: predicated region body
PF: predicated region fallthrough
CT: control target
= control target key end

     0   :  { %vm187_vm0 = vcmask 261120   ;;  %vm297_vm5 = vcmask 523264   ;;  %s2079_s1 = inlined_call_operand.vmem [shape: bf16[128,128], index: 1, kind: input, shape index: {}]   ;;  %s2080_s2 = inlined_call_operand.vmem [shape: bf16[32,128], index: 2, kind: input, shape index: {}]   ;;  %s2081_s6 = inlined_call_operand.vmem [shape: f32[2,8,32], index: 6, kind: input, shape index: {}]   ;;  %s2082_s3 = inlined_call_operand.vmem [shape: f32[1,128], index: 3, kind: input, shape index: {}]   ;;  %s2083_s0 = inlined_call_operand.vmem [shape: bf16[8,8,128], index: 0, kind: input, shape index: {}]   ;;  %s2084_s7 = inlined_call_operand.vmem [shape: f32[2,8,32], index: 7, kind: input, shape index: {}]   ;;  %s2085_s4 = inlined_call_operand.vmem [shape: bf16[64,128], index: 4, kind: input, shape index: {}]   ;;  %s2086_s5 = inlined_call_operand.vmem [shape: f32[1,128], index: 5, kind: input, shape index: {}]   ;;  %s2087_s11 = inlined_call_operand.vmem [shape: f32[2,8,32], index: 11, kind: output, shape index: {1}]   ;;  %s2088_s8 = inlined_call_operand.vmem [shape: bf16[32,128], index: 8, kind: input, shape index: {}]   ;;  %s2089_s9 = inlined_call_operand.vmem [shape: f32[1,128], index: 9, kind: input, shape index: {}]   ;;  %s2090_s12 = inlined_call_operand.vmem [shape: f32[2,8,32], index: 12, kind: output, shape index: {2}]   ;;  %s2091_s10 = inlined_call_operand.vmem [shape: f32[8,8,128], index: 10, kind: output, shape index: {0}]  }
   0x1   :  { %v1455_v0 = vld [vmem:[%s2079_s1 + $0x38] sm:$0xff]  ;;  %v1678_v1 = vld [vmem:[%s2080_s2 + $0x8] sm:$0xff]  ;;  %v1454_v2 = vld [vmem:[%s2079_s1 + $0x30] sm:$0xff] }
   0x2   :  { %135 = vmatpush.bf16.msra.mxu0 %v1455_v0  ;;  %197 = vmatpush.bf16.msra.mxu1 %v1678_v1  ;;  %v1687_v3 = vld [vmem:[%s2080_s2] sm:$0xff]  ;;  %v1453_v5 = vld [vmem:[%s2079_s1 + $0x28] sm:$0xff]  ;;  %v1451_v8 = vld [vmem:[%s2079_s1 + $0x18] sm:$0xff] }
   0x3   :  { %v164_v4 = vld [vmem:[%s2081_s6] sm:$0xff]  ;;  %368 = vmatpush.bf16.msra.mxu3 %v1678_v1  ;;  %v1450_v9 = vld [vmem:[%s2079_s1 + $0x10] sm:$0xff]  ;;  %v1449_v10 = vld [vmem:[%s2079_s1 + $0x8] sm:$0xff] }
   0x4   :  { %v170_v6 = vpack.c.bf16 %v164_v4, %v164_v4  ;;  %v1452_v7 = vld [vmem:[%s2079_s1 + $0x20] sm:$0xff]  ;;  %v1372_v36 = vld [vmem:[%s2081_s6 + $0x8] sm:$0xff]  ;;  %v1742_v42 = vld [vmem:[%s2085_s4 + $0x18] sm:$0xff]  ;;  %s1605_s6 = smov 64  }
   0x5   :  { %v1448_v11 = vld [vmem:[%s2079_s1] sm:$0xff]  ;;  %s1604_s1 = smov 32   ;;  %305 = vmatpush.bf16.msra.mxu2 %v1742_v42  ;;  %v1751_v46 = vld [vmem:[%s2085_s4 + $0x10] sm:$0xff]  ;;  %v1757_v47 = vld [vmem:[%s2085_s4 + $0x8] sm:$0xff] }
   0x6   :  { %136 = vmatpush.bf16.msra.mxu0 %v1454_v2  ;;  %198 = vmatpush.bf16.msra.mxu1 %v1687_v3  ;;  %v1444_v12 = vld [vmem:[%s2083_s0] sm:$0xff]  ;;  %v1373_v63 = vld [vmem:[%s2084_s7 + $0x8] sm:$0xff] }
   0x7   :  { %369 = vmatpush.bf16.msra.mxu3 %v1687_v3  ;;  %v1722_v15 = vld [vmem:[%s2082_s3] ss:$0 sm:$0xff] }
   0x8   :  { %v167_v20 = vld [vmem:[%s2084_s7] sm:$0xff]  ;;  %s1606_s7 = smov 96  }
   0x9   :  { %1382 = vmatmul.msk.bf16.vlgmr.msra.gmra.mxu1 %vm187_vm0, %v170_v6  ;;  %306 = vmatpush.bf16.msra.mxu2 %v1751_v46  ;;  %v1765_v48 = vld [vmem:[%s2085_s4] sm:$0xff] }
   0xa   :  { %137 = vmatpush.bf16.msra.mxu0 %v1453_v5  ;;  %431 = vmatpush.bf16.msrb.mxu1 %v1742_v42  ;;  %v1788_v59 = vld [vmem:[%s2086_s5] ss:$0 sm:$0xff] }
   0xb   :  { %490 = vmatpush.bf16.msrb.mxu3 %v1678_v1 }
   0xd   :  { %307 = vmatpush.bf16.msra.mxu2 %v1757_v47 }
   0xe   :  { %138 = vmatpush.bf16.msra.mxu0 %v1452_v7  ;;  %432 = vmatpush.bf16.msrb.mxu1 %v1751_v46 }
   0xf   :  { %491 = vmatpush.bf16.msrb.mxu3 %v1687_v3 }
  0x11   :  { %308 = vmatpush.bf16.msra.mxu2 %v1765_v48 }
  0x12   :  { %139 = vmatpush.bf16.msra.mxu0 %v1451_v8  ;;  %433 = vmatpush.bf16.msrb.mxu1 %v1757_v47 }
  0x15   :  { %553 = vmatpush.bf16.msrb.mxu2 %v1742_v42 }
  0x16   :  { %140 = vmatpush.bf16.msra.mxu0 %v1450_v9  ;;  %434 = vmatpush.bf16.msrb.mxu1 %v1765_v48 }
  0x19   :  { %554 = vmatpush.bf16.msrb.mxu2 %v1751_v46 }
  0x1a   :  { %141 = vmatpush.bf16.msra.mxu0 %v1449_v10  ;;  %612 = vmatpush.bf16.msra.mxu1 %v1678_v1 }
  0x1d   :  { %555 = vmatpush.bf16.msrb.mxu2 %v1757_v47 }
  0x1e   :  { %142 = vmatpush.bf16.msra.mxu0 %v1448_v11  ;;  %613 = vmatpush.bf16.msra.mxu1 %v1687_v3 }
  0x21   :  { %143 = vmatmul.bf16.vlgmr.msra.gmra.mxu0 %v1444_v12  ;;  %556 = vmatpush.bf16.msrb.mxu2 %v1765_v48 }
  0x86   :  { %v200_v13 = vpop.f32.mrf.mxu1 }
  0x8e   :  { %v202_v14 = vpop.f32.mrf.mxu1 }
  0x9e   :  { %v144_v16 = vpop.f32.mrf.mxu0 }
  0x9f   :  { %v204_v17 = vadd.f32 %v200_v13, %v144_v16 }
  0xa1   :  { %v209_v18 = vadd.f32 %v1722_v15, %v204_v17 }
  0xa3   :  { %1474 = vtanh.f32 %v209_v18  ;;  %v1383_v21 = vmul.f32 -1.442695, %v209_v18 }
  0xa5   :  { %1476 = vpow2.f32 %v1383_v21 }
  0xa6   :  { %v146_v54 = vpop.f32.mrf.mxu0 }
  0xa9   :  { %v1475_v19 = vpop.eup %1474 }
  0xaa   :  { %236 = vrot.lane.b32.xlu0 %v1475_v19, %s1604_s1 }
  0xab   :  { %v1477_v22 = vpop.eup %1476 }
  0xac   :  { %v213_v23 = vadd.f32 1.0, %v1477_v22 }
  0xae   :  { %1478 = vrcp.f32 %v213_v23  ;;  %v225_v29 = vand.u32 2147483648, %v213_v23  ;;  %vm219_vm2 = vweird.f32 %v213_v23  ;;  %v223_v30 = vand.u32 2147483647, %v213_v23 }
  0xb0   :  { %v226_v32 = vor.u32 1.1754944e-38, %v225_v29  ;;  %vm224_vm4 = vcmp.eq.f32.partialorder %v223_v30, 8.507059e+37 }
  0xb2   :  { %231 = vrot.lane.b32.xlu0 %v167_v20, %s1604_s1 }
  0xb4   :  { %v1479_v24 = vpop.eup %1478 }
  0xb5   :  { %v215_v25 = vmul.f32 %v1479_v24, %v213_v23  ;;  %vm220_vm1 = vweird.f32 %v1479_v24 }
  0xb6   :  { %vm221_vm3 = vmor %vm219_vm2, %vm220_vm1 }
  0xb7   :  { %v216_v26 = vsub.f32 1.0, %v215_v25 }
  0xb9   :  { %v217_v27 = vmul.f32 %v1479_v24, %v216_v26 }
  0xba   :  { %256 = vrot.lane.b32.xlu0 %v1372_v36, %s1604_s1 }
  0xbb   :  { %v218_v28 = vadd.f32 %v1479_v24, %v217_v27 }
  0xbd   :  { %v222_v31 = vsel %vm221_vm3, %v1479_v24, %v218_v28 }
  0xbe   :  { %v227_v34 = vsel %vm224_vm4, %v226_v32, %v222_v31 }
 0x11c   :  { %v237_v33 = vpop.permute.xlu0 %236 }
 0x11d   :  { %v239_v35 = vmul.f32 %v237_v33, %v227_v34 }
 0x11f   :  { %241 = vrot.lane.b32.xlu1 %v239_v35, %s1604_s1 }
 0x124   :  { %v232_v37 = vpop.permute.xlu0 %231 }
 0x125   :  { %v234_v38 = vmul.f32 %v232_v37, %v227_v34 }
 0x12c   :  { %v257_v50 = vpop.permute.xlu0 %256 }
 0x191   :  { %v242_v39 = vpop.permute.xlu1 %241 }
 0x192   :  { %v1735_v40 = vadd.f32 %v242_v39, %v234_v38 }
 0x194   :  { %1480 = vtanh.f32 %v1735_v40 }
 0x19a   :  { %v1481_v41 = vpop.eup %1480 }
 0x19b   :  { %247 = vrot.lane.b32.xlu1 %v1481_v41, %s1604_s1 }
 0x20d   :  { %v248_v43 = vpop.permute.xlu1 %247 }
 0x20e   :  { %v250_v44 = vmul.f32 %v248_v43, %v227_v34 }
 0x210   :  { %v355_v45 = vpack.c.bf16 %v250_v44, %v250_v44 }
 0x212   :  { %357 = vrot.lane.b32.xlu2 %v355_v45, %s1605_s6 }
 0x21a   :  { %252 = vrot.lane.b32.xlu2 %v250_v44, %s1605_s6 }
 0x26c   :  { %v358_v49 = vpop.permute.xlu2 %357 }
 0x26d   :  { %1402 = vmatmul.msk.bf16.vlgmr.msra.gmra.mxu3 %vm187_vm0, %v358_v49 }
 0x26e   :  { %675 = vmatpush.bf16.msra.mxu3 %v1742_v42 }
 0x272   :  { %676 = vmatpush.bf16.msra.mxu3 %v1751_v46 }
 0x274   :  { %v253_v51 = vpop.permute.xlu2 %252 }
 0x275   :  { %v259_v52 = vsel %vm187_vm0, %v253_v51, %v257_v50 }
 0x276   :  { %v260_v53 = vpack.c.bf16 %v259_v52, %v259_v52  ;;  %677 = vmatpush.bf16.msra.mxu3 %v1757_v47 }
 0x278   :  { %1400 = vmatmul.msk.bf16.vlgmr.msra.gmra.mxu2 %vm297_vm5, %v260_v53 }
 0x279   :  { %734 = vmatpush.bf16.msra.mxu2 %v1678_v1 }
 0x27a   :  { %678 = vmatpush.bf16.msra.mxu3 %v1765_v48 }
 0x27d   :  { %735 = vmatpush.bf16.msra.mxu2 %v1687_v3 }
 0x2f0   :  { %v371_v55 = vpop.f32.mrf.mxu3 }
 0x2f1   :  { %v375_v56 = vadd.f32 %v371_v55, %v146_v54 }
 0x2f3   :  { %v376_v57 = vadd.f32 %v1722_v15, %v375_v56 }
 0x2f5   :  { %1482 = vtanh.f32 %v376_v57  ;;  %v1403_v7 = vmul.f32 -1.442695, %v376_v57 }
 0x2f8   :  { %v373_v58 = vpop.f32.mrf.mxu3 }
 0x2fb   :  { %v1483_v60 = vpop.eup %1482  ;;  %v310_v61 = vpop.f32.mrf.mxu2 }
 0x2fc   :  { %v311_v62 = vadd.f32 %v1788_v59, %v310_v61  ;;  %399 = vrot.lane.b32.xlu1 %v1483_v60, %s1604_s1 }
 0x2fe   :  { %1484 = vtanh.f32 %v311_v62  ;;  %v1401_v4 = vmul.f32 -1.442695, %v311_v62 }
 0x300   :  { %1486 = vpow2.f32 %v1401_v4 }
 0x303   :  { %v312_v0 = vpop.f32.mrf.mxu2 }
 0x304   :  { %v1485_v2 = vpop.eup %1484  ;;  %335 = vrot.lane.b32.xlu1 %v1373_v63, %s1604_s1 }
 0x305   :  { %340 = vrot.lane.b32.xlu2 %v1485_v2, %s1604_s1 }
 0x306   :  { %v1487_v5 = vpop.eup %1486 }
 0x307   :  { %v317_v6 = vadd.f32 1.0, %v1487_v5 }
 0x309   :  { %1488 = vrcp.f32 %v317_v6  ;;  %v329_v17 = vand.u32 2147483648, %v317_v6  ;;  %vm323_vm7 = vweird.f32 %v317_v6  ;;  %v327_v18 = vand.u32 2147483647, %v317_v6 }
 0x30a   :  { %1490 = vpow2.f32 %v1403_v7 }
 0x30b   :  { %v330_v21 = vor.u32 1.1754944e-38, %v329_v17  ;;  %vm328_vm9 = vcmp.eq.f32.partialorder %v327_v18, 8.507059e+37 }
 0x30f   :  { %v1489_v8 = vpop.eup %1488 }
 0x310   :  { %v1491_v9 = vpop.eup %1490  ;;  %v319_v10 = vmul.f32 %v1489_v8, %v317_v6  ;;  %vm324_vm6 = vweird.f32 %v1489_v8 }
 0x311   :  { %v380_v11 = vadd.f32 1.0, %v1491_v9  ;;  %vm325_vm8 = vmor %vm323_vm7, %vm324_vm6 }
 0x312   :  { %v320_v12 = vsub.f32 1.0, %v319_v10 }
 0x313   :  { %1492 = vrcp.f32 %v380_v11  ;;  %v392_v28 = vand.u32 2147483648, %v380_v11  ;;  %vm386_vm11 = vweird.f32 %v380_v11  ;;  %v390_v29 = vand.u32 2147483647, %v380_v11 }
 0x314   :  { %v321_v13 = vmul.f32 %v1489_v8, %v320_v12 }
 0x315   :  { %v393_v31 = vor.u32 1.1754944e-38, %v392_v28  ;;  %vm391_vm13 = vcmp.eq.f32.partialorder %v390_v29, 8.507059e+37 }
 0x316   :  { %v322_v16 = vadd.f32 %v1489_v8, %v321_v13 }
 0x318   :  { %v326_v20 = vsel %vm325_vm8, %v1489_v8, %v322_v16 }
 0x319   :  { %v1493_v14 = vpop.eup %1492  ;;  %v331_v23 = vsel %vm328_vm9, %v330_v21, %v326_v20 }
 0x31a   :  { %v382_v19 = vmul.f32 %v1493_v14, %v380_v11  ;;  %vm387_vm10 = vweird.f32 %v1493_v14 }
 0x31b   :  { %vm388_vm12 = vmor %vm386_vm11, %vm387_vm10 }
 0x31c   :  { %v383_v24 = vsub.f32 1.0, %v382_v19 }
 0x31e   :  { %v384_v26 = vmul.f32 %v1493_v14, %v383_v24 }
 0x320   :  { %v385_v27 = vadd.f32 %v1493_v14, %v384_v26 }
 0x322   :  { %v389_v30 = vsel %vm388_vm12, %v1493_v14, %v385_v27 }
 0x323   :  { %v394_v33 = vsel %vm391_vm13, %v393_v31, %v389_v30 }
 0x324   :  { %v397_v41 = vmul.f32 %v394_v33, %v1735_v40  ;;  %v1445_v40 = vld [vmem:[%s2083_s0 + $0x8] sm:$0xff] }
 0x325   :  { %148 = vmatmul.bf16.gmra.mxu0 %v1445_v40 }
 0x35f   :  { %v341_v22 = vpop.permute.xlu2 %340 }
 0x360   :  { %v343_v25 = vmul.f32 %v341_v22, %v331_v23 }
 0x362   :  { %345 = vrot.lane.b32.xlu2 %v343_v25, %s1604_s1 }
 0x36e   :  { %v400_v32 = vpop.permute.xlu1 %399 }
 0x36f   :  { %v402_v34 = vmul.f32 %v400_v32, %v394_v33 }
 0x371   :  { %404 = vrot.lane.b32.xlu0 %v402_v34, %s1604_s1 }
 0x376   :  { %v336_v35 = vpop.permute.xlu1 %335 }
 0x377   :  { %v338_v36 = vmul.f32 %v336_v35, %v331_v23 }
 0x3a2   :  { %v149_v60 = vpop.f32.mrf.mxu0 }
 0x3bc   :  { %v346_v37 = vpop.permute.xlu2 %345 }
 0x3bd   :  { %v1799_v38 = vadd.f32 %v346_v37, %v338_v36 }
 0x3bf   :  { %1494 = vtanh.f32 %v1799_v38 }
 0x3c5   :  { %v1495_v39 = vpop.eup %1494 }
 0x3c6   :  { %351 = vrot.lane.b32.xlu1 %v1495_v39, %s1604_s1 }
 0x3e3   :  { %v405_v43 = vpop.permute.xlu0 %404 }
 0x3e4   :  { %v1804_v44 = vadd.f32 %v405_v43, %v397_v41 }
 0x3e6   :  { %1496 = vtanh.f32 %v1804_v44 }
 0x3ec   :  { %v1497_v45 = vpop.eup %1496 }
 0x3ed   :  { %410 = vrot.lane.b32.xlu0 %v1497_v45, %s1604_s1 }
 0x438   :  { %v352_v49 = vpop.permute.xlu1 %351 }
 0x439   :  { %v1808_v50 = vmul.f32 %v352_v49, %v331_v23 }
 0x43b   :  { %419 = vrot.lane.b32.xlu1 %v1808_v50, %s1606_s7 }
 0x45f   :  { %v411_v51 = vpop.permute.xlu0 %410 }
 0x460   :  { %v413_v52 = vmul.f32 %v411_v51, %v394_v33 }
 0x462   :  { %v477_v53 = vpack.c.bf16 %v413_v52, %v413_v52  ;;  %415 = vrot.lane.b32.xlu0 %v413_v52, %s1605_s6 }
 0x464   :  { %479 = vrot.lane.b32.xlu2 %v477_v53, %s1605_s6 }
 0x4ad   :  { %v420_v55 = vpop.permute.xlu1 %419 }
 0x4be   :  { %v480_v54 = vpop.permute.xlu2 %479 }
 0x4bf   :  { %1406 = vmatmul.msk.bf16.vlgmr.msrb.gmra.mxu3 %vm187_vm0, %v480_v54 }
 0x4c0   :  { %856 = vmatpush.bf16.msrb.mxu3 %v1678_v1 }
 0x4c4   :  { %857 = vmatpush.bf16.msrb.mxu3 %v1687_v3 }
 0x4d4   :  { %v416_v56 = vpop.permute.xlu0 %415 }
 0x4d5   :  { %v422_v57 = vsel %vm187_vm0, %v416_v56, %v420_v55 }
 0x4d6   :  { %v423_v58 = vpack.c.bf16 %v422_v57, %v422_v57 }
 0x4d8   :  { %1404 = vmatmul.msk.bf16.vlgmr.msrb.gmra.mxu1 %vm297_vm5, %v423_v58 }
 0x4d9   :  { %797 = vmatpush.bf16.msrb.mxu1 %v1742_v42 }
 0x4dd   :  { %798 = vmatpush.bf16.msrb.mxu1 %v1751_v46 }
 0x4e1   :  { %799 = vmatpush.bf16.msrb.mxu1 %v1757_v47 }
 0x4e5   :  { %800 = vmatpush.bf16.msrb.mxu1 %v1765_v48 }
 0x542   :  { %v493_v61 = vpop.f32.mrf.mxu3 }
 0x543   :  { %v497_v62 = vadd.f32 %v493_v61, %v149_v60 }
 0x545   :  { %v498_v63 = vadd.f32 %v1722_v15, %v497_v62 }
 0x547   :  { %1498 = vtanh.f32 %v498_v63  ;;  %v1407_v8 = vmul.f32 -1.442695, %v498_v63  ;;  %v151_v63 = vpop.f32.mrf.mxu0 }
 0x54a   :  { %v495_v0 = vpop.f32.mrf.mxu3 }
 0x54d   :  { %v1499_v2 = vpop.eup %1498 }
 0x54e   :  { %521 = vrot.lane.b32.xlu2 %v1499_v2, %s1604_s1 }
 0x555   :  { %v436_v4 = vpop.f32.mrf.mxu1 }
 0x556   :  { %v437_v5 = vadd.f32 %v1788_v59, %v436_v4 }
 0x558   :  { %1500 = vtanh.f32 %v437_v5  ;;  %v1405_v19 = vmul.f32 -1.442695, %v437_v5 }
 0x559   :  { %1502 = vpow2.f32 %v1407_v8 }
 0x55d   :  { %v438_v6 = vpop.f32.mrf.mxu1 }
 0x55e   :  { %v1501_v7 = vpop.eup %1500 }
 0x55f   :  { %462 = vrot.lane.b32.xlu0 %v1501_v7, %s1604_s1  ;;  %v1503_v9 = vpop.eup %1502 }
 0x560   :  { %v502_v10 = vadd.f32 1.0, %v1503_v9 }
 0x562   :  { %1504 = vrcp.f32 %v502_v10  ;;  %v514_v17 = vand.u32 2147483648, %v502_v10  ;;  %vm508_vm15 = vweird.f32 %v502_v10  ;;  %v512_v18 = vand.u32 2147483647, %v502_v10 }
 0x563   :  { %1506 = vpow2.f32 %v1405_v19 }
 0x564   :  { %v515_v21 = vor.u32 1.1754944e-38, %v514_v17  ;;  %vm513_vm2 = vcmp.eq.f32.partialorder %v512_v18, 8.507059e+37 }
 0x568   :  { %v1505_v11 = vpop.eup %1504 }
 0x569   :  { %v504_v12 = vmul.f32 %v1505_v11, %v502_v10  ;;  %vm509_vm14 = vweird.f32 %v1505_v11  ;;  %v1507_v25 = vpop.eup %1506 }
 0x56a   :  { %vm510_vm1 = vmor %vm508_vm15, %vm509_vm14  ;;  %v443_v26 = vadd.f32 1.0, %v1507_v25 }
 0x56b   :  { %v505_v13 = vsub.f32 1.0, %v504_v12 }
 0x56c   :  { %1508 = vrcp.f32 %v443_v26  ;;  %v455_v32 = vand.u32 2147483648, %v443_v26  ;;  %vm449_vm4 = vweird.f32 %v443_v26  ;;  %v453_v33 = vand.u32 2147483647, %v443_v26 }
 0x56d   :  { %v506_v14 = vmul.f32 %v1505_v11, %v505_v13 }
 0x56e   :  { %v456_v35 = vor.u32 1.1754944e-38, %v455_v32  ;;  %vm454_vm7 = vcmp.eq.f32.partialorder %v453_v33, 8.507059e+37 }
 0x56f   :  { %v507_v16 = vadd.f32 %v1505_v11, %v506_v14 }
 0x571   :  { %v511_v20 = vsel %vm510_vm1, %v1505_v11, %v507_v16 }
 0x572   :  { %v516_v23 = vsel %vm513_vm2, %v515_v21, %v511_v20  ;;  %v1509_v27 = vpop.eup %1508 }
 0x573   :  { %v445_v28 = vmul.f32 %v1509_v27, %v443_v26  ;;  %vm450_vm3 = vweird.f32 %v1509_v27  ;;  %v519_v41 = vmul.f32 %v516_v23, %v1804_v44 }
 0x574   :  { %vm451_vm6 = vmor %vm449_vm4, %vm450_vm3 }
 0x575   :  { %v446_v29 = vsub.f32 1.0, %v445_v28 }
 0x577   :  { %v447_v30 = vmul.f32 %v1509_v27, %v446_v29 }
 0x579   :  { %v448_v31 = vadd.f32 %v1509_v27, %v447_v30 }
 0x57b   :  { %v452_v34 = vsel %vm451_vm6, %v1509_v27, %v448_v31 }
 0x57c   :  { %v457_v37 = vsel %vm454_vm7, %v456_v35, %v452_v34 }
 0x57d   :  { %v460_v51 = vmul.f32 %v457_v37, %v1799_v38 }
 0x5a8   :  { %v522_v22 = vpop.permute.xlu2 %521 }
 0x5a9   :  { %v524_v24 = vmul.f32 %v522_v22, %v516_v23 }
 0x5ab   :  { %526 = vrot.lane.b32.xlu1 %v524_v24, %s1604_s1 }
 0x5d1   :  { %v463_v36 = vpop.permute.xlu0 %462 }
 0x5d2   :  { %v465_v39 = vmul.f32 %v463_v36, %v457_v37 }
 0x5d4   :  { %467 = vrot.lane.b32.xlu2 %v465_v39, %s1604_s1 }
 0x61d   :  { %v527_v43 = vpop.permute.xlu1 %526 }
 0x61e   :  { %v1833_v45 = vadd.f32 %v527_v43, %v519_v41 }
 0x620   :  { %1510 = vtanh.f32 %v1833_v45 }
 0x626   :  { %v1511_v49 = vpop.eup %1510 }
 0x627   :  { %532 = vrot.lane.b32.xlu0 %v1511_v49, %s1604_s1 }
 0x62e   :  { %v468_v52 = vpop.permute.xlu2 %467 }
 0x62f   :  { %v1838_v53 = vadd.f32 %v468_v52, %v460_v51 }
 0x631   :  { %1512 = vtanh.f32 %v1838_v53 }
 0x637   :  { %v1513_v40 = vpop.eup %1512 }
 0x638   :  { %473 = vrot.lane.b32.xlu1 %v1513_v40, %s1604_s1 }
 0x699   :  { %v533_v54 = vpop.permute.xlu0 %532 }
 0x69a   :  { %v535_v44 = vmul.f32 %v533_v54, %v516_v23 }
 0x69c   :  { %v599_v55 = vpack.c.bf16 %v535_v44, %v535_v44  ;;  %537 = vrot.lane.b32.xlu0 %v535_v44, %s1605_s6 }
 0x69e   :  { %601 = vrot.lane.b32.xlu2 %v599_v55, %s1605_s6 }
 0x6aa   :  { %v474_v56 = vpop.permute.xlu1 %473 }
 0x6ab   :  { %v1844_v57 = vmul.f32 %v474_v56, %v457_v37 }
 0x6ad   :  { %541 = vrot.lane.b32.xlu1 %v1844_v57, %s1606_s7 }
 0x6f8   :  { %v602_v38 = vpop.permute.xlu2 %601 }
 0x6f9   :  { %1410 = vmatmul.msk.bf16.vlgmr.msra.gmra.mxu1 %vm187_vm0, %v602_v38 }
 0x6fa   :  { %978 = vmatpush.bf16.msra.mxu1 %v1678_v1 }
 0x6fe   :  { %979 = vmatpush.bf16.msra.mxu1 %v1687_v3 }
 0x70e   :  { %v538_v58 = vpop.permute.xlu0 %537 }
 0x71f   :  { %v542_v60 = vpop.permute.xlu1 %541 }
 0x720   :  { %v544_v61 = vsel %vm187_vm0, %v538_v58, %v542_v60 }
 0x721   :  { %v545_v62 = vpack.c.bf16 %v544_v61, %v544_v61 }
 0x723   :  { %1408 = vmatmul.msk.bf16.vlgmr.msrb.gmra.mxu2 %vm297_vm5, %v545_v62 }
 0x724   :  { %919 = vmatpush.bf16.msrb.mxu2 %v1742_v42 }
 0x728   :  { %920 = vmatpush.bf16.msrb.mxu2 %v1751_v46 }
 0x72c   :  { %921 = vmatpush.bf16.msrb.mxu2 %v1757_v47 }
 0x730   :  { %922 = vmatpush.bf16.msrb.mxu2 %v1765_v48 }
 0x776   :  { %v615_v0 = vpop.f32.mrf.mxu1 }
 0x777   :  { %v619_v2 = vadd.f32 %v615_v0, %v151_v63 }
 0x779   :  { %v620_v4 = vadd.f32 %v1722_v15, %v619_v2 }
 0x77b   :  { %1514 = vtanh.f32 %v620_v4  ;;  %v1411_v11 = vmul.f32 -1.442695, %v620_v4 }
 0x77e   :  { %v617_v5 = vpop.f32.mrf.mxu1 }
 0x781   :  { %v1515_v6 = vpop.eup %1514 }
 0x782   :  { %643 = vrot.lane.b32.xlu2 %v1515_v6, %s1604_s1 }
 0x7a6   :  { %v558_v7 = vpop.f32.mrf.mxu2 }
 0x7a7   :  { %v559_v8 = vadd.f32 %v1788_v59, %v558_v7 }
 0x7a9   :  { %1516 = vtanh.f32 %v559_v8  ;;  %v1409_v27 = vmul.f32 -1.442695, %v559_v8 }
 0x7aa   :  { %1518 = vpow2.f32 %v1411_v11 }
 0x7ae   :  { %v560_v9 = vpop.f32.mrf.mxu2 }
 0x7af   :  { %v1517_v10 = vpop.eup %1516 }
 0x7b0   :  { %584 = vrot.lane.b32.xlu0 %v1517_v10, %s1604_s1  ;;  %v1519_v12 = vpop.eup %1518 }
 0x7b1   :  { %v624_v13 = vadd.f32 1.0, %v1519_v12 }
 0x7b3   :  { %1520 = vrcp.f32 %v624_v13  ;;  %v636_v20 = vand.u32 2147483648, %v624_v13  ;;  %vm630_vm9 = vweird.f32 %v624_v13  ;;  %v634_v21 = vand.u32 2147483647, %v624_v13 }
 0x7b4   :  { %1522 = vpow2.f32 %v1409_v27 }
 0x7b5   :  { %v637_v23 = vor.u32 1.1754944e-38, %v636_v20  ;;  %vm635_vm11 = vcmp.eq.f32.partialorder %v634_v21, 8.507059e+37 }
 0x7b9   :  { %v1521_v14 = vpop.eup %1520 }
 0x7ba   :  { %v626_v16 = vmul.f32 %v1521_v14, %v624_v13  ;;  %vm631_vm8 = vweird.f32 %v1521_v14  ;;  %v1523_v28 = vpop.eup %1522 }
 0x7bb   :  { %vm632_vm10 = vmor %vm630_vm9, %vm631_vm8  ;;  %v565_v29 = vadd.f32 1.0, %v1523_v28 }
 0x7bc   :  { %v627_v17 = vsub.f32 1.0, %v626_v16 }
 0x7bd   :  { %1524 = vrcp.f32 %v565_v29  ;;  %v577_v35 = vand.u32 2147483648, %v565_v29  ;;  %vm571_vm13 = vweird.f32 %v565_v29  ;;  %v575_v36 = vand.u32 2147483647, %v565_v29 }
 0x7be   :  { %v628_v18 = vmul.f32 %v1521_v14, %v627_v17 }
 0x7bf   :  { %v578_v39 = vor.u32 1.1754944e-38, %v577_v35  ;;  %vm576_vm15 = vcmp.eq.f32.partialorder %v575_v36, 8.507059e+37 }
 0x7c0   :  { %v629_v19 = vadd.f32 %v1521_v14, %v628_v18 }
 0x7c2   :  { %v633_v22 = vsel %vm632_vm10, %v1521_v14, %v629_v19 }
 0x7c3   :  { %v638_v25 = vsel %vm635_vm11, %v637_v23, %v633_v22  ;;  %v1525_v30 = vpop.eup %1524 }
 0x7c4   :  { %v567_v31 = vmul.f32 %v1525_v30, %v565_v29  ;;  %vm572_vm12 = vweird.f32 %v1525_v30  ;;  %v641_v51 = vmul.f32 %v638_v25, %v1833_v45 }
 0x7c5   :  { %vm573_vm14 = vmor %vm571_vm13, %vm572_vm12 }
 0x7c6   :  { %v568_v32 = vsub.f32 1.0, %v567_v31 }
 0x7c8   :  { %v569_v33 = vmul.f32 %v1525_v30, %v568_v32 }
 0x7ca   :  { %v570_v34 = vadd.f32 %v1525_v30, %v569_v33 }
 0x7cc   :  { %v574_v37 = vsel %vm573_vm14, %v1525_v30, %v570_v34 }
 0x7cd   :  { %v579_v43 = vsel %vm576_vm15, %v578_v39, %v574_v37 }
 0x7ce   :  { %v582_v44 = vmul.f32 %v579_v43, %v1838_v53  ;;  %v1446_v53 = vld [vmem:[%s2083_s0 + $0x10] sm:$0xff] }
 0x7cf   :  { %153 = vmatmul.bf16.gmra.mxu0 %v1446_v53 }
 0x7dc   :  { %v644_v24 = vpop.permute.xlu2 %643 }
 0x7dd   :  { %v646_v26 = vmul.f32 %v644_v24, %v638_v25 }
 0x7df   :  { %648 = vrot.lane.b32.xlu1 %v646_v26, %s1604_s1 }
 0x822   :  { %v585_v41 = vpop.permute.xlu0 %584 }
 0x823   :  { %v587_v49 = vmul.f32 %v585_v41, %v579_v43 }
 0x825   :  { %589 = vrot.lane.b32.xlu2 %v587_v49, %s1604_s1 }
 0x84c   :  { %v154_v6 = vpop.f32.mrf.mxu0 }
 0x851   :  { %v649_v52 = vpop.permute.xlu1 %648 }
 0x852   :  { %v1864_v40 = vadd.f32 %v649_v52, %v641_v51 }
 0x854   :  { %1526 = vtanh.f32 %v1864_v40 }
 0x85a   :  { %v1527_v54 = vpop.eup %1526 }
 0x85b   :  { %654 = vrot.lane.b32.xlu0 %v1527_v54, %s1604_s1 }
 0x87f   :  { %v590_v55 = vpop.permute.xlu2 %589 }
 0x880   :  { %v1869_v56 = vadd.f32 %v590_v55, %v582_v44 }
 0x882   :  { %1528 = vtanh.f32 %v1869_v56 }
 0x888   :  { %v1529_v38 = vpop.eup %1528 }
 0x889   :  { %595 = vrot.lane.b32.xlu1 %v1529_v38, %s1604_s1 }
 0x8cd   :  { %v655_v58 = vpop.permute.xlu0 %654 }
 0x8ce   :  { %v657_v45 = vmul.f32 %v655_v58, %v638_v25 }
 0x8d0   :  { %v721_v60 = vpack.c.bf16 %v657_v45, %v657_v45  ;;  %659 = vrot.lane.b32.xlu0 %v657_v45, %s1605_s6 }
 0x8d2   :  { %723 = vrot.lane.b32.xlu2 %v721_v60, %s1605_s6 }
 0x8fb   :  { %v596_v61 = vpop.permute.xlu1 %595 }
 0x8fc   :  { %v1875_v62 = vmul.f32 %v596_v61, %v579_v43 }
 0x8fe   :  { %663 = vrot.lane.b32.xlu1 %v1875_v62, %s1606_s7 }
 0x92c   :  { %v724_v63 = vpop.permute.xlu2 %723 }
 0x92d   :  { %1414 = vmatmul.msk.bf16.vlgmr.msra.gmra.mxu2 %vm187_vm0, %v724_v63 }
 0x92e   :  { %1100 = vmatpush.bf16.msra.mxu2 %v1678_v1 }
 0x932   :  { %1101 = vmatpush.bf16.msra.mxu2 %v1687_v3 }
 0x942   :  { %v660_v0 = vpop.permute.xlu0 %659 }
 0x970   :  { %v664_v2 = vpop.permute.xlu1 %663 }
 0x971   :  { %v666_v4 = vsel %vm187_vm0, %v660_v0, %v664_v2 }
 0x972   :  { %v667_v5 = vpack.c.bf16 %v666_v4, %v666_v4 }
 0x974   :  { %1412 = vmatmul.msk.bf16.vlgmr.msra.gmra.mxu3 %vm297_vm5, %v667_v5 }
 0x975   :  { %1041 = vmatpush.bf16.msra.mxu3 %v1742_v42 }
 0x979   :  { %1042 = vmatpush.bf16.msra.mxu3 %v1751_v46 }
 0x97d   :  { %1043 = vmatpush.bf16.msra.mxu3 %v1757_v47 }
 0x981   :  { %1044 = vmatpush.bf16.msra.mxu3 %v1765_v48 }
 0x9b0   :  { %v737_v7 = vpop.f32.mrf.mxu2 }
 0x9b1   :  { %v741_v1 = vadd.f32 %v737_v7, %v154_v6 }
 0x9b3   :  { %v742_v3 = vadd.f32 %v1722_v15, %v741_v1 }
 0x9b5   :  { %1530 = vtanh.f32 %v742_v3  ;;  %v1415_v10 = vmul.f32 -1.442695, %v742_v3  ;;  %v156_v3 = vpop.f32.mrf.mxu0 }
 0x9b7   :  { %1532 = vpow2.f32 %v1415_v10 }
 0x9b8   :  { %v739_v8 = vpop.f32.mrf.mxu2 }
 0x9bb   :  { %v1531_v9 = vpop.eup %1530 }
 0x9bc   :  { %765 = vrot.lane.b32.xlu2 %v1531_v9, %s1604_s1 }
 0x9bd   :  { %v1533_v11 = vpop.eup %1532 }
 0x9be   :  { %v746_v12 = vadd.f32 1.0, %v1533_v11 }
 0x9c0   :  { %1534 = vrcp.f32 %v746_v12  ;;  %v758_v23 = vand.u32 2147483648, %v746_v12  ;;  %vm752_vm2 = vweird.f32 %v746_v12  ;;  %v756_v24 = vand.u32 2147483647, %v746_v12 }
 0x9c2   :  { %v759_v26 = vor.u32 1.1754944e-38, %v758_v23  ;;  %vm757_vm4 = vcmp.eq.f32.partialorder %v756_v24, 8.507059e+37 }
 0x9c6   :  { %v1535_v16 = vpop.eup %1534 }
 0x9c7   :  { %v748_v19 = vmul.f32 %v1535_v16, %v746_v12  ;;  %vm753_vm1 = vweird.f32 %v1535_v16 }
 0x9c8   :  { %vm754_vm3 = vmor %vm752_vm2, %vm753_vm1 }
 0x9c9   :  { %v749_v20 = vsub.f32 1.0, %v748_v19 }
 0x9cb   :  { %v750_v21 = vmul.f32 %v1535_v16, %v749_v20 }
 0x9cd   :  { %v751_v22 = vadd.f32 %v1535_v16, %v750_v21 }
 0x9cf   :  { %v755_v25 = vsel %vm754_vm3, %v1535_v16, %v751_v22 }
 0x9d0   :  { %v760_v28 = vsel %vm757_vm4, %v759_v26, %v755_v25 }
 0x9d1   :  { %v763_v44 = vmul.f32 %v760_v28, %v1864_v40 }
 0x9f7   :  { %v680_v13 = vpop.f32.mrf.mxu3 }
 0x9f8   :  { %v681_v14 = vadd.f32 %v1788_v59, %v680_v13 }
 0x9fa   :  { %1536 = vtanh.f32 %v681_v14  ;;  %v1413_v30 = vmul.f32 -1.442695, %v681_v14 }
 0x9fc   :  { %1538 = vpow2.f32 %v1413_v30 }
 0x9ff   :  { %v682_v17 = vpop.f32.mrf.mxu3 }
 0xa00   :  { %v1537_v18 = vpop.eup %1536 }
 0xa01   :  { %706 = vrot.lane.b32.xlu0 %v1537_v18, %s1604_s1 }
 0xa02   :  { %v1539_v31 = vpop.eup %1538 }
 0xa03   :  { %v687_v32 = vadd.f32 1.0, %v1539_v31 }
 0xa05   :  { %1540 = vrcp.f32 %v687_v32  ;;  %v699_v39 = vand.u32 2147483648, %v687_v32  ;;  %vm693_vm7 = vweird.f32 %v687_v32  ;;  %v697_v41 = vand.u32 2147483647, %v687_v32 }
 0xa07   :  { %v700_v49 = vor.u32 1.1754944e-38, %v699_v39  ;;  %vm698_vm9 = vcmp.eq.f32.partialorder %v697_v41, 8.507059e+37 }
 0xa0b   :  { %v1541_v33 = vpop.eup %1540 }
 0xa0c   :  { %v689_v34 = vmul.f32 %v1541_v33, %v687_v32  ;;  %vm694_vm6 = vweird.f32 %v1541_v33 }
 0xa0d   :  { %vm695_vm8 = vmor %vm693_vm7, %vm694_vm6 }
 0xa0e   :  { %v690_v35 = vsub.f32 1.0, %v689_v34 }
 0xa10   :  { %v691_v36 = vmul.f32 %v1541_v33, %v690_v35 }
 0xa12   :  { %v692_v37 = vadd.f32 %v1541_v33, %v691_v36 }
 0xa14   :  { %v696_v43 = vsel %vm695_vm8, %v1541_v33, %v692_v37 }
 0xa15   :  { %v701_v52 = vsel %vm698_vm9, %v700_v49, %v696_v43 }
 0xa16   :  { %v766_v27 = vpop.permute.xlu2 %765  ;;  %v704_v45 = vmul.f32 %v701_v52, %v1869_v56 }
 0xa17   :  { %v768_v29 = vmul.f32 %v766_v27, %v760_v28 }
 0xa19   :  { %770 = vrot.lane.b32.xlu1 %v768_v29, %s1604_s1 }
 0xa73   :  { %v707_v51 = vpop.permute.xlu0 %706 }
 0xa74   :  { %v709_v54 = vmul.f32 %v707_v51, %v701_v52 }
 0xa76   :  { %711 = vrot.lane.b32.xlu2 %v709_v54, %s1604_s1 }
 0xa8b   :  { %v771_v55 = vpop.permute.xlu1 %770 }
 0xa8c   :  { %v1898_v38 = vadd.f32 %v771_v55, %v763_v44 }
 0xa8e   :  { %1542 = vtanh.f32 %v1898_v38 }
 0xa94   :  { %v1543_v58 = vpop.eup %1542 }
 0xa95   :  { %776 = vrot.lane.b32.xlu0 %v1543_v58, %s1604_s1 }
 0xad0   :  { %v712_v60 = vpop.permute.xlu2 %711 }
 0xad1   :  { %v1903_v61 = vadd.f32 %v712_v60, %v704_v45 }
 0xad3   :  { %1544 = vtanh.f32 %v1903_v61 }
 0xad9   :  { %v1545_v53 = vpop.eup %1544 }
 0xada   :  { %717 = vrot.lane.b32.xlu1 %v1545_v53, %s1604_s1 }
 0xb07   :  { %v777_v63 = vpop.permute.xlu0 %776 }
 0xb08   :  { %v779_v40 = vmul.f32 %v777_v63, %v760_v28 }
 0xb0a   :  { %v843_v0 = vpack.c.bf16 %v779_v40, %v779_v40  ;;  %781 = vrot.lane.b32.xlu0 %v779_v40, %s1605_s6 }
 0xb0c   :  { %845 = vrot.lane.b32.xlu2 %v843_v0, %s1605_s6 }
 0xb4c   :  { %v718_v2 = vpop.permute.xlu1 %717 }
 0xb4d   :  { %v1909_v4 = vmul.f32 %v718_v2, %v701_v52 }
 0xb4f   :  { %785 = vrot.lane.b32.xlu1 %v1909_v4, %s1606_s7 }
 0xb66   :  { %v846_v56 = vpop.permute.xlu2 %845 }
 0xb67   :  { %1418 = vmatmul.msk.bf16.vlgmr.msrb.gmra.mxu3 %vm187_vm0, %v846_v56 }
 0xb7c   :  { %v782_v5 = vpop.permute.xlu0 %781 }
 0xbc1   :  { %v786_v6 = vpop.permute.xlu1 %785 }
 0xbc2   :  { %v788_v7 = vsel %vm187_vm0, %v782_v5, %v786_v6 }
 0xbc3   :  { %v789_v1 = vpack.c.bf16 %v788_v7, %v788_v7 }
 0xbc5   :  { %1416 = vmatmul.msk.bf16.vlgmr.msrb.gmra.mxu1 %vm297_vm5, %v789_v1 }
 0xbc6   :  { %1163 = vmatpush.bf16.msrb.mxu1 %v1742_v42 }
 0xbca   :  { %1164 = vmatpush.bf16.msrb.mxu1 %v1751_v46 }
 0xbce   :  { %1165 = vmatpush.bf16.msrb.mxu1 %v1757_v47 }
 0xbd2   :  { %1166 = vmatpush.bf16.msrb.mxu1 %v1765_v48 }
 0xbea   :  { %v859_v8 = vpop.f32.mrf.mxu3 }
 0xbeb   :  { %v863_v9 = vadd.f32 %v859_v8, %v156_v3 }
 0xbed   :  { %v864_v10 = vadd.f32 %v1722_v15, %v863_v9 }
 0xbef   :  { %1546 = vtanh.f32 %v864_v10  ;;  %v1419_v13 = vmul.f32 -1.442695, %v864_v10  ;;  %v1951_v10 = vld [vmem:[%s2082_s3] ss:$0 sm:$0xff] }
 0xbf1   :  { %1548 = vpow2.f32 %v1419_v13 }
 0xbf2   :  { %v861_v11 = vpop.f32.mrf.mxu3 }
 0xbf5   :  { %v1547_v12 = vpop.eup %1546 }
 0xbf6   :  { %887 = vrot.lane.b32.xlu0 %v1547_v12, %s1604_s1 }
 0xbf7   :  { %v1549_v46 = vpop.eup %1548 }
 0xbf8   :  { %v868_v47 = vadd.f32 1.0, %v1549_v46 }
 0xbfa   :  { %v880_v21 = vand.u32 2147483648, %v868_v47  ;;  %vm874_vm11 = vweird.f32 %v868_v47  ;;  %v878_v22 = vand.u32 2147483647, %v868_v47 }
 0xbfc   :  { %v881_v24 = vor.u32 1.1754944e-38, %v880_v21  ;;  %vm879_vm13 = vcmp.eq.f32.partialorder %v878_v22, 8.507059e+37 }
 0xc42   :  { %v802_v14 = vpop.f32.mrf.mxu1 }
 0xc43   :  { %v803_v42 = vadd.f32 %v1788_v59, %v802_v14 }
 0xc45   :  { %1550 = vtanh.f32 %v803_v42  ;;  %v1417_v28 = vmul.f32 -1.442695, %v803_v42 }
 0xc46   :  { %1552 = vrcp.f32 %v868_v47 }
 0xc47   :  { %1554 = vpow2.f32 %v1417_v28 }
 0xc4a   :  { %v804_v16 = vpop.f32.mrf.mxu1 }
 0xc4b   :  { %v1551_v48 = vpop.eup %1550 }
 0xc4c   :  { %828 = vrot.lane.b32.xlu2 %v1551_v48, %s1604_s1  ;;  %v1553_v17 = vpop.eup %1552 }
 0xc4d   :  { %v870_v15 = vmul.f32 %v1553_v17, %v868_v47  ;;  %vm875_vm10 = vweird.f32 %v1553_v17  ;;  %v1555_v29 = vpop.eup %1554 }
 0xc4e   :  { %vm876_vm12 = vmor %vm874_vm11, %vm875_vm10  ;;  %v809_v30 = vadd.f32 1.0, %v1555_v29 }
 0xc4f   :  { %v871_v18 = vsub.f32 1.0, %v870_v15 }
 0xc50   :  { %1556 = vrcp.f32 %v809_v30  ;;  %v821_v36 = vand.u32 2147483648, %v809_v30  ;;  %vm815_vm15 = vweird.f32 %v809_v30  ;;  %v819_v37 = vand.u32 2147483647, %v809_v30 }
 0xc51   :  { %v872_v19 = vmul.f32 %v1553_v17, %v871_v18 }
 0xc52   :  { %v822_v41 = vor.u32 1.1754944e-38, %v821_v36  ;;  %vm820_vm2 = vcmp.eq.f32.partialorder %v819_v37, 8.507059e+37 }
 0xc53   :  { %v873_v20 = vadd.f32 %v1553_v17, %v872_v19 }
 0xc55   :  { %v877_v23 = vsel %vm876_vm12, %v1553_v17, %v873_v20 }
 0xc56   :  { %v882_v26 = vsel %vm879_vm13, %v881_v24, %v877_v23  ;;  %v1557_v31 = vpop.eup %1556 }
 0xc57   :  { %v811_v32 = vmul.f32 %v1557_v31, %v809_v30  ;;  %vm816_vm14 = vweird.f32 %v1557_v31  ;;  %v885_v52 = vmul.f32 %v882_v26, %v1898_v38 }
 0xc58   :  { %vm817_vm1 = vmor %vm815_vm15, %vm816_vm14 }
 0xc59   :  { %v812_v33 = vsub.f32 1.0, %v811_v32 }
 0xc5b   :  { %v813_v34 = vmul.f32 %v1557_v31, %v812_v33 }
 0xc5d   :  { %v814_v35 = vadd.f32 %v1557_v31, %v813_v34 }
 0xc5f   :  { %v818_v39 = vsel %vm817_vm1, %v1557_v31, %v814_v35 }
 0xc60   :  { %v823_v43 = vsel %vm820_vm2, %v822_v41, %v818_v39 }
 0xc61   :  { %v826_v58 = vmul.f32 %v823_v43, %v1903_v61  ;;  %v1447_v61 = vld [vmem:[%s2083_s0 + $0x18] sm:$0xff] }
 0xc62   :  { %158 = vmatmul.bf16.gmra.mxu0 %v1447_v61 }
 0xc68   :  { %v888_v25 = vpop.permute.xlu0 %887 }
 0xc69   :  { %v890_v27 = vmul.f32 %v888_v25, %v882_v26 }
 0xc6b   :  { %892 = vrot.lane.b32.xlu2 %v890_v27, %s1604_s1 }
 0xca6   :  { %v829_v49 = vpop.permute.xlu2 %828 }
 0xca7   :  { %v831_v51 = vmul.f32 %v829_v49, %v823_v43 }
 0xca9   :  { %833 = vrot.lane.b32.xlu1 %v831_v51, %s1604_s1 }
 0xcc5   :  { %v893_v54 = vpop.permute.xlu2 %892 }
 0xcc6   :  { %v1927_v44 = vadd.f32 %v893_v54, %v885_v52 }
 0xcc8   :  { %1558 = vtanh.f32 %v1927_v44 }
 0xcce   :  { %v1559_v55 = vpop.eup %1558 }
 0xccf   :  { %898 = vrot.lane.b32.xlu1 %v1559_v55, %s1604_s1 }
 0xcdf   :  { %v159_v3 = vpop.f32.mrf.mxu0 }
 0xd1b   :  { %v834_v45 = vpop.permute.xlu1 %833 }
 0xd1c   :  { %v1932_v60 = vadd.f32 %v834_v45, %v826_v58 }
 0xd1e   :  { %1560 = vtanh.f32 %v1932_v60 }
 0xd24   :  { %v1561_v53 = vpop.eup %1560 }
 0xd25   :  { %839 = vrot.lane.b32.xlu0 %v1561_v53, %s1604_s1 }
 0xd41   :  { %v899_v63 = vpop.permute.xlu1 %898 }
 0xd42   :  { %v901_v38 = vmul.f32 %v899_v63, %v882_v26 }
 0xd44   :  { %v965_v40 = vpack.c.bf16 %v901_v38, %v901_v38  ;;  %903 = vrot.lane.b32.xlu2 %v901_v38, %s1605_s6 }
 0xd46   :  { %967 = vrot.lane.b32.xlu1 %v965_v40, %s1605_s6 }
 0xd97   :  { %v840_v0 = vpop.permute.xlu0 %839 }
 0xd98   :  { %v1938_v2 = vmul.f32 %v840_v0, %v823_v43 }
 0xd9a   :  { %907 = vrot.lane.b32.xlu0 %v1938_v2, %s1606_s7 }
 0xd9e   :  { %v904_v5 = vpop.permute.xlu2 %903 }
 0xdb8   :  { %v968_v56 = vpop.permute.xlu1 %967 }
 0xdb9   :  { %1422 = vmatmul.msk.bf16.vlgmr.msra.gmra.mxu1 %vm187_vm0, %v968_v56 }
 0xe0c   :  { %v908_v6 = vpop.permute.xlu0 %907 }
 0xe0d   :  { %v910_v7 = vsel %vm187_vm0, %v904_v5, %v908_v6 }
 0xe0e   :  { %v911_v1 = vpack.c.bf16 %v910_v7, %v910_v7 }
 0xe10   :  { %1420 = vmatmul.msk.bf16.vlgmr.msrb.gmra.mxu2 %vm297_vm5, %v911_v1 }
 0xe36   :  { %v981_v8 = vpop.f32.mrf.mxu1 }
 0xe37   :  { %v985_v9 = vadd.f32 %v981_v8, %v159_v3  ;;  %v161_v3 = vpop.f32.mrf.mxu0 }
 0xe39   :  { %v986_v11 = vadd.f32 %v1951_v10, %v985_v9 }
 0xe3b   :  { %1562 = vtanh.f32 %v986_v11  ;;  %v1423_v14 = vmul.f32 -1.442695, %v986_v11 }
 0xe3d   :  { %1564 = vpow2.f32 %v1423_v14 }
 0xe3e   :  { %v983_v12 = vpop.f32.mrf.mxu1 }
 0xe41   :  { %v1563_v13 = vpop.eup %1562 }
 0xe42   :  { %1009 = vrot.lane.b32.xlu2 %v1563_v13, %s1604_s1 }
 0xe43   :  { %v1565_v42 = vpop.eup %1564 }
 0xe44   :  { %v990_v46 = vadd.f32 1.0, %v1565_v42 }
 0xe46   :  { %1566 = vrcp.f32 %v990_v46  ;;  %v1002_v20 = vand.u32 2147483648, %v990_v46  ;;  %vm996_vm4 = vweird.f32 %v990_v46  ;;  %v1000_v21 = vand.u32 2147483647, %v990_v46 }
 0xe48   :  { %v1003_v23 = vor.u32 1.1754944e-38, %v1002_v20  ;;  %vm1001_vm7 = vcmp.eq.f32.partialorder %v1000_v21, 8.507059e+37 }
 0xe4c   :  { %v1567_v47 = vpop.eup %1566 }
 0xe4d   :  { %v992_v16 = vmul.f32 %v1567_v47, %v990_v46  ;;  %vm997_vm3 = vweird.f32 %v1567_v47 }
 0xe4e   :  { %vm998_vm6 = vmor %vm996_vm4, %vm997_vm3 }
 0xe4f   :  { %v993_v48 = vsub.f32 1.0, %v992_v16 }
 0xe51   :  { %v994_v17 = vmul.f32 %v1567_v47, %v993_v48 }
 0xe53   :  { %v995_v19 = vadd.f32 %v1567_v47, %v994_v17 }
 0xe55   :  { %v999_v22 = vsel %vm998_vm6, %v1567_v47, %v995_v19  ;;  %v1983_v47 = vld [vmem:[%s2086_s5] ss:$0 sm:$0xff] }
 0xe56   :  { %v1004_v27 = vsel %vm1001_vm7, %v1003_v23, %v999_v22 }
 0xe57   :  { %v1007_v52 = vmul.f32 %v1004_v27, %v1927_v44 }
 0xe93   :  { %v924_v15 = vpop.f32.mrf.mxu2 }
 0xe94   :  { %v925_v18 = vadd.f32 %v1788_v59, %v924_v15 }
 0xe96   :  { %1568 = vtanh.f32 %v925_v18  ;;  %v1421_v59 = vmul.f32 -1.442695, %v925_v18 }
 0xe98   :  { %1570 = vpow2.f32 %v1421_v59 }
 0xe9b   :  { %v926_v24 = vpop.f32.mrf.mxu2 }
 0xe9c   :  { %v1569_v25 = vpop.eup %1568  ;;  %v1010_v26 = vpop.permute.xlu2 %1009 }
 0xe9d   :  { %v1012_v28 = vmul.f32 %v1010_v26, %v1004_v27  ;;  %950 = vrot.lane.b32.xlu0 %v1569_v25, %s1604_s1 }
 0xe9e   :  { %v1571_v29 = vpop.eup %1570 }
 0xe9f   :  { %1014 = vrot.lane.b32.xlu1 %v1012_v28, %s1604_s1  ;;  %v931_v30 = vadd.f32 1.0, %v1571_v29 }
 0xea1   :  { %1572 = vrcp.f32 %v931_v30  ;;  %v943_v36 = vand.u32 2147483648, %v931_v30  ;;  %vm937_vm9 = vweird.f32 %v931_v30  ;;  %v941_v37 = vand.u32 2147483647, %v931_v30 }
 0xea3   :  { %v944_v41 = vor.u32 1.1754944e-38, %v943_v36  ;;  %vm942_vm11 = vcmp.eq.f32.partialorder %v941_v37, 8.507059e+37 }
 0xea7   :  { %v1573_v31 = vpop.eup %1572 }
 0xea8   :  { %v933_v32 = vmul.f32 %v1573_v31, %v931_v30  ;;  %vm938_vm8 = vweird.f32 %v1573_v31 }
 0xea9   :  { %vm939_vm10 = vmor %vm937_vm9, %vm938_vm8 }
 0xeaa   :  { %v934_v33 = vsub.f32 1.0, %v933_v32 }
 0xeac   :  { %v935_v34 = vmul.f32 %v1573_v31, %v934_v33 }
 0xeae   :  { %v936_v35 = vadd.f32 %v1573_v31, %v935_v34 }
 0xeb0   :  { %v940_v39 = vsel %vm939_vm10, %v1573_v31, %v936_v35 }
 0xeb1   :  { %v945_v49 = vsel %vm942_vm11, %v944_v41, %v940_v39 }
 0xeb2   :  { %v948_v45 = vmul.f32 %v945_v49, %v1932_v60 }
 0xf0f   :  { %v951_v43 = vpop.permute.xlu0 %950 }
 0xf10   :  { %v953_v51 = vmul.f32 %v951_v43, %v945_v49 }
 0xf11   :  { %v1015_v54 = vpop.permute.xlu1 %1014 }
 0xf12   :  { %v1959_v55 = vadd.f32 %v1015_v54, %v1007_v52  ;;  %955 = vrot.lane.b32.xlu2 %v953_v51, %s1604_s1 }
 0xf14   :  { %1574 = vtanh.f32 %v1959_v55 }
 0xf1a   :  { %v1575_v58 = vpop.eup %1574 }
 0xf1b   :  { %1020 = vrot.lane.b32.xlu0 %v1575_v58, %s1604_s1 }
 0xf6c   :  { %v956_v53 = vpop.permute.xlu2 %955 }
 0xf6d   :  { %v1965_v63 = vadd.f32 %v956_v53, %v948_v45 }
 0xf6f   :  { %1576 = vtanh.f32 %v1965_v63 }
 0xf75   :  { %v1577_v38 = vpop.eup %1576 }
 0xf76   :  { %961 = vrot.lane.b32.xlu1 %v1577_v38, %s1604_s1 }
 0xf8d   :  { %v1021_v44 = vpop.permute.xlu0 %1020 }
 0xf8e   :  { %v1023_v40 = vmul.f32 %v1021_v44, %v1004_v27 }
 0xf90   :  { %v1087_v0 = vpack.c.bf16 %v1023_v40, %v1023_v40  ;;  %1025 = vrot.lane.b32.xlu2 %v1023_v40, %s1605_s6 }
 0xf92   :  { %1089 = vrot.lane.b32.xlu1 %v1087_v0, %s1605_s6 }
 0xfe8   :  { %v962_v61 = vpop.permute.xlu1 %961 }
 0xfe9   :  { %v1971_v56 = vmul.f32 %v962_v61, %v945_v49 }
 0xfea   :  { %v1026_v5 = vpop.permute.xlu2 %1025 }
 0xfeb   :  { %1029 = vrot.lane.b32.xlu0 %v1971_v56, %s1606_s7 }
0x1004   :  { %v1090_v60 = vpop.permute.xlu1 %1089 }
0x1005   :  { %1426 = vmatmul.msk.bf16.vlgmr.msra.gmra.mxu2 %vm187_vm0, %v1090_v60 }
0x105d   :  { %v1030_v6 = vpop.permute.xlu0 %1029 }
0x105e   :  { %v1032_v7 = vsel %vm187_vm0, %v1026_v5, %v1030_v6 }
0x105f   :  { %v1033_v1 = vpack.c.bf16 %v1032_v7, %v1032_v7 }
0x1061   :  { %1424 = vmatmul.msk.bf16.vlgmr.msra.gmra.mxu3 %vm297_vm5, %v1033_v1 }
0x1088   :  { %v1103_v8 = vpop.f32.mrf.mxu2 }
0x1089   :  { %v1107_v9 = vadd.f32 %v1103_v8, %v161_v3 }
0x108b   :  { %v1108_v11 = vadd.f32 %v1951_v10, %v1107_v9 }
0x108d   :  { %1578 = vtanh.f32 %v1108_v11  ;;  %v1427_v14 = vmul.f32 -1.442695, %v1108_v11  ;;  %v1229_v11 = vpack.c.bf16 %v1971_v56, %v1938_v2  ;;  %v1462_v2 = vld [vmem:[%s2088_s8] sm:$0xff] }
0x108f   :  { %1580 = vpow2.f32 %v1427_v14 }
0x1090   :  { %v1105_v12 = vpop.f32.mrf.mxu2 }
0x1091   :  { %v1227_v12 = vpack.c.bf16 %v1844_v57, %v1808_v50 }
0x1093   :  { %v1579_v13 = vpop.eup %1578 }
0x1094   :  { %1131 = vrot.lane.b32.xlu0 %v1579_v13, %s1604_s1 }
0x1095   :  { %v1581_v42 = vpop.eup %1580 }
0x1096   :  { %v1112_v48 = vadd.f32 1.0, %v1581_v42 }
0x1098   :  { %v1124_v22 = vand.u32 2147483648, %v1112_v48  ;;  %vm1118_vm13 = vweird.f32 %v1112_v48  ;;  %v1122_v23 = vand.u32 2147483647, %v1112_v48 }
0x109a   :  { %v1125_v25 = vor.u32 1.1754944e-38, %v1124_v22  ;;  %vm1123_vm15 = vcmp.eq.f32.partialorder %v1122_v23, 8.507059e+37  ;;  %v1228_v22 = vpack.c.bf16 %v1909_v4, %v1875_v62  ;;  %v1473_v4 = vld [vmem:[%s2089_s9] ss:$0 sm:$0xff] }
0x10e4   :  { %v1046_v46 = vpop.f32.mrf.mxu3 }
0x10e5   :  { %v1047_v16 = vadd.f32 %v1983_v47, %v1046_v46  ;;  %v1463_v46 = vld [vmem:[%s2088_s8 + $0x8] sm:$0xff] }
0x10e6   :  { %1465 = vmatpush.bf16.msrb.mxu3 %v1463_v46  ;;  %1281 = vmatpush.bf16.msrb.mxu0 %v1463_v46 }
0x10e7   :  { %1582 = vtanh.f32 %v1047_v16  ;;  %v1425_v59 = vmul.f32 -1.442695, %v1047_v16  ;;  %1464 = vmatpush.bf16.msrb.mxu2 %v1463_v46 }
0x10e8   :  { %1584 = vrcp.f32 %v1112_v48 }
0x10e9   :  { %1586 = vpow2.f32 %v1425_v59 }
0x10ea   :  { %1467 = vmatpush.bf16.msrb.mxu3 %v1462_v2  ;;  %1282 = vmatpush.bf16.msrb.mxu0 %v1462_v2 }
0x10eb   :  { %1466 = vmatpush.bf16.msrb.mxu2 %v1462_v2 }
0x10ec   :  { %v1048_v10 = vpop.f32.mrf.mxu3 }
0x10ed   :  { %v1583_v17 = vpop.eup %1582 }
0x10ee   :  { %1072 = vrot.lane.b32.xlu2 %v1583_v17, %s1604_s1  ;;  %v1585_v15 = vpop.eup %1584 }
0x10ef   :  { %v1114_v18 = vmul.f32 %v1585_v15, %v1112_v48  ;;  %vm1119_vm12 = vweird.f32 %v1585_v15  ;;  %v1587_v29 = vpop.eup %1586 }
0x10f0   :  { %vm1120_vm14 = vmor %vm1118_vm13, %vm1119_vm12  ;;  %v1053_v30 = vadd.f32 1.0, %v1587_v29 }
0x10f1   :  { %v1115_v19 = vsub.f32 1.0, %v1114_v18 }
0x10f2   :  { %1588 = vrcp.f32 %v1053_v30  ;;  %v1065_v36 = vand.u32 2147483648, %v1053_v30  ;;  %vm1059_vm2 = vweird.f32 %v1053_v30  ;;  %v1063_v37 = vand.u32 2147483647, %v1053_v30 }
0x10f3   :  { %v1116_v20 = vmul.f32 %v1585_v15, %v1115_v19 }
0x10f4   :  { %v1066_v41 = vor.u32 1.1754944e-38, %v1065_v36  ;;  %vm1064_vm4 = vcmp.eq.f32.partialorder %v1063_v37, 8.507059e+37 }
0x10f5   :  { %v1117_v21 = vadd.f32 %v1585_v15, %v1116_v20 }
0x10f7   :  { %v1121_v24 = vsel %vm1120_vm14, %v1585_v15, %v1117_v21 }
0x10f8   :  { %v1126_v27 = vsel %vm1123_vm15, %v1125_v25, %v1121_v24  ;;  %v1589_v31 = vpop.eup %1588 }
0x10f9   :  { %v1055_v32 = vmul.f32 %v1589_v31, %v1053_v30  ;;  %vm1060_vm1 = vweird.f32 %v1589_v31  ;;  %v1129_v52 = vmul.f32 %v1126_v27, %v1959_v55 }
0x10fa   :  { %vm1061_vm3 = vmor %vm1059_vm2, %vm1060_vm1 }
0x10fb   :  { %v1056_v33 = vsub.f32 1.0, %v1055_v32 }
0x10fd   :  { %v1057_v34 = vmul.f32 %v1589_v31, %v1056_v33 }
0x10ff   :  { %v1058_v35 = vadd.f32 %v1589_v31, %v1057_v34 }
0x1101   :  { %v1062_v39 = vsel %vm1061_vm3, %v1589_v31, %v1058_v35 }
0x1102   :  { %v1067_v49 = vsel %vm1064_vm4, %v1066_v41, %v1062_v39 }
0x1103   :  { %v1070_v53 = vmul.f32 %v1067_v49, %v1965_v63 }
0x1106   :  { %v1132_v26 = vpop.permute.xlu0 %1131 }
0x1107   :  { %v1134_v28 = vmul.f32 %v1132_v26, %v1126_v27 }
0x1109   :  { %1136 = vrot.lane.b32.xlu2 %v1134_v28, %s1604_s1 }
0x1148   :  { %v1073_v43 = vpop.permute.xlu2 %1072 }
0x1149   :  { %v1075_v51 = vmul.f32 %v1073_v43, %v1067_v49 }
0x114b   :  { %1077 = vrot.lane.b32.xlu1 %v1075_v51, %s1604_s1 }
0x1163   :  { %v1137_v54 = vpop.permute.xlu2 %1136 }
0x1164   :  { %v1990_v58 = vadd.f32 %v1137_v54, %v1129_v52 }
0x1166   :  { %1590 = vtanh.f32 %v1990_v58 }
0x116c   :  { %v1591_v45 = vpop.eup %1590 }
0x116d   :  { %1142 = vrot.lane.b32.xlu1 %v1591_v45, %s1604_s1 }
0x11bd   :  { %v1078_v38 = vpop.permute.xlu1 %1077 }
0x11be   :  { %v1995_v44 = vadd.f32 %v1078_v38, %v1070_v53 }
0x11c0   :  { %1592 = vtanh.f32 %v1995_v44 }
0x11c6   :  { %v1593_v40 = vpop.eup %1592 }
0x11c7   :  { %1083 = vrot.lane.b32.xlu0 %v1593_v40, %s1604_s1 }
0x11df   :  { %v1143_v0 = vpop.permute.xlu1 %1142 }
0x11e0   :  { %v1145_v55 = vmul.f32 %v1143_v0, %v1126_v27 }
0x11e2   :  { %1147 = vrot.lane.b32.xlu2 %v1145_v55, %s1605_s6 }
0x1239   :  { %v1084_v61 = vpop.permute.xlu0 %1083 }
0x123a   :  { %v2000_v60 = vmul.f32 %v1084_v61, %v1067_v49 }
0x123c   :  { %1151 = vrot.lane.b32.xlu0 %v2000_v60, %s1606_s7  ;;  %v1148_v5 = vpop.permute.xlu2 %1147 }
0x123d   :  { %1209 = vst.msk [vmem:[%s2087_s11] sm:$0xff] %vm187_vm0, %v1148_v5 }
0x12ae   :  { %v1152_v63 = vpop.permute.xlu0 %1151 }
0x12af   :  { %v1154_v6 = vsel %vm187_vm0, %v1148_v5, %v1152_v63 }
0x12b0   :  { %v1155_v7 = vpack.c.bf16 %v1154_v6, %v1154_v6 }
0x12b2   :  { %1428 = vmatmul.msk.bf16.vlgmr.msrb.gmra.mxu1 %vm297_vm5, %v1155_v7 }
0x132f   :  { %v1168_v1 = vpop.f32.mrf.mxu1 }
0x1330   :  { %v1169_v3 = vadd.f32 %v1983_v47, %v1168_v1 }
0x1332   :  { %1594 = vtanh.f32 %v1169_v3  ;;  %v1429_v13 = vmul.f32 -1.442695, %v1169_v3 }
0x1334   :  { %1596 = vpow2.f32 %v1429_v13 }
0x1337   :  { %v1170_v8 = vpop.f32.mrf.mxu1 }
0x1338   :  { %v1595_v9 = vpop.eup %1594 }
0x1339   :  { %1194 = vrot.lane.b32.xlu1 %v1595_v9, %s1604_s1 }
0x133a   :  { %v1597_v14 = vpop.eup %1596 }
0x133b   :  { %v1175_v42 = vadd.f32 1.0, %v1597_v14 }
0x133d   :  { %1598 = vrcp.f32 %v1175_v42  ;;  %v1187_v48 = vand.u32 2147483648, %v1175_v42  ;;  %vm1181_vm6 = vweird.f32 %v1175_v42  ;;  %v1185_v10 = vand.u32 2147483647, %v1175_v42 }
0x133f   :  { %v1188_v15 = vor.u32 1.1754944e-38, %v1187_v48  ;;  %vm1186_vm8 = vcmp.eq.f32.partialorder %v1185_v10, 8.507059e+37 }
0x1341   :  { %1247 = vrot.lane.b32.xlu1 %v1229_v11, %s1605_s6 }
0x1343   :  { %v1599_v50 = vpop.eup %1598 }
0x1344   :  { %v1177_v57 = vmul.f32 %v1599_v50, %v1175_v42  ;;  %vm1182_vm5 = vweird.f32 %v1599_v50 }
0x1345   :  { %vm1183_vm7 = vmor %vm1181_vm6, %vm1182_vm5 }
0x1346   :  { %v1178_v56 = vsub.f32 1.0, %v1177_v57 }
0x1348   :  { %v1179_v47 = vmul.f32 %v1599_v50, %v1178_v56 }
0x1349   :  { %1243 = vrot.lane.b32.xlu1 %v1227_v12, %s1605_s6 }
0x134a   :  { %v1180_v16 = vadd.f32 %v1599_v50, %v1179_v47 }
0x134c   :  { %v1184_v17 = vsel %vm1183_vm7, %v1599_v50, %v1180_v16 }
0x134d   :  { %v1189_v19 = vsel %vm1186_vm8, %v1188_v15, %v1184_v17 }
0x134e   :  { %v1192_v24 = vmul.f32 %v1189_v19, %v1995_v44 }
0x13ab   :  { %v1195_v18 = vpop.permute.xlu1 %1194 }
0x13ac   :  { %v1197_v20 = vmul.f32 %v1195_v18, %v1189_v19 }
0x13ae   :  { %1199 = vrot.lane.b32.xlu2 %v1197_v20, %s1604_s1 }
0x13b3   :  { %v1248_v21 = vpop.permute.xlu1 %1247 }
0x13b4   :  { %1442 = vmatmul.msk.bf16.vlgmr.msrb.gmra.mxu3 %vm187_vm0, %v1248_v21 }
0x13b6   :  { %1245 = vrot.lane.b32.xlu2 %v1228_v22, %s1605_s6 }
0x13bb   :  { %v1244_v23 = vpop.permute.xlu1 %1243 }
0x13bc   :  { %1440 = vmatmul.msk.bf16.vlgmr.msrb.gmra.mxu0 %vm187_vm0, %v1244_v23 }
0x13be   :  { %1211 = vrot.lane.b32.xlu2 %v1990_v58, %s1606_s7 }
0x1408   :  { %v1200_v25 = vpop.permute.xlu2 %1199 }
0x1409   :  { %v1202_v26 = vadd.f32 %v1200_v25, %v1192_v24 }
0x140b   :  { %1600 = vtanh.f32 %v1202_v26  ;;  %1222 = vrot.lane.b32.xlu1 %v1202_v26, %s1606_s7 }
0x1410   :  { %v1246_v27 = vpop.permute.xlu2 %1245 }
0x1411   :  { %v1601_v28 = vpop.eup %1600  ;;  %1441 = vmatmul.msk.bf16.vlgmr.msrb.gmra.mxu2 %vm187_vm0, %v1246_v27 }
0x1412   :  { %1205 = vrot.lane.b32.xlu0 %v1601_v28, %s1604_s1 }
0x1418   :  { %v1212_v62 = vpop.permute.xlu2 %1211 }
0x1419   :  { %1214 = vst.msk [vmem:[%s2090_s12] sm:$0xff] %vm187_vm0, %v1212_v62 }
0x1437   :  { %v1294_v59 = vpop.f32.mrf.mxu3 }
0x1438   :  { %v1295_v29 = vadd.f32 %v1473_v4, %v1294_v59 }
0x1439   :  { %v1284_v30 = vpop.f32.mrf.mxu0 }
0x143a   :  { %1308 = vst [vmem:[%s2091_s10 + $0x20] sm:$0xff] %v1295_v29  ;;  %v1285_v31 = vadd.f32 %v1473_v4, %v1284_v30 }
0x143c   :  { %1304 = vst [vmem:[%s2091_s10] sm:$0xff] %v1285_v31 }
0x143f   :  { %v1296_v32 = vpop.f32.mrf.mxu3 }
0x1440   :  { %v1297_v33 = vadd.f32 %v1473_v4, %v1296_v32 }
0x1441   :  { %v1286_v34 = vpop.f32.mrf.mxu0 }
0x1442   :  { %1309 = vst [vmem:[%s2091_s10 + $0x28] sm:$0xff] %v1297_v33  ;;  %v1287_v35 = vadd.f32 %v1473_v4, %v1286_v34 }
0x1444   :  { %1305 = vst [vmem:[%s2091_s10 + $0x8] sm:$0xff] %v1287_v35 }
0x147d   :  { %v1223_v36 = vpop.permute.xlu1 %1222 }
0x147e   :  { %1431 = vst.msk [vmem:[%s2090_s12 + $0x8] sm:$0xff] %vm187_vm0, %v1223_v36 }
0x1484   :  { %v1206_v37 = vpop.permute.xlu0 %1205 }
0x1485   :  { %v1208_v39 = vmul.f32 %v1206_v37, %v1189_v19 }
0x1487   :  { %v1230_v41 = vpack.c.bf16 %v1208_v39, %v2000_v60 }
0x1489   :  { %1249 = vrot.lane.b32.xlu0 %v1230_v41, %s1605_s6 }
0x1491   :  { %1216 = vrot.lane.b32.xlu0 %v1208_v39, %s1605_s6 }
0x1494   :  { %v1289_v43 = vpop.f32.mrf.mxu2 }
0x1495   :  { %v1290_v49 = vadd.f32 %v1473_v4, %v1289_v43 }
0x1497   :  { %1306 = vst [vmem:[%s2091_s10 + $0x10] sm:$0xff] %v1290_v49 }
0x149c   :  { %v1291_v51 = vpop.f32.mrf.mxu2 }
0x149d   :  { %v1292_v52 = vadd.f32 %v1473_v4, %v1291_v51 }
0x149f   :  { %1307 = vst [vmem:[%s2091_s10 + $0x18] sm:$0xff] %v1292_v52 }
0x14fb   :  { %v1250_v54 = vpop.permute.xlu0 %1249 }
0x14fc   :  { %1443 = vmatmul.msk.bf16.gmra.mxu3 %vm187_vm0, %v1250_v54 }
0x1503   :  { %v1217_v58 = vpop.permute.xlu0 %1216 }
0x1504   :  { %1430 = vst.msk [vmem:[%s2087_s11 + $0x8] sm:$0xff] %vm187_vm0, %v1217_v58 }
0x157f   :  { %v1299_v45 = vpop.f32.mrf.mxu3 }
0x1580   :  { %v1300_v53 = vadd.f32 %v1473_v4, %v1299_v45 }
0x1582   :  { %1310 = vst [vmem:[%s2091_s10 + $0x30] sm:$0xff] %v1300_v53 }
0x1587   :  { %v1301_v38 = vpop.f32.mrf.mxu3 }
0x1588   :  { %v1302_v44 = vadd.f32 %v1473_v4, %v1301_v38 }
0x158a   :  { %1311 = vst [vmem:[%s2091_s10 + $0x38] sm:$0xff] %v1302_v44 }

// kernel: model_forward.2
= control target key start
LH: loop header
LB: loop body
LE: loop exit
PB: predicated region body
PF: predicated region fallthrough
CT: control target
= control target key end

     0   :  { %s3068_s25 = smov 0   ;;  %s3070_s26 = smov 0   ;;  %s3800_s0 = inlined_call_operand.vmem [shape: bf16[12,16,16], index: 0, kind: input, shape index: {}]   ;;  %s3801_s1 = inlined_call_operand.vmem [shape: bf16[16,16], index: 1, kind: input, shape index: {}]   ;;  %s3802_s2 = inlined_call_operand.vmem [shape: bf16[32,16], index: 2, kind: input, shape index: {}]   ;;  %s3803_s3 = inlined_call_operand.vmem [shape: bf16[48,32], index: 3, kind: input, shape index: {}]   ;;  %s3804_s4 = inlined_call_operand.vmem [shape: bf16[64,32], index: 4, kind: input, shape index: {}]   ;;  %s3805_s5 = inlined_call_operand.vmem [shape: bf16[80,32], index: 5, kind: input, shape index: {}]   ;;  %s3806_s6 = inlined_call_operand.vmem [shape: f32[1,16], index: 6, kind: input, shape index: {}]   ;;  %s3807_s7 = inlined_call_operand.vmem [shape: f32[1,16], index: 7, kind: input, shape index: {}]   ;;  %s3808_s8 = inlined_call_operand.vmem [shape: f32[1,32], index: 8, kind: input, shape index: {}]   ;;  %s3809_s9 = inlined_call_operand.vmem [shape: f32[1,32], index: 9, kind: input, shape index: {}]   ;;  %s3810_s10 = inlined_call_operand.vmem [shape: f32[1,32], index: 10, kind: input, shape index: {}]   ;;  %s3811_s11 = inlined_call_operand.vmem [shape: bf16[2,128,256], index: 11, kind: input, shape index: {}]   ;;  %s3812_s12 = inlined_call_operand.vmem [shape: f32[2,1,256], index: 12, kind: input, shape index: {}]   ;;  %s3813_s13 = inlined_call_operand.vmem [shape: bf16[16,128], index: 13, kind: output, shape index: {}]  }
   0x1   :  { %s3072_s27 = smov 0  }
   0x2 LB: > { %s3085_s29 = sadd.s32 1, %s2991_s27   ;;  %s30_s14 = sadd.s32 1, %s2987_s26  ;;  %s2991_s27 = sphi %s3072_s27, %s3818_s27   ;;  %s2987_s26 = sphi %s3070_s26, %s3817_s26   ;;  %s2983_s25 = sphi %s3068_s25, %s3816_s25  }
   0x3   : > { %s27_s30 = ssub.s32 %s2991_s27, %s3085_s29  ;;  %p37_p1 = scmp.ne.s32.totalorder %s2987_s26, %s2983_s25 }
   0x4   : > { %p28_p0 = scmp.eq.s32.totalorder %s27_s30, 0  ;;  %p38_p2 = scmp.eq.s32.totalorder %s2991_s27, 0 }
   0x5   : > { %p2309_p4 = scmp.ge.s32.totalorder %s2991_s27, 2 }
   0x6   : > { %s3094_s15 = scalar_select %p28_p0, %s2987_s26, %s30_s14  }
   0x7   : > { %p39_p3 = por %p38_p2, %p37_p1  ;;  %377 = sbr.rel (%p2309_p4) target bundleno = 29 (0x1d), region = 64 }
   0xc   : > { %380 = sbr.rel (!%p39_p3) target bundleno = 29 (0x1d), region = 68  ;;  %s382_s16 = sand.u32 (%p39_p3), 1, %s2987_s26  }
   0xd   : > { %s2310_s17 = sshll.u32 (%p39_p3), %s2991_s27, 2  ;;  %s2915_s18 = smul.u32 (%p39_p3), 48, %s382_s16 }
   0xe   : > { %s386_s21 = scalar_lea.vmem (%p39_p3), %s3800_s0, %s2310_s17 }
   0xf   : > { %v403_v0 = vld [vmem:[%s386_s21] sm:$0xf] (%p39_p3)  ;;  %v405_v1 = vld [vmem:[%s386_s21 + $0x8] sm:$0xf] (%p39_p3)  ;;  %v407_v2 = vld [vmem:[%s386_s21 + $0x10] sm:$0xf] (%p39_p3) }
  0x10   : > { %s384_s22 = scalar_lea.vmem (%p39_p3), [#allocation2], %s2915_s18  ;;  %v409_v3 = vld [vmem:[%s386_s21 + $0x18] sm:$0xf] (%p39_p3)  ;;  %v411_v4 = vld [vmem:[%s386_s21 + $0x20] sm:$0xf] (%p39_p3) }
  0x11   : > { %404 = vst [vmem:[%s384_s22] sm:$0xf] %v403_v0  ;;  %v413_v5 = vld [vmem:[%s386_s21 + $0x28] sm:$0xf]  ;;  %v415_v6 = vld [vmem:[%s386_s21 + $0x30] sm:$0xf] }
  0x12   : > { %406 = vst [vmem:[%s384_s22 + $0x4] sm:$0xf] %v405_v1  ;;  %v417_v7 = vld [vmem:[%s386_s21 + $0x38] sm:$0xf]  ;;  %v419_v8 = vld [vmem:[%s386_s21 + $0x40] sm:$0xf] }
  0x13   : > { %408 = vst [vmem:[%s384_s22 + $0x8] sm:$0xf] %v407_v2  ;;  %v421_v9 = vld [vmem:[%s386_s21 + $0x48] sm:$0xf]  ;;  %v423_v10 = vld [vmem:[%s386_s21 + $0x50] sm:$0xf] }
  0x14   : > { %410 = vst [vmem:[%s384_s22 + $0xc] sm:$0xf] %v409_v3  ;;  %v425_v11 = vld [vmem:[%s386_s21 + $0x58] sm:$0xf] }
  0x15   : > { %412 = vst [vmem:[%s384_s22 + $0x10] sm:$0xf] %v411_v4 }
  0x16   : > { %414 = vst [vmem:[%s384_s22 + $0x14] sm:$0xf] %v413_v5 }
  0x17   : > { %416 = vst [vmem:[%s384_s22 + $0x18] sm:$0xf] %v415_v6 }
  0x18   : > { %418 = vst [vmem:[%s384_s22 + $0x1c] sm:$0xf] %v417_v7 }
  0x19   : > { %420 = vst [vmem:[%s384_s22 + $0x20] sm:$0xf] %v419_v8 }
  0x1a   : > { %422 = vst [vmem:[%s384_s22 + $0x24] sm:$0xf] %v421_v9 }
  0x1b   : > { %424 = vst [vmem:[%s384_s22 + $0x28] sm:$0xf] %v423_v10 }
  0x1c   : > { %426 = vst [vmem:[%s384_s22 + $0x2c] sm:$0xf] %v425_v11 }
  0x1d PF: > { %p2311_p5 = scmp.ge.s32.totalorder %s2991_s27, 1  ;;  %p473_p6 = scmp.lt.s32.totalorder %s2991_s27, 3 }
  0x1f   : > { %p474_p7 = pnand %p2311_p5, %p473_p6 }
  0x20   : > { %s480_s23 = sand.u32 (!%p474_p7), 1, %s2983_s25   ;;  %s2993_s14 = smov (!%p474_p7), 32  }
  0x21   : > { %477 = sbr.rel (%p474_p7) target bundleno = 991 (0x3df), region = 109  ;;  %s2994_s25 = smov (!%p474_p7), 16  }
  0x22   : > { %s2916_s24 = smul.u32 (!%p474_p7), 48, %s480_s23  ;;  %s2995_s16 = smov (!%p474_p7), 48  }
  0x23   : > { %s2996_s23 = smov (!%p474_p7), 64   ;;  %s2997_s28 = smov (!%p474_p7), 96  }
  0x24   : > { %s3105_s30 = scalar_lea.vmem (!%p474_p7), [#allocation2], %s2916_s24  ;;  %s3814_s21 = sadd.s32 (!%p474_p7), 4294967295, %s2991_s27  }
  0x25   : > { %p522_p8 = scmp.lt.s32.totalorder (!%p474_p7), %s3814_s21, 1 }
  0x26   : > { %v2884_v12 = vld [vmem:[%s3105_s30 + $0x8] sm:$0xff]   ;;  %v2372_v13 = vld [vmem:[%s3105_s30 + $0x4] sm:$0xf]  ;;  %v2885_v20 = vld [vmem:[%s3105_s30 + $0x10] sm:$0xff]   ;;  %vm577_vm0 = vcmask 130048   ;;  %vm807_vm1 = vcmask 261120  }
  0x27   : > { %v2753_v14 = vunpack.c.l.b16 %v2884_v12  ;;  %v2754_v15 = vunpack.c.h.b16 %v2884_v12  ;;  %v921_v16 = vunpack.c.l.b16 %v2372_v13  ;;  %v2741_v21 = vunpack.c.l.b16 %v2885_v20  ;;  %v2886_v25 = vld [vmem:[%s3105_s30 + $0x18] sm:$0xff]   ;;  %v2883_v29 = vld [vmem:[%s3105_s30 + $0x20] sm:$0xff]   ;;  %v2381_v38 = vld [vmem:[%s3105_s30 + $0x28] sm:$0xf] }
  0x28   : > { %v2758_v23 = vunpack.c.h.b16 %v2885_v20  ;;  %v2761_v26 = vunpack.c.l.b16 %v2886_v25  ;;  %v2762_v27 = vunpack.c.h.b16 %v2886_v25  ;;  %v2749_v31 = vunpack.c.l.b16 %v2883_v29  ;;  %v2347_v33 = vld [vmem:[%s3105_s30 + $0x4] sm:$0xf]  ;;  %v2888_v39 = vld [vmem:[%s3105_s30 + $0x28] sm:$0xff]   ;;  %v880_v3 = vld [vmem:[%s3105_s30] sm:$0xf] }
  0x29   : > { %v3109_v17 = vpack.c.b16 %v2753_v14, %v2753_v14  ;;  %v931_v18 = vpack.c.b16 %v921_v16, %v921_v16  ;;  %v3111_v19 = vpack.c.b16 %v2754_v15, %v2754_v15  ;;  %v3119_v22 = vpack.c.b16 %v2741_v21, %v2741_v21  ;;  %v2409_v44 = vld [vmem:[%s3105_s30 + $0x4] sm:$0xf]  ;;  %v2427_v49 = vld [vmem:[%s3105_s30 + $0xc] sm:$0xf]  ;;  %v882_v20 = vld [vmem:[%s3105_s30 + $0x8] sm:$0xf] }
  0x2a   : > { %v3127_v24 = vpack.c.b16 %v2758_v23, %v2758_v23  ;;  %v3136_v28 = vpack.c.b16 %v2761_v26, %v2761_v26  ;;  %v3139_v30 = vpack.c.b16 %v2762_v27, %v2762_v27  ;;  %v3147_v32 = vpack.c.b16 %v2749_v31, %v2749_v31  ;;  %v2457_v52 = vld [vmem:[%s3105_s30 + $0x4] sm:$0xf]  ;;  %v2473_v55 = vld [vmem:[%s3105_s30 + $0xc] sm:$0xf] }
  0x2b   : > { %991 = vrot.lane.b32.xlu1 %v3109_v17, %s2993_s14  ;;  %941 = vrot.lane.b32.xlu0 %v931_v18, %s2994_s25  ;;  %v2766_v34 = vunpack.c.h.b16 %v2883_v29  ;;  %v686_v35 = vunpack.c.l.b16 %v2347_v33  ;;  %v930_v40 = vunpack.c.l.b16 %v2381_v38  ;;  %v2769_v41 = vunpack.c.l.b16 %v2888_v39  ;;  %v2673_v58 = vld [vmem:[%s3803_s3 + $0x10] sm:$0xff]  ;;  %v2672_v59 = vld [vmem:[%s3803_s3 + $0x8] sm:$0xff] }
  0x2c   : > { %945 = vrot.lane.b32.xlu2 %v3111_v19, %s2994_s25  ;;  %v2770_v45 = vunpack.c.h.b16 %v2888_v39  ;;  %v1221_v46 = vunpack.c.l.b16 %v2409_v44  ;;  %v1311_v50 = vunpack.c.l.b16 %v2427_v49  ;;  %v1577_v53 = vunpack.c.l.b16 %v2457_v52  ;;  %1131 = vmatpush.bf16.msra.mxu2 %v2673_v58  ;;  %v2671_v61 = vld [vmem:[%s3803_s3] sm:$0xff]  ;;  %v2670_v5 = vld [vmem:[%s3802_s2 + $0x8] sm:$0xff]  ;;  %v2676_v44 = vld [vmem:[%s3804_s4 + $0x10] sm:$0xff] }
  0x2d   : > { %v3156_v36 = vpack.c.b16 %v2766_v34, %v2766_v34  ;;  %v697_v37 = vpack.c.b16 %v686_v35, %v686_v35  ;;  %v940_v42 = vpack.c.b16 %v930_v40, %v930_v40  ;;  %v3165_v43 = vpack.c.b16 %v2769_v41, %v2769_v41  ;;  %v881_v6 = vld [vmem:[%s3105_s30 + $0x4] sm:$0xf]  ;;  %832 = vmatpush.bf16.msra.mxu1 %v2670_v5  ;;  %v883_v21 = vld [vmem:[%s3105_s30 + $0xc] sm:$0xf]  ;;  %v885_v38 = vld [vmem:[%s3105_s30 + $0x14] sm:$0xf] }
  0x2e   : > { %v3173_v47 = vpack.c.b16 %v2770_v45, %v2770_v45  ;;  %v1230_v48 = vpack.c.b16 %v1221_v46, %v1221_v46  ;;  %v1320_v51 = vpack.c.b16 %v1311_v50, %v1311_v50  ;;  %v1585_v54 = vpack.c.b16 %v1577_v53, %v1577_v53  ;;  %v2669_v12 = vld [vmem:[%s3802_s2] sm:$0xff]  ;;  %v2675_v52 = vld [vmem:[%s3804_s4 + $0x8] sm:$0xff] }
  0x2f   : > { %v1657_v56 = vunpack.c.l.b16 %v2473_v55  ;;  %vm1110_vm2 = vcmask 392192   ;;  %v653_v46 = vld [vmem:[%s3105_s30 + $0x4] sm:$0xf]  ;;  %v887_v5 = vld [vmem:[%s3105_s30 + $0x1c] sm:$0xf]  ;;  %vm1465_vm3 = vcmask 523264  }
  0x30   : > { %1132 = vmatpush.bf16.msra.mxu2 %v2672_v59  ;;  %vm1861_vm4 = vcmask 654336   ;;  %vm1935_vm5 = vcmask 785408  }
  0x31   : > { %v1665_v57 = vpack.c.b16 %v1657_v56, %v1657_v56  ;;  %833 = vmatpush.bf16.msra.mxu1 %v2669_v12 }
  0x33   : > { %993 = vrot.lane.b32.xlu1 %v3111_v19, %s2993_s14  ;;  %943 = vrot.lane.b32.xlu0 %v3109_v17, %s2994_s25 }
  0x34   : > { %947 = vrot.lane.b32.xlu2 %v3119_v22, %s2994_s25  ;;  %1133 = vmatpush.bf16.msra.mxu2 %v2671_v61 }
  0x3b   : > { %997 = vrot.lane.b32.xlu1 %v3127_v24, %s2993_s14  ;;  %995 = vrot.lane.b32.xlu0 %v3119_v22, %s2993_s14 }
  0x3c   : > { %949 = vrot.lane.b32.xlu2 %v3127_v24, %s2994_s25 }
  0x43   : > { %999 = vrot.lane.b32.xlu1 %v3136_v28, %s2993_s14  ;;  %951 = vrot.lane.b32.xlu0 %v3136_v28, %s2994_s25 }
  0x44   : > { %1001 = vrot.lane.b32.xlu2 %v3139_v30, %s2993_s14 }
  0x4b   : > { %955 = vrot.lane.b32.xlu1 %v3147_v32, %s2994_s25  ;;  %953 = vrot.lane.b32.xlu0 %v3139_v30, %s2994_s25 }
  0x4c   : > { %1003 = vrot.lane.b32.xlu2 %v3147_v32, %s2993_s14 }
  0x53   : > { %1005 = vrot.lane.b32.xlu0 %v3156_v36, %s2993_s14  ;;  %708 = vrot.lane.b32.xlu1 %v697_v37, %s2994_s25  ;;  %v2677_v37 = vld [vmem:[%s3804_s4 + $0x18] sm:$0xff] }
  0x54   : > { %710 = vrot.lane.b32.xlu2 %v3109_v17, %s2994_s25  ;;  %1485 = vmatpush.bf16.msra.mxu3 %v2677_v37 }
  0x58   : > { %1486 = vmatpush.bf16.msra.mxu3 %v2676_v44 }
  0x5b   : > { %957 = vrot.lane.b32.xlu0 %v3156_v36, %s2994_s25  ;;  %959 = vrot.lane.b32.xlu1 %v940_v42, %s2994_s25  ;;  %v884_v42 = vld [vmem:[%s3105_s30 + $0x10] sm:$0xf] }
  0x5c   : > { %1007 = vrot.lane.b32.xlu2 %v3165_v43, %s2993_s14  ;;  %1487 = vmatpush.bf16.msra.mxu3 %v2675_v52 }
  0x63   : > { %1009 = vrot.lane.b32.xlu0 %v3173_v47, %s2993_s14  ;;  %1239 = vrot.lane.b32.xlu1 %v1230_v48, %s2994_s25 }
  0x64   : > { %1241 = vrot.lane.b32.xlu2 %v3109_v17, %s2994_s25 }
  0x6b   : > { %1284 = vrot.lane.b32.xlu0 %v3109_v17, %s2993_s14  ;;  %1286 = vrot.lane.b32.xlu1 %v3111_v19, %s2993_s14 }
  0x6c   : > { %1329 = vrot.lane.b32.xlu2 %v1320_v51, %s2995_s16  ;;  %v652_v51 = vld [vmem:[%s3105_s30] sm:$0xf] }
  0x73   : > { %1331 = vrot.lane.b32.xlu0 %v3119_v22, %s2995_s16  ;;  %712 = vrot.lane.b32.xlu1 %v3111_v19, %s2994_s25 }
  0x74   : > { %714 = vrot.lane.b32.xlu2 %v3119_v22, %s2994_s25 }
  0x7b   : > { %1593 = vrot.lane.b32.xlu0 %v1585_v54, %s2994_s25  ;;  %1595 = vrot.lane.b32.xlu1 %v3109_v17, %s2994_s25 }
  0x7c   : > { %1633 = vrot.lane.b32.xlu2 %v3109_v17, %s2993_s14 }
  0x83   : > { %1635 = vrot.lane.b32.xlu0 %v3111_v19, %s2993_s14  ;;  %1673 = vrot.lane.b32.xlu1 %v1665_v57, %s2995_s16 }
  0x84   : > { %1675 = vrot.lane.b32.xlu2 %v3119_v22, %s2995_s16 }
  0x86   : > { %v946_v60 = vpop.permute.xlu2 %945 }
  0x87   : > { %v1019_v23 = vsel %vm577_vm0, %v882_v20, %v946_v60 }
  0x8b   : > { %1713 = vrot.lane.b32.xlu0 %v3119_v22, %s2996_s23  ;;  %1715 = vrot.lane.b32.xlu1 %v3127_v24, %s2996_s23 }
  0x8c   : > { %1243 = vrot.lane.b32.xlu2 %v3111_v19, %s2994_s25 }
  0x8e   : > { %v948_v62 = vpop.permute.xlu2 %947 }
  0x8f   : > { %v1022_v25 = vsel %vm577_vm0, %v883_v21, %v948_v62  ;;  %v2674_v62 = vld [vmem:[%s3804_s4] sm:$0xff] }
  0x90   : > { %1488 = vmatpush.bf16.msra.mxu3 %v2674_v62  ;;  %v2464_v62 = vld [vmem:[%s3105_s30 + $0x20] sm:$0xf] }
  0x93   : > { %1245 = vrot.lane.b32.xlu0 %v3119_v22, %s2994_s25  ;;  %1288 = vrot.lane.b32.xlu1 %v3119_v22, %s2993_s14 }
  0x94   : > { %1290 = vrot.lane.b32.xlu2 %v3127_v24, %s2993_s14 }
  0x96   : > { %v3225_v63 = vpop.permute.xlu2 %949 }
  0x97   : > { %v1025_v48 = vsel %vm577_vm0, %v884_v42, %v3225_v63 }
  0x9b   : > { %1333 = vrot.lane.b32.xlu0 %v3127_v24, %s2995_s16  ;;  %1335 = vrot.lane.b32.xlu1 %v3136_v28, %s2995_s16 }
  0x9c   : > { %716 = vrot.lane.b32.xlu2 %v3127_v24, %s2994_s25 }
  0x9d   : > { %v992_v0 = vpop.permute.xlu1 %991  ;;  %v942_v1 = vpop.permute.xlu0 %941 }
  0x9e   : > { %v3233_v2 = vpop.permute.xlu2 %1001  ;;  %v1013_v4 = vsel %vm577_vm0, %v880_v3, %v942_v1 }
  0x9f   : > { %v1042_v7 = vsel %vm807_vm1, %v1013_v4, %v992_v0  ;;  %v2682_v4 = vld [vmem:[%s3805_s5 + $0x20] sm:$0xff] }
  0xa0   : > { %v1077_v14 = vunpack.c.l.b16 %v1042_v7  ;;  %1877 = vmatpush.bf16.msrb.mxu2 %v2682_v4 }
  0xa3   : > { %718 = vrot.lane.b32.xlu0 %v3136_v28, %s2994_s25  ;;  %1597 = vrot.lane.b32.xlu1 %v3111_v19, %s2994_s25 }
  0xa4   : > { %1599 = vrot.lane.b32.xlu2 %v3119_v22, %s2994_s25 }
  0xa5   : > { %v994_v8 = vpop.permute.xlu1 %993  ;;  %v944_v9 = vpop.permute.xlu0 %943 }
  0xa6   : > { %v1016_v10 = vsel %vm577_vm0, %v881_v6, %v944_v9  ;;  %v3249_v11 = vpop.permute.xlu2 %1003  ;;  %v886_v6 = vld [vmem:[%s3105_s30 + $0x18] sm:$0xf] }
  0xa7   : > { %v1044_v13 = vsel %vm807_vm1, %v1016_v10, %v994_v8 }
  0xa8   : > { %v1078_v15 = vunpack.c.l.b16 %v1044_v13 }
  0xaa   : > { %v1087_v16 = vpack.c.b16 %v1078_v15, %v1077_v14 }
  0xab   : > { %1637 = vrot.lane.b32.xlu0 %v3119_v22, %s2993_s14  ;;  %1639 = vrot.lane.b32.xlu1 %v3127_v24, %s2993_s14 }
  0xac   : > { %2404 = vmatmul.msk.bf16.vlgmr.msra.gmra.mxu2 %vm1110_vm2, %v1087_v16  ;;  %1677 = vrot.lane.b32.xlu2 %v3127_v24, %s2995_s16 }
  0xad   : > { %v998_v17 = vpop.permute.xlu1 %997  ;;  %v996_v18 = vpop.permute.xlu0 %995 }
  0xae   : > { %v711_v19 = vpop.permute.xlu2 %710  ;;  %v1048_v26 = vsel %vm807_vm1, %v1022_v25, %v998_v17  ;;  %v1046_v22 = vsel %vm807_vm1, %v1019_v23, %v996_v18  ;;  %v1175_v18 = vld [vmem:[%s3105_s30] sm:$0xf] }
  0xaf   : > { %v1080_v31 = vunpack.c.l.b16 %v1048_v26  ;;  %v1079_v33 = vunpack.c.l.b16 %v1046_v22  ;;  %v735_v53 = vsel %vm577_vm0, %v653_v46, %v711_v19  ;;  %v2678_v23 = vld [vmem:[%s3805_s5] sm:$0xff]  ;;  %v655_v22 = vld [vmem:[%s3105_s30 + $0xc] sm:$0xf] }
  0xb0   : > { %v779_v60 = vunpack.c.l.b16 %v735_v53  ;;  %v888_v25 = vld [vmem:[%s3105_s30 + $0x20] sm:$0xf]  ;;  %v889_v26 = vld [vmem:[%s3105_s30 + $0x24] sm:$0xf] }
  0xb1   : > { %v1088_v35 = vpack.c.b16 %v1080_v31, %v1079_v33 }
  0xb3   : > { %1679 = vrot.lane.b32.xlu0 %v3136_v28, %s2995_s16  ;;  %1717 = vrot.lane.b32.xlu1 %v3136_v28, %s2996_s23 }
  0xb4   : > { %1719 = vrot.lane.b32.xlu2 %v3139_v30, %s2996_s23 }
  0xb5   : > { %v1000_v27 = vpop.permute.xlu1 %999  ;;  %v952_v29 = vpop.permute.xlu0 %951 }
  0xb6   : > { %v3274_v34 = vpop.permute.xlu2 %1007  ;;  %v1028_v45 = vsel %vm577_vm0, %v885_v38, %v952_v29  ;;  %v1050_v49 = vsel %vm807_vm1, %v1025_v48, %v1000_v27  ;;  %v1176_v29 = vld [vmem:[%s3105_s30 + $0x4] sm:$0xf]  ;;  %v654_v38 = vld [vmem:[%s3105_s30 + $0x8] sm:$0xf] }
  0xb7   : > { %v1052_v50 = vsel %vm807_vm1, %v1028_v45, %v3233_v2  ;;  %v1081_v56 = vunpack.c.l.b16 %v1050_v49 }
  0xb8   : > { %v1082_v57 = vunpack.c.l.b16 %v1052_v50 }
  0xba   : > { %v1089_v0 = vpack.c.b16 %v1082_v57, %v1081_v56 }
  0xbb   : > { %1247 = vrot.lane.b32.xlu0 %v3127_v24, %s2994_s25  ;;  %1249 = vrot.lane.b32.xlu1 %v3136_v28, %s2994_s25 }
  0xbc   : > { %2405 = vmatmul.msk.bf16.gmra.mxu2 %vm1110_vm2, %v1088_v35  ;;  %1292 = vrot.lane.b32.xlu2 %v3136_v28, %s2993_s14 }
  0xbd   : > { %v956_v39 = vpop.permute.xlu1 %955  ;;  %v954_v40 = vpop.permute.xlu0 %953 }
  0xbe   : > { %v3287_v41 = vpop.permute.xlu2 %1241  ;;  %v1034_v7 = vsel %vm577_vm0, %v887_v5, %v956_v39  ;;  %v1031_v8 = vsel %vm577_vm0, %v886_v6, %v954_v40 }
  0xbf   : > { %v1054_v10 = vsel %vm807_vm1, %v1031_v8, %v3249_v11  ;;  %v2679_v11 = vld [vmem:[%s3805_s5 + $0x8] sm:$0xff]  ;;  %v1352_v39 = vsel %vm577_vm0, %v1176_v29, %v3287_v41 }
  0xc0   : > { %v1083_v16 = vunpack.c.l.b16 %v1054_v10 }
  0xc3   : > { %1294 = vrot.lane.b32.xlu0 %v3139_v30, %s2993_s14  ;;  %1337 = vrot.lane.b32.xlu1 %v3139_v30, %s2995_s16 }
  0xc4   : > { %1339 = vrot.lane.b32.xlu2 %v3147_v32, %s2995_s16 }
  0xc5   : > { %v1006_v54 = vpop.permute.xlu0 %1005  ;;  %v709_v55 = vpop.permute.xlu1 %708 }
  0xc6   : > { %v732_v58 = vsel %vm577_vm0, %v652_v51, %v709_v55  ;;  %v3312_v59 = vpop.permute.xlu2 %1329  ;;  %v1056_v9 = vsel %vm807_vm1, %v1034_v7, %v1006_v54 }
  0xc7   : > { %v778_v61 = vunpack.c.l.b16 %v732_v58  ;;  %v1084_v14 = vunpack.c.l.b16 %v1056_v9  ;;  %v2480_v9 = vld [vmem:[%s3105_s30 + $0x28] sm:$0xf] }
  0xc9   : > { %v789_v63 = vpack.c.b16 %v779_v60, %v778_v61  ;;  %v1090_v17 = vpack.c.b16 %v1084_v14, %v1083_v16 }
  0xcb   : > { %720 = vrot.lane.b32.xlu0 %v3139_v30, %s2994_s25  ;;  %722 = vrot.lane.b32.xlu1 %v3147_v32, %s2994_s25 }
  0xcc   : > { %2366 = vmatmul.msk.bf16.vlgmr.msra.gmra.mxu1 %vm807_vm1, %v789_v63  ;;  %2406 = vmatmul.msk.bf16.gmra.mxu2 %vm1110_vm2, %v1089_v0  ;;  %v1584_v63 = vunpack.c.l.b16 %v2464_v62 }
  0xcd   : > { %v958_v1 = vpop.permute.xlu0 %957  ;;  %v960_v2 = vpop.permute.xlu1 %959  ;;  %1601 = vrot.lane.b32.xlu2 %v3127_v24, %s2994_s25  ;;  %v2681_v24 = vld [vmem:[%s3805_s5 + $0x18] sm:$0xff] }
  0xce   : > { %v715_v3 = vpop.permute.xlu2 %714  ;;  %1878 = vmatpush.bf16.msrb.mxu2 %v2681_v24  ;;  %v1037_v33 = vsel %vm577_vm0, %v888_v25, %v958_v1  ;;  %v1040_v35 = vsel %vm577_vm0, %v889_v26, %v960_v2  ;;  %v1528_v2 = vld [vmem:[%s3105_s30] sm:$0xf]  ;;  %v1592_v5 = vpack.c.b16 %v1584_v63, %v1584_v63  ;;  %v2426_v25 = vld [vmem:[%s3105_s30 + $0x28] sm:$0xf] }
  0xcf   : > { %v741_v37 = vsel %vm577_vm0, %v655_v22, %v715_v3  ;;  %v1058_v48 = vsel %vm807_vm1, %v1037_v33, %v3274_v34  ;;  %v1529_v3 = vld [vmem:[%s3105_s30 + $0x4] sm:$0xf]  ;;  %v1177_v26 = vld [vmem:[%s3105_s30 + $0x8] sm:$0xf] }
  0xd0   : > { %v781_v49 = vunpack.c.l.b16 %v741_v37  ;;  %v1085_v56 = vunpack.c.l.b16 %v1058_v48  ;;  %v657_v48 = vld [vmem:[%s3105_s30 + $0x14] sm:$0xf] }
  0xd3   : > { %1603 = vrot.lane.b32.xlu0 %v3136_v28, %s2994_s25  ;;  %1641 = vrot.lane.b32.xlu1 %v3136_v28, %s2993_s14  ;;  %v2680_v28 = vld [vmem:[%s3805_s5 + $0x10] sm:$0xff] }
  0xd4   : > { %1879 = vmatpush.bf16.msrb.mxu2 %v2680_v28  ;;  %v1664_v28 = vunpack.c.l.b16 %v2480_v9 }
  0xd5   : > { %v1010_v12 = vpop.permute.xlu0 %1009  ;;  %v1240_v13 = vpop.permute.xlu1 %1239  ;;  %1643 = vrot.lane.b32.xlu2 %v3139_v30, %s2993_s14 }
  0xd6   : > { %v3344_v15 = vpop.permute.xlu2 %1633  ;;  %v1349_v27 = vsel %vm577_vm0, %v1175_v18, %v1240_v13  ;;  %v1060_v40 = vsel %vm807_vm1, %v1040_v35, %v1010_v12 }
  0xd7   : > { %v1086_v52 = vunpack.c.l.b16 %v1060_v40 }
  0xd8   : > { %1880 = vmatpush.bf16.msrb.mxu2 %v2679_v11 }
  0xd9   : > { %v1091_v34 = vpack.c.b16 %v1086_v52, %v1085_v56 }
  0xdb   : > { %1681 = vrot.lane.b32.xlu0 %v3139_v30, %s2995_s16  ;;  %1683 = vrot.lane.b32.xlu1 %v3147_v32, %s2995_s16 }
  0xdc   : > { %2407 = vmatmul.msk.bf16.gmra.mxu2 %vm1110_vm2, %v1090_v17 }
  0xdd   : > { %v1285_v19 = vpop.permute.xlu0 %1284  ;;  %v1287_v20 = vpop.permute.xlu1 %1286  ;;  %1721 = vrot.lane.b32.xlu2 %v3147_v32, %s2996_s23  ;;  %1881 = vmatpush.bf16.msrb.mxu2 %v2678_v23  ;;  %v1178_v23 = vld [vmem:[%s3105_s30 + $0xc] sm:$0xf] }
  0xde   : > { %v3360_v21 = vpop.permute.xlu2 %1675  ;;  %v1375_v31 = vsel %vm807_vm1, %v1349_v27, %v1285_v19  ;;  %v1377_v44 = vsel %vm807_vm1, %v1352_v39, %v1287_v20  ;;  %v1672_v19 = vpack.c.b16 %v1664_v28, %v1664_v28  ;;  %v1274_v27 = vunpack.c.l.b16 %v2426_v25  ;;  %v658_v25 = vld [vmem:[%s3105_s30 + $0x18] sm:$0xf] }
  0xdf   : > { %v1393_v42 = vsel %vm1110_vm2, %v1375_v31, %v3312_v59 }
  0xe0   : > { %v1427_v53 = vunpack.c.l.b16 %v1393_v42 }
  0xe3   : > { %1723 = vrot.lane.b32.xlu0 %v3156_v36, %s2996_s23  ;;  %1251 = vrot.lane.b32.xlu1 %v3139_v30, %s2994_s25 }
  0xe5   : > { %v1332_v45 = vpop.permute.xlu0 %1331  ;;  %v713_v46 = vpop.permute.xlu1 %712  ;;  %1253 = vrot.lane.b32.xlu2 %v3147_v32, %s2994_s25 }
  0xe6   : > { %v1395_v50 = vsel %vm1110_vm2, %v1377_v44, %v1332_v45  ;;  %v738_v41 = vsel %vm577_vm0, %v654_v38, %v713_v46  ;;  %v3391_v51 = vpop.permute.xlu2 %1243  ;;  %v1283_v44 = vpack.c.b16 %v1274_v27, %v1274_v27  ;;  %v656_v45 = vld [vmem:[%s3105_s30 + $0x10] sm:$0xf] }
  0xe7   : > { %v1428_v54 = vunpack.c.l.b16 %v1395_v50  ;;  %v780_v55 = vunpack.c.l.b16 %v738_v41  ;;  %v1355_v29 = vsel %vm577_vm0, %v1177_v26, %v3391_v51  ;;  %v659_v26 = vld [vmem:[%s3105_s30 + $0x1c] sm:$0xf] }
  0xe9   : > { %v790_v57 = vpack.c.b16 %v781_v49, %v780_v55  ;;  %v1436_v58 = vpack.c.b16 %v1428_v54, %v1427_v53 }
  0xeb   : > { %1296 = vrot.lane.b32.xlu0 %v3147_v32, %s2993_s14  ;;  %1298 = vrot.lane.b32.xlu1 %v3156_v36, %s2993_s14 }
  0xec   : > { %2367 = vmatmul.msk.bf16.gmra.mxu1 %vm807_vm1, %v790_v57  ;;  %2452 = vmatmul.msk.bf16.vlgmr.msra.gmra.mxu3 %vm1465_vm3, %v1436_v58  ;;  %v1530_v57 = vld [vmem:[%s3105_s30 + $0x8] sm:$0xf] }
  0xed   : > { %2408 = vmatmul.msk.bf16.gmra.mxu2 %vm1110_vm2, %v1091_v34  ;;  %v1594_v59 = vpop.permute.xlu0 %1593  ;;  %v1596_v60 = vpop.permute.xlu1 %1595  ;;  %1341 = vrot.lane.b32.xlu2 %v3156_v36, %s2995_s16  ;;  %v1531_v34 = vld [vmem:[%s3105_s30 + $0xc] sm:$0xf] }
  0xee   : > { %v1291_v61 = vpop.permute.xlu2 %1290  ;;  %v1731_v6 = vsel %vm577_vm0, %v1528_v2, %v1594_v59  ;;  %v1734_v7 = vsel %vm577_vm0, %v1529_v3, %v1596_v60 }
  0xef   : > { %v1754_v24 = vsel %vm807_vm1, %v1731_v6, %v3344_v15 }
  0xf3   : > { %1343 = vrot.lane.b32.xlu0 %v3165_v43, %s2995_s16  ;;  %724 = vrot.lane.b32.xlu1 %v3156_v36, %s2994_s25 }
  0xf5   : > { %v1636_v0 = vpop.permute.xlu0 %1635  ;;  %v1674_v1 = vpop.permute.xlu1 %1673  ;;  %726 = vrot.lane.b32.xlu2 %v3165_v43, %s2994_s25 }
  0xf6   : > { %v717_v4 = vpop.permute.xlu2 %716  ;;  %v1756_v8 = vsel %vm807_vm1, %v1734_v7, %v1636_v0  ;;  %v1770_v10 = vsel %vm1110_vm2, %v1754_v24, %v1674_v1  ;;  %v1179_v24 = vld [vmem:[%s3105_s30 + $0x10] sm:$0xf] }
  0xf7   : > { %v1772_v13 = vsel %vm1110_vm2, %v1756_v8, %v3360_v21  ;;  %v744_v49 = vsel %vm577_vm0, %v656_v45, %v717_v4 }
  0xf8   : > { %v782_v52 = vunpack.c.l.b16 %v744_v49 }
  0xfb   : > { %1605 = vrot.lane.b32.xlu0 %v3139_v30, %s2994_s25  ;;  %1607 = vrot.lane.b32.xlu1 %v1592_v5, %s2994_s25 }
  0xfd   : > { %v1714_v12 = vpop.permute.xlu0 %1713  ;;  %v1716_v14 = vpop.permute.xlu1 %1715  ;;  %1645 = vrot.lane.b32.xlu2 %v3147_v32, %s2993_s14 }
  0xfe   : > { %v1786_v16 = vsel %vm1465_vm3, %v1770_v10, %v1714_v12  ;;  %v1788_v30 = vsel %vm1465_vm3, %v1772_v13, %v1716_v14  ;;  %v1600_v17 = vpop.permute.xlu2 %1599  ;;  %v1180_v14 = vld [vmem:[%s3105_s30 + $0x14] sm:$0xf] }
  0xff   : > { %v1819_v15 = vunpack.c.l.b16 %v1786_v16  ;;  %v1820_v11 = vunpack.c.l.b16 %v1788_v30 }
 0x101   : > { %v1827_v18 = vpack.c.b16 %v1820_v11, %v1819_v15 }
 0x103   : > { %1647 = vrot.lane.b32.xlu0 %v3156_v36, %s2993_s14  ;;  %1685 = vrot.lane.b32.xlu1 %v3156_v36, %s2995_s16 }
 0x104   : > { %2509 = vmatmul.msk.bf16.vlgmr.msrb.gmra.mxu2 %vm1861_vm4, %v1827_v18 }
 0x105   : > { %v1246_v32 = vpop.permute.xlu0 %1245  ;;  %v1289_v20 = vpop.permute.xlu1 %1288  ;;  %1687 = vrot.lane.b32.xlu2 %v1672_v19, %s2995_s16 }
 0x106   : > { %v1678_v21 = vpop.permute.xlu2 %1677  ;;  %v1358_v22 = vsel %vm577_vm0, %v1178_v23, %v1246_v32  ;;  %v1379_v31 = vsel %vm807_vm1, %v1355_v29, %v1289_v20 }
 0x107   : > { %v1381_v35 = vsel %vm807_vm1, %v1358_v22, %v1291_v61 }
 0x10b   : > { %1725 = vrot.lane.b32.xlu0 %v3165_v43, %s2996_s23  ;;  %1727 = vrot.lane.b32.xlu1 %v3173_v47, %s2996_s23 }
 0x10d   : > { %v1334_v33 = vpop.permute.xlu0 %1333  ;;  %v1336_v37 = vpop.permute.xlu1 %1335  ;;  %1255 = vrot.lane.b32.xlu2 %v3156_v36, %s2994_s25 }
 0x10e   : > { %v1397_v38 = vsel %vm1110_vm2, %v1379_v31, %v1334_v33  ;;  %v1399_v43 = vsel %vm1110_vm2, %v1381_v35, %v1336_v37  ;;  %v1720_v39 = vpop.permute.xlu2 %1719 }
 0x10f   : > { %v1429_v40 = vunpack.c.l.b16 %v1397_v38  ;;  %v1430_v42 = vunpack.c.l.b16 %v1399_v43  ;;  %v2668_v43 = vld [vmem:[%s3801_s1] sm:$0xff] }
 0x110   : > { %603 = vmatpush.bf16.msra.mxu0 %v2668_v43  ;;  %v662_v43 = vld [vmem:[%s3105_s30 + $0x28] sm:$0xf] }
 0x111   : > { %v1437_v46 = vpack.c.b16 %v1430_v42, %v1429_v40  ;;  %v2662_v40 = vld [vmem:[%s3105_s30] sm:$0xff] }
 0x113   : > { %1300 = vrot.lane.b32.xlu0 %v1283_v44, %s2993_s14  ;;  %2453 = vmatmul.msk.bf16.gmra.mxu3 %vm1465_vm3, %v1437_v46 }
 0x114   : > { %1345 = vrot.lane.b32.xlu1 %v3173_v47, %s2995_s16  ;;  %2341 = vmatmul.msk.bf16.vlgmr.msra.gmra.mxu0 %vm577_vm0, %v2662_v40 }
 0x115   : > { %v719_v36 = vpop.permute.xlu0 %718  ;;  %v1598_v50 = vpop.permute.xlu1 %1597  ;;  %728 = vrot.lane.b32.xlu2 %v3173_v47, %s2994_s25  ;;  %v1740_v47 = vsel %vm577_vm0, %v1531_v34, %v1600_v17 }
 0x116   : > { %v747_v41 = vsel %vm577_vm0, %v657_v48, %v719_v36  ;;  %v1293_v51 = vpop.permute.xlu2 %1292  ;;  %v1737_v59 = vsel %vm577_vm0, %v1530_v57, %v1598_v50  ;;  %v1532_v48 = vld [vmem:[%s3105_s30 + $0x10] sm:$0xf]  ;;  %v1533_v50 = vld [vmem:[%s3105_s30 + $0x14] sm:$0xf] }
 0x117   : > { %v783_v53 = vunpack.c.l.b16 %v747_v41 }
 0x119   : > { %v791_v54 = vpack.c.b16 %v783_v53, %v782_v52 }
 0x11b   : > { %2368 = vmatmul.msk.bf16.gmra.mxu1 %vm807_vm1, %v791_v54 }
 0x11d   : > { %v1638_v55 = vpop.permute.xlu0 %1637  ;;  %v1640_v56 = vpop.permute.xlu1 %1639 }
 0x11e   : > { %v1340_v58 = vpop.permute.xlu2 %1339  ;;  %v1758_v60 = vsel %vm807_vm1, %v1737_v59, %v1638_v55  ;;  %v1760_v61 = vsel %vm807_vm1, %v1740_v47, %v1640_v56 }
 0x11f   : > { %v1774_v63 = vsel %vm1110_vm2, %v1758_v60, %v1678_v21 }
 0x125   : > { %v1680_v62 = vpop.permute.xlu0 %1679  ;;  %v1718_v0 = vpop.permute.xlu1 %1717 }
 0x126   : > { %v1776_v1 = vsel %vm1110_vm2, %v1760_v61, %v1680_v62  ;;  %v1790_v2 = vsel %vm1465_vm3, %v1774_v63, %v1718_v0 }
 0x127   : > { %v1792_v3 = vsel %vm1465_vm3, %v1776_v1, %v1720_v39  ;;  %v1821_v4 = vunpack.c.l.b16 %v1790_v2  ;;  %v1602_v5 = vpop.permute.xlu2 %1601  ;;  %v1181_v2 = vld [vmem:[%s3105_s30 + $0x18] sm:$0xf] }
 0x128   : > { %v1822_v6 = vunpack.c.l.b16 %v1792_v3  ;;  %v1743_v41 = vsel %vm577_vm0, %v1532_v48, %v1602_v5 }
 0x12a   : > { %v1828_v7 = vpack.c.b16 %v1822_v6, %v1821_v4 }
 0x12c   : > { %2510 = vmatmul.msk.bf16.gmra.mxu2 %vm1861_vm4, %v1828_v7 }
 0x12d   : > { %v1248_v8 = vpop.permute.xlu0 %1247  ;;  %v1250_v9 = vpop.permute.xlu1 %1249 }
 0x12e   : > { %v1361_v13 = vsel %vm577_vm0, %v1179_v24, %v1248_v8  ;;  %v1364_v28 = vsel %vm577_vm0, %v1180_v14, %v1250_v9  ;;  %v1182_v8 = vld [vmem:[%s3105_s30 + $0x1c] sm:$0xf]  ;;  %v661_v9 = vld [vmem:[%s3105_s30 + $0x24] sm:$0xf] }
 0x12f   : > { %v3472_v10 = vpop.f32.mrf.mxu2  ;;  %v1644_v12 = vpop.permute.xlu2 %1643  ;;  %v1383_v30 = vsel %vm807_vm1, %v1361_v13, %v1293_v51 }
 0x135   : > { %v1295_v16 = vpop.permute.xlu0 %1294  ;;  %v1338_v17 = vpop.permute.xlu1 %1337 }
 0x136   : > { %v1385_v15 = vsel %vm807_vm1, %v1364_v28, %v1295_v16  ;;  %v1401_v11 = vsel %vm1110_vm2, %v1383_v30, %v1338_v17  ;;  %v2664_v16 = vld [vmem:[%s3105_s30 + $0x10] sm:$0xff] }
 0x137   : > { %v1403_v18 = vsel %vm1110_vm2, %v1385_v15, %v1340_v58  ;;  %v1431_v19 = vunpack.c.l.b16 %v1401_v11  ;;  %v3481_v32 = vpop.f32.mrf.mxu2  ;;  %v1722_v20 = vpop.permute.xlu2 %1721  ;;  %v2663_v58 = vld [vmem:[%s3105_s30 + $0x8] sm:$0xff] }
 0x138   : > { %v1432_v21 = vunpack.c.l.b16 %v1403_v18  ;;  %2342 = vmatmul.msk.bf16.gmra.mxu0 %vm577_vm0, %v2663_v58 }
 0x13a   : > { %v1438_v23 = vpack.c.b16 %v1432_v21, %v1431_v19 }
 0x13c   : > { %2454 = vmatmul.msk.bf16.gmra.mxu3 %vm1465_vm3, %v1438_v23 }
 0x13d   : > { %v721_v22 = vpop.permute.xlu0 %720  ;;  %v723_v27 = vpop.permute.xlu1 %722 }
 0x13e   : > { %v750_v29 = vsel %vm577_vm0, %v658_v25, %v721_v22  ;;  %v753_v31 = vsel %vm577_vm0, %v659_v26, %v723_v27  ;;  %v1160_v22 = vmax.f32 %v3472_v10, %v3481_v32 }
 0x13f   : > { %v784_v33 = vunpack.c.l.b16 %v750_v29  ;;  %v785_v35 = vunpack.c.l.b16 %v753_v31  ;;  %v3488_v37 = vpop.f32.mrf.mxu2  ;;  %v1254_v38 = vpop.permute.xlu2 %1253 }
 0x140   : > { %v1370_v13 = vsel %vm577_vm0, %v1182_v8, %v1254_v38  ;;  %v1161_v31 = vmax.f32 %v1160_v22, %v3488_v37 }
 0x141   : > { %v792_v39 = vpack.c.b16 %v785_v35, %v784_v33 }
 0x143   : > { %2369 = vmatmul.msk.bf16.gmra.mxu1 %vm807_vm1, %v792_v39 }
 0x145   : > { %v1604_v42 = vpop.permute.xlu0 %1603  ;;  %v1642_v44 = vpop.permute.xlu1 %1641 }
 0x146   : > { %v1762_v53 = vsel %vm807_vm1, %v1743_v41, %v1642_v44  ;;  %v1746_v54 = vsel %vm577_vm0, %v1533_v50, %v1604_v42  ;;  %v2665_v44 = vld [vmem:[%s3105_s30 + $0x18] sm:$0xff] }
 0x147   : > { %v3496_v45 = vpop.f32.mrf.mxu2  ;;  %v1342_v46 = vpop.permute.xlu2 %1341  ;;  %v1764_v57 = vsel %vm807_vm1, %v1746_v54, %v1644_v12  ;;  %v660_v12 = vld [vmem:[%s3105_s30 + $0x20] sm:$0xf]  ;;  %v1534_v50 = vld [vmem:[%s3105_s30 + $0x18] sm:$0xf]  ;;  %v1535_v41 = vld [vmem:[%s3105_s30 + $0x1c] sm:$0xf] }
 0x148   : > { %2343 = vmatmul.msk.bf16.gmra.mxu0 %vm577_vm0, %v2664_v16  ;;  %v1162_v33 = vmax.f32 %v1161_v31, %v3496_v45 }
 0x14d   : > { %v1682_v49 = vpop.permute.xlu0 %1681  ;;  %v1684_v36 = vpop.permute.xlu1 %1683 }
 0x14e   : > { %v1778_v55 = vsel %vm1110_vm2, %v1762_v53, %v1682_v49  ;;  %v1780_v34 = vsel %vm1110_vm2, %v1764_v57, %v1684_v36 }
 0x14f   : > { %v1145_v51 = vpop.f32.mrf.mxu2  ;;  %v727_v52 = vpop.permute.xlu2 %726  ;;  %v1794_v56 = vsel %vm1465_vm3, %v1778_v55, %v1722_v20 }
 0x150   : > { %v1823_v61 = vunpack.c.l.b16 %v1794_v56  ;;  %v759_v14 = vsel %vm577_vm0, %v661_v9, %v727_v52  ;;  %v1163_v39 = vmax.f32 %v1162_v33, %v1145_v51  ;;  %v2946_v51 = vld [vmem:[%s3808_s8] ss:$0 sm:$0xff] }
 0x151   : > { %v787_v19 = vunpack.c.l.b16 %v759_v14  ;;  %v2667_v14 = vld [vmem:[%s3105_s30 + $0x28] sm:$0xff] }
 0x155   : > { %v1724_v59 = vpop.permute.xlu0 %1723  ;;  %v1252_v60 = vpop.permute.xlu1 %1251 }
 0x156   : > { %v1796_v47 = vsel %vm1465_vm3, %v1780_v34, %v1724_v59  ;;  %v1367_v7 = vsel %vm577_vm0, %v1181_v2, %v1252_v60 }
 0x157   : > { %v1824_v62 = vunpack.c.l.b16 %v1796_v47  ;;  %v1147_v63 = vpop.f32.mrf.mxu2  ;;  %v3510_v0 = vpop.permute.xlu2 %1645 }
 0x158   : > { %v1164_v32 = vmax.f32 %v1163_v39, %v1147_v63  ;;  %2344 = vmatmul.msk.bf16.gmra.mxu0 %vm577_vm0, %v2665_v44 }
 0x159   : > { %v1829_v1 = vpack.c.b16 %v1824_v62, %v1823_v61 }
 0x15b   : > { %2511 = vmatmul.msk.bf16.gmra.mxu2 %vm1861_vm4, %v1829_v1 }
 0x15d   : > { %v1297_v3 = vpop.permute.xlu0 %1296  ;;  %v1299_v4 = vpop.permute.xlu1 %1298 }
 0x15e   : > { %v1387_v24 = vsel %vm807_vm1, %v1367_v7, %v1297_v3  ;;  %v1389_v30 = vsel %vm807_vm1, %v1370_v13, %v1299_v4  ;;  %v1183_v4 = vld [vmem:[%s3105_s30 + $0x20] sm:$0xf] }
 0x15f   : > { %v1150_v5 = vpop.f32.mrf.mxu2  ;;  %v1688_v6 = vpop.permute.xlu2 %1687  ;;  %v1405_v28 = vsel %vm1110_vm2, %v1387_v24, %v1342_v46 }
 0x160   : > { %v1433_v20 = vunpack.c.l.b16 %v1405_v28  ;;  %v1165_v46 = vmax.f32 %v1164_v32, %v1150_v5  ;;  %v2666_v5 = vld [vmem:[%s3105_s30 + $0x20] sm:$0xff]  ;;  %v835_v28 = vpop.f32.mrf.mxu1 }
 0x165   : > { %v1344_v17 = vpop.permute.xlu0 %1343  ;;  %v725_v15 = vpop.permute.xlu1 %724 }
 0x166   : > { %v1407_v11 = vsel %vm1110_vm2, %v1389_v30, %v1344_v17  ;;  %v756_v18 = vsel %vm577_vm0, %v660_v12, %v725_v15 }
 0x167   : > { %v1434_v21 = vunpack.c.l.b16 %v1407_v11  ;;  %v786_v23 = vunpack.c.l.b16 %v756_v18  ;;  %v1152_v25 = vpop.f32.mrf.mxu2  ;;  %v1256_v26 = vpop.permute.xlu2 %1255 }
 0x168   : > { %v1166_v48 = vmax.f32 %v1165_v46, %v1152_v25  ;;  %2345 = vmatmul.msk.bf16.gmra.mxu0 %vm577_vm0, %v2666_v5  ;;  %v837_v16 = vpop.f32.mrf.mxu1 }
 0x169   : > { %v793_v27 = vpack.c.b16 %v787_v19, %v786_v23  ;;  %v1439_v29 = vpack.c.b16 %v1434_v21, %v1433_v20 }
 0x16b   : > { %2370 = vmatmul.msk.bf16.gmra.mxu1 %vm807_vm1, %v793_v27  ;;  %2455 = vmatmul.msk.bf16.gmra.mxu3 %vm1465_vm3, %v1439_v29  ;;  %v864_v29 = vmax.f32 %v835_v28, %v837_v16  ;;  %v2547_v16 = vld [vmem:[%s3811_s11 + $0x40] sm:$0xf] }
 0x16d   : > { %v1606_v35 = vpop.permute.xlu0 %1605  ;;  %v1608_v38 = vpop.permute.xlu1 %1607 }
 0x16e   : > { %v1749_v54 = vsel %vm577_vm0, %v1534_v50, %v1606_v35  ;;  %v1752_v55 = vsel %vm577_vm0, %v1535_v41, %v1608_v38 }
 0x16f   : > { %v729_v40 = vpop.permute.xlu2 %728  ;;  %v1766_v34 = vsel %vm807_vm1, %v1749_v54, %v3510_v0  ;;  %v1373_v0 = vsel %vm577_vm0, %v1183_v4, %v1256_v26  ;;  %v1490_v11 = vpop.f32.mrf.mxu3  ;;  %v2698_v54 = vld [vmem:[%s3811_s11 + $0x74] sm:$0xf0] }
 0x170   : > { %v1155_v42 = vpop.f32.mrf.mxu2  ;;  %v762_v10 = vsel %vm577_vm0, %v662_v43, %v729_v40  ;;  %v840_v30 = vpop.f32.mrf.mxu1  ;;  %v2694_v4 = vld [vmem:[%s3811_s11 + $0x54] sm:$0xf0] }
 0x171   : > { %v788_v37 = vunpack.c.l.b16 %v762_v10  ;;  %v1167_v45 = vmax.f32 %v1166_v48, %v1155_v42  ;;  %v865_v33 = vmax.f32 %v864_v29, %v840_v30  ;;  %v2692_v30 = vld [vmem:[%s3811_s11 + $0x44] sm:$0xf0]  ;;  %v2949_v29 = vld [vmem:[%s3809_s9] ss:$0 sm:$0xff] }
 0x173   : > { %v794_v52 = vpack.c.b16 %v788_v37, %v788_v37 }
 0x175   : > { %v1648_v49 = vpop.permute.xlu0 %1647  ;;  %v1686_v36 = vpop.permute.xlu1 %1685 }
 0x176   : > { %v1768_v57 = vsel %vm807_vm1, %v1752_v55, %v1648_v49  ;;  %v1782_v59 = vsel %vm1110_vm2, %v1766_v34, %v1686_v36  ;;  %v2947_v49 = vld [vmem:[%s3807_s7] ss:$0 sm:$0xff]  ;;  %v2573_v34 = vld [vmem:[%s3811_s11 + $0x78] sm:$0xf0] }
 0x177   : > { %v1784_v47 = vsel %vm1110_vm2, %v1768_v57, %v1688_v6  ;;  %v1492_v20 = vpop.f32.mrf.mxu3  ;;  %v2563_v55 = vld [vmem:[%s3811_s11 + $0x60] sm:$0xf]  ;;  %v2696_v57 = vld [vmem:[%s3811_s11 + $0x64] sm:$0xf0] }
 0x178   : > { %v1157_v53 = vpop.f32.mrf.mxu2  ;;  %2346 = vmatmul.msk.bf16.gmra.mxu0 %vm577_vm0, %v2667_v14  ;;  %v842_v17 = vpop.f32.mrf.mxu1 }
 0x179   : > { %v1168_v56 = vmax.f32 %v1167_v45, %v1157_v53  ;;  %v866_v35 = vmax.f32 %v865_v33, %v842_v17  ;;  %v2571_v53 = vld [vmem:[%s3811_s11 + $0x70] sm:$0xf] }
 0x17b   : > { %v1173_v58 = vadd.f32 %v2946_v51, %v1168_v56  ;;  %2371 = vmatmul.msk.bf16.gmra.mxu1 %vm807_vm1, %v794_v52  ;;  %v2572_v56 = vor.u32 %v2698_v54, %v2571_v53  ;;  %v2691_v53 = vld [vmem:[%s3811_s11 + $0x44] sm:$0xf]  ;;  %v2549_v54 = vld [vmem:[%s3811_s11 + $0x48] sm:$0xf0] }
 0x17d   : > { %2951 = vtanh.f32 %v1173_v58  ;;  %v1726_v60 = vpop.permute.xlu0 %1725  ;;  %v1728_v61 = vpop.permute.xlu1 %1727  ;;  %v2697_v58 = vld [vmem:[%s3811_s11 + $0x74] sm:$0xf]  ;;  %2040 = vmatpush.bf16.msrb.mxu3 %v2572_v56  ;;  %v2552_v56 = vor.u32 %v2691_v53, %v2549_v54  ;;  %v2711_v53 = vld [vmem:[%s3811_s11 + $0xe4] sm:$0xf]  ;;  %v2647_v54 = vld [vmem:[%s3811_s11 + $0xe8] sm:$0xf0] }
 0x17e   : > { %v1798_v62 = vsel %vm1465_vm3, %v1782_v59, %v1726_v60  ;;  %v1800_v63 = vsel %vm1465_vm3, %v1784_v47, %v1728_v61  ;;  %v1514_v59 = vmax.f32 %v1490_v11, %v1492_v20  ;;  %v2576_v60 = vor.u32 %v2697_v58, %v2573_v34  ;;  %v2523_v58 = vld [vmem:[%s3811_s11 + $0x10] sm:$0xf]  ;;  %v2686_v34 = vld [vmem:[%s3811_s11 + $0x14] sm:$0xf0] }
 0x17f   : > { %v1825_v1 = vunpack.c.l.b16 %v1798_v62  ;;  %v1826_v2 = vunpack.c.l.b16 %v1800_v63  ;;  %v2564_v62 = vor.u32 %v2696_v57, %v2563_v55  ;;  %v2695_v63 = vld [vmem:[%s3811_s11 + $0x64] sm:$0xf] }
 0x180   : > { %2053 = vmatpush.bf16.msrb.mxu0 %v2576_v60  ;;  %v2524_v60 = vor.u32 %v2686_v34, %v2523_v58  ;;  %v2707_v34 = vld [vmem:[%s3811_s11 + $0xc4] sm:$0xf] }
 0x181   : > { %v1830_v3 = vpack.c.b16 %v1826_v2, %v1825_v1  ;;  %v2565_v1 = vld [vmem:[%s3811_s11 + $0x68] sm:$0xf0]  ;;  %2041 = vmatpush.bf16.msrb.mxu3 %v2564_v62 }
 0x182   : > { %v2568_v5 = vor.u32 %v2695_v63, %v2565_v1  ;;  %v2533_v62 = vld [vmem:[%s3811_s11 + $0x28] sm:$0xf0]  ;;  %v2515_v1 = vld [vmem:[%s3811_s11] sm:$0xf] }
 0x183   : > { %v2952_v7 = vpop.eup %2951  ;;  %2512 = vmatmul.msk.bf16.gmra.mxu2 %vm1861_vm4, %v1830_v3  ;;  %v2555_v3 = vld [vmem:[%s3811_s11 + $0x50] sm:$0xf] }
 0x184   : > { %1921 = vrot.lane.b32.xlu1 %v2952_v7, %s2993_s14  ;;  %v2556_v14 = vor.u32 %v2694_v4, %v2555_v3  ;;  %2054 = vmatpush.bf16.msrb.mxu0 %v2568_v5 }
 0x185   : > { %v1301_v8 = vpop.permute.xlu0 %1300 }
 0x186   : > { %v1391_v6 = vsel %vm807_vm1, %v1373_v0, %v1301_v8  ;;  %v1346_v9 = vpop.permute.xlu1 %1345  ;;  %v2693_v0 = vld [vmem:[%s3811_s11 + $0x54] sm:$0xf]  ;;  %v2557_v8 = vld [vmem:[%s3811_s11 + $0x58] sm:$0xf0]  ;;  %2042 = vmatpush.bf16.msrb.mxu3 %v2556_v14 }
 0x187   : > { %v1409_v24 = vsel %vm1110_vm2, %v1391_v6, %v1346_v9  ;;  %v1883_v19 = vpop.f32.mrf.mxu2  ;;  %v2560_v17 = vor.u32 %v2693_v0, %v2557_v8  ;;  %v2525_v0 = vld [vmem:[%s3811_s11 + $0x18] sm:$0xf0] }
 0x188   : > { %v1435_v12 = vunpack.c.l.b16 %v1409_v24 }
 0x189   : > { %2055 = vmatpush.bf16.msrb.mxu0 %v2560_v17 }
 0x18a   : > { %v1440_v13 = vpack.c.b16 %v1435_v12, %v1435_v12 }
 0x18c   : > { %2456 = vmatmul.msk.bf16.gmra.mxu3 %vm1465_vm3, %v1440_v13 }
 0x18d   : > { %2056 = vmatpush.bf16.msrb.mxu0 %v2552_v56  ;;  %v2709_v56 = vld [vmem:[%s3811_s11 + $0xd4] sm:$0xf] }
 0x18f   : > { %v1885_v25 = vpop.f32.mrf.mxu2 }
 0x190   : > { %v1903_v61 = vmax.f32 %v1883_v19, %v1885_v25  ;;  %v2548_v19 = vor.u32 %v2692_v30, %v2547_v16  ;;  %v2517_v16 = vld [vmem:[%s3811_s11 + $0x8] sm:$0xf0] }
 0x191   : > { %v605_v9 = vpop.f32.mrf.mxu0 }
 0x192   : > { %2043 = vmatpush.bf16.msrb.mxu3 %v2548_v19 }
 0x196   : > { %v1495_v23 = vpop.f32.mrf.mxu3 }
 0x197   : > { %v1515_v2 = vmax.f32 %v1514_v59, %v1495_v23  ;;  %v2690_v23 = vld [vmem:[%s3811_s11 + $0x34] sm:$0xf0]  ;;  %v2689_v59 = vld [vmem:[%s3811_s11 + $0x34] sm:$0xf] }
 0x198   : > { %v845_v15 = vpop.f32.mrf.mxu1 }
 0x199   : > { %v867_v39 = vmax.f32 %v866_v35, %v845_v15 }
 0x19e   : > { %v1497_v27 = vpop.f32.mrf.mxu3 }
 0x19f   : > { %v1516_v6 = vmax.f32 %v1515_v2, %v1497_v27  ;;  %v2684_v2 = vld [vmem:[%s3811_s11 + $0x4] sm:$0xf0] }
 0x1a0   : > { %v847_v18 = vpop.f32.mrf.mxu1  ;;  %v2516_v4 = vor.u32 %v2684_v2, %v2515_v1  ;;  %v2605_v1 = vld [vmem:[%s3811_s11 + $0x90] sm:$0xf] }
 0x1a1   : > { %v868_v40 = vmax.f32 %v867_v39, %v847_v18  ;;  %v2531_v39 = vld [vmem:[%s3811_s11 + $0x20] sm:$0xf] }
 0x1af   : > { %v1888_v22 = vpop.f32.mrf.mxu2 }
 0x1b0   : > { %v1904_v7 = vmax.f32 %v1903_v61, %v1888_v22  ;;  %v2687_v61 = vld [vmem:[%s3811_s11 + $0x24] sm:$0xf] }
 0x1b1   : > { %v2536_v5 = vor.u32 %v2687_v61, %v2533_v62  ;;  %v2623_v61 = vld [vmem:[%s3811_s11 + $0xb8] sm:$0xf0]  ;;  %v2613_v62 = vld [vmem:[%s3811_s11 + $0xa0] sm:$0xf] }
 0x1b7   : > { %v1890_v43 = vpop.f32.mrf.mxu2 }
 0x1b8   : > { %v1905_v12 = vmax.f32 %v1904_v7, %v1890_v43  ;;  %v2685_v7 = vld [vmem:[%s3811_s11 + $0x14] sm:$0xf] }
 0x1bf   : > { %v1500_v38 = vpop.f32.mrf.mxu3 }
 0x1c0   : > { %v850_v21 = vpop.f32.mrf.mxu1  ;;  %v1517_v28 = vmax.f32 %v1516_v6, %v1500_v38  ;;  %v607_v38 = vpop.f32.mrf.mxu0 }
 0x1c1   : > { %v869_v10 = vmax.f32 %v868_v40, %v850_v21  ;;  %v2539_v21 = vld [vmem:[%s3811_s11 + $0x30] sm:$0xf]  ;;  %v2688_v40 = vld [vmem:[%s3811_s11 + $0x24] sm:$0xf0] }
 0x1c2   : > { %v2540_v35 = vor.u32 %v2690_v23, %v2539_v21 }
 0x1c4   : > { %2044 = vmatpush.bf16.msrb.mxu3 %v2540_v35  ;;  %v2708_v35 = vld [vmem:[%s3811_s11 + $0xc4] sm:$0xf0] }
 0x1c7   : > { %v1502_v46 = vpop.f32.mrf.mxu3 }
 0x1c8   : > { %v852_v26 = vpop.f32.mrf.mxu1  ;;  %v1518_v11 = vmax.f32 %v1517_v28, %v1502_v46  ;;  %v2683_v28 = vld [vmem:[%s3811_s11 + $0x4] sm:$0xf] }
 0x1c9   : > { %v870_v32 = vmax.f32 %v869_v10, %v852_v26  ;;  %v2948_v26 = vld [vmem:[%s3810_s10] ss:$0 sm:$0xff]  ;;  %v2520_v30 = vor.u32 %v2683_v28, %v2517_v16 }
 0x1de   : > { %v1893_v44 = vpop.f32.mrf.mxu2 }
 0x1df   : > { %v1906_v15 = vmax.f32 %v1905_v12, %v1893_v44 }
 0x1e6   : > { %v1895_v52 = vpop.f32.mrf.mxu2 }
 0x1e7   : > { %v1907_v18 = vmax.f32 %v1906_v15, %v1895_v52  ;;  %v635_v52 = vmax.f32 %v605_v9, %v607_v38  ;;  %v2528_v9 = vor.u32 %v2685_v7, %v2525_v0  ;;  %v2653_v15 = vld [vmem:[%s3811_s11 + $0xf0] sm:$0xf]  ;;  %v2615_v7 = vld [vmem:[%s3811_s11 + $0xa8] sm:$0xf0] }
 0x1e8   : > { %v855_v31 = vpop.f32.mrf.mxu1 }
 0x1e9   : > { %v871_v37 = vmax.f32 %v870_v32, %v855_v31  ;;  %v2532_v32 = vor.u32 %v2688_v40, %v2531_v39  ;;  %v2621_v39 = vld [vmem:[%s3811_s11 + $0xb0] sm:$0xf]  ;;  %v2706_v40 = vld [vmem:[%s3811_s11 + $0xb4] sm:$0xf0] }
 0x1eb   : > { %2045 = vmatpush.bf16.msrb.mxu3 %v2532_v32 }
 0x1ee   : > { %v1505_v45 = vpop.f32.mrf.mxu3 }
 0x1ef   : > { %v1519_v20 = vmax.f32 %v1518_v11, %v1505_v45  ;;  %2046 = vmatpush.bf16.msrb.mxu3 %v2524_v60  ;;  %v2714_v11 = vld [vmem:[%s3811_s11 + $0xf4] sm:$0xf0] }
 0x1f0   : > { %v857_v42 = vpop.f32.mrf.mxu1  ;;  %v2654_v19 = vor.u32 %v2714_v11, %v2653_v15  ;;  %v2599_v15 = vld [vmem:[%s3811_s11 + $0x88] sm:$0xf0] }
 0x1f1   : > { %v872_v48 = vmax.f32 %v871_v37, %v857_v42 }
 0x1f2   : > { %2195 = vmatpush.bf16.msrb.mxu1 %v2654_v19 }
 0x1f3   : > { %2047 = vmatpush.bf16.msrb.mxu3 %v2516_v4  ;;  %v2702_v4 = vld [vmem:[%s3811_s11 + $0x94] sm:$0xf0] }
 0x1f6   : > { %v1507_v13 = vpop.f32.mrf.mxu3 }
 0x1f7   : > { %v1520_v22 = vmax.f32 %v1519_v20, %v1507_v13  ;;  %v2712_v20 = vld [vmem:[%s3811_s11 + $0xe4] sm:$0xf0] }
 0x1f8   : > { %v860_v36 = vpop.f32.mrf.mxu1 }
 0x1f9   : > { %v873_v50 = vmax.f32 %v872_v48, %v860_v36  ;;  %v610_v48 = vpop.f32.mrf.mxu0 }
 0x1fb   : > { %v878_v41 = vadd.f32 %v2947_v49, %v873_v50 }
 0x1fd   : > { %2953 = vtanh.f32 %v878_v41 }
 0x200   : > { %v862_v51 = vpop.f32.mrf.mxu1 }
 0x201   : > { %v612_v49 = vpop.f32.mrf.mxu0  ;;  %v636_v51 = vmax.f32 %v635_v52, %v610_v48  ;;  %v2655_v52 = vld [vmem:[%s3811_s11 + $0xf8] sm:$0xf0] }
 0x203   : > { %v2954_v47 = vpop.eup %2953  ;;  %v637_v57 = vmax.f32 %v636_v51, %v612_v49 }
 0x204   : > { %1917 = vrot.lane.b32.xlu0 %v2954_v47, %s2994_s25  ;;  %v2541_v47 = vld [vmem:[%s3811_s11 + $0x38] sm:$0xf0]  ;;  %s3815_s25 = smov %s3814_s21 }
 0x205   : > { %v2544_v63 = vor.u32 %v2689_v59, %v2541_v47  ;;  %v2631_v59 = vld [vmem:[%s3811_s11 + $0xc8] sm:$0xf0]  ;;  %v2705_v47 = vld [vmem:[%s3811_s11 + $0xb4] sm:$0xf]  ;;  %s3820_s25 = smov (!%p522_p8, %s3815_s25), 1 }
 0x206   : > { %v1898_v24 = vpop.f32.mrf.mxu2  ;;  %v2634_v60 = vor.u32 %v2707_v34, %v2631_v59  ;;  %v2626_v2 = vor.u32 %v2705_v47, %v2623_v61  ;;  %s2312_s22 = sshll.u32 %s3820_s25, 2 }
 0x207   : > { %v1908_v25 = vmax.f32 %v1907_v18, %v1898_v24  ;;  %2057 = vmatpush.bf16.msrb.mxu0 %v2544_v63  ;;  %v2645_v18 = vld [vmem:[%s3811_s11 + $0xe0] sm:$0xf]  ;;  %v2704_v63 = vld [vmem:[%s3811_s11 + $0xa4] sm:$0xf0] }
 0x208   : > { %v2646_v23 = vor.u32 %v2712_v20, %v2645_v18 }
 0x209   : > { %v615_v36 = vpop.f32.mrf.mxu0 }
 0x20a   : > { %v638_v3 = vmax.f32 %v637_v57, %v615_v36  ;;  %2196 = vmatpush.bf16.msrb.mxu1 %v2646_v23  ;;  %v2639_v57 = vld [vmem:[%s3811_s11 + $0xd8] sm:$0xf0] }
 0x20b   : > { %2058 = vmatpush.bf16.msrb.mxu0 %v2536_v5  ;;  %v2642_v58 = vor.u32 %v2709_v56, %v2639_v57  ;;  %v2703_v5 = vld [vmem:[%s3811_s11 + $0xa4] sm:$0xf] }
 0x20e   : > { %v1900_v27 = vpop.f32.mrf.mxu2 }
 0x20f   : > { %v1909_v31 = vmax.f32 %v1908_v25, %v1900_v27  ;;  %v1510_v33 = vpop.f32.mrf.mxu3  ;;  %2059 = vmatpush.bf16.msrb.mxu0 %v2528_v9  ;;  %v2701_v9 = vld [vmem:[%s3811_s11 + $0x94] sm:$0xf] }
 0x210   : > { %v1521_v43 = vmax.f32 %v1520_v22, %v1510_v33  ;;  %v2710_v22 = vld [vmem:[%s3811_s11 + $0xd4] sm:$0xf0]  ;;  %v2629_v33 = vld [vmem:[%s3811_s11 + $0xc0] sm:$0xf] }
 0x211   : > { %v1914_v42 = vadd.f32 %v2948_v26, %v1909_v31  ;;  %v617_v50 = vpop.f32.mrf.mxu0  ;;  %v2637_v26 = vld [vmem:[%s3811_s11 + $0xd0] sm:$0xf] }
 0x212   : > { %v1526_v10 = vadd.f32 %v2949_v29, %v1521_v43  ;;  %v639_v8 = vmax.f32 %v638_v3, %v617_v50  ;;  %v2950_v29 = vld [vmem:[%s3806_s6] ss:$0 sm:$0xff]  ;;  %v2638_v31 = vor.u32 %v2710_v22, %v2637_v26  ;;  %v2630_v43 = vor.u32 %v2708_v35, %v2629_v33 }
 0x213   : > { %2955 = vtanh.f32 %v1914_v42  ;;  %2060 = vmatpush.bf16.msrb.mxu0 %v2520_v30  ;;  %v2622_v42 = vor.u32 %v2706_v40, %v2621_v39  ;;  %v2614_v3 = vor.u32 %v2704_v63, %v2613_v62 }
 0x214   : > { %2957 = vtanh.f32 %v1526_v10  ;;  %2197 = vmatpush.bf16.msrb.mxu1 %v2638_v31 }
 0x217   : > { %v1512_v44 = vpop.f32.mrf.mxu3 }
 0x218   : > { %2198 = vmatpush.bf16.msrb.mxu1 %v2630_v43 }
 0x219   : > { %v2956_v46 = vpop.eup %2955  ;;  %v620_v41 = vpop.f32.mrf.mxu0 }
 0x21a   : > { %v2958_v37 = vpop.eup %2957  ;;  %1929 = vrot.lane.b32.xlu0 %v2956_v46, %s2997_s28  ;;  %v640_v24 = vmax.f32 %v639_v8, %v620_v41  ;;  %v1922_v46 = vpop.permute.xlu1 %1921  ;;  %v2606_v8 = vor.u32 %v2702_v4, %v2605_v1  ;;  %s525_s28 = scalar_lea.vmem %s3813_s13, %s2312_s22 }
 0x21b   : > { %1925 = vrot.lane.b32.xlu2 %v2958_v37, %s2996_s23 }
 0x21c   : > { %2199 = vmatpush.bf16.msrb.mxu1 %v2622_v42 }
 0x220   : > { %2200 = vmatpush.bf16.msrb.mxu1 %v2614_v3 }
 0x221   : > { %v622_v45 = vpop.f32.mrf.mxu0 }
 0x222   : > { %v641_v12 = vmax.f32 %v640_v24, %v622_v45  ;;  %v2713_v45 = vld [vmem:[%s3811_s11 + $0xf4] sm:$0xf]  ;;  %v2607_v24 = vld [vmem:[%s3811_s11 + $0x98] sm:$0xf0] }
 0x223   : > { %v2658_v51 = vor.u32 %v2713_v45, %v2655_v52  ;;  %v2610_v16 = vor.u32 %v2701_v9, %v2607_v24 }
 0x224   : > { %2201 = vmatpush.bf16.msrb.mxu1 %v2606_v8 }
 0x225   : > { %2208 = vmatpush.bf16.msra.mxu3 %v2658_v51 }
 0x229   : > { %v625_v55 = vpop.f32.mrf.mxu0 }
 0x22a   : > { %v642_v14 = vmax.f32 %v641_v12, %v625_v55  ;;  %v2650_v55 = vor.u32 %v2711_v53, %v2647_v54  ;;  %v2597_v12 = vld [vmem:[%s3811_s11 + $0x80] sm:$0xf] }
 0x22c   : > { %2209 = vmatpush.bf16.msra.mxu3 %v2650_v55 }
 0x230   : > { %2210 = vmatpush.bf16.msra.mxu3 %v2642_v58 }
 0x231   : > { %v627_v6 = vpop.f32.mrf.mxu0 }
 0x232   : > { %v643_v17 = vmax.f32 %v642_v14, %v627_v6  ;;  %v2618_v6 = vor.u32 %v2703_v5, %v2615_v7  ;;  %v1954_v14 = vld [vmem:[%s3812_s12] sm:$0x3] }
 0x233   : > { %v1956_v28 = vperm.slane %v1954_v14, 0 }
 0x234   : > { %2211 = vmatpush.bf16.msra.mxu3 %v2634_v60 }
 0x238   : > { %2212 = vmatpush.bf16.msra.mxu3 %v2626_v2 }
 0x239   : > { %v630_v13 = vpop.f32.mrf.mxu0 }
 0x23a   : > { %v644_v21 = vmax.f32 %v643_v17, %v630_v13  ;;  %v2700_v13 = vld [vmem:[%s3811_s11 + $0x84] sm:$0xf0]  ;;  %v2699_v17 = vld [vmem:[%s3811_s11 + $0x84] sm:$0xf] }
 0x23b   : > { %v2598_v30 = vor.u32 %v2700_v13, %v2597_v12  ;;  %v2602_v19 = vor.u32 %v2699_v17, %v2599_v15 }
 0x23c   : > { %2213 = vmatpush.bf16.msra.mxu3 %v2618_v6 }
 0x23d   : > { %2202 = vmatpush.bf16.msrb.mxu1 %v2598_v30 }
 0x240   : > { %2214 = vmatpush.bf16.msra.mxu3 %v2610_v16 }
 0x241   : > { %v632_v25 = vpop.f32.mrf.mxu0 }
 0x242   : > { %v645_v27 = vmax.f32 %v644_v21, %v632_v25 }
 0x244   : > { %v650_v38 = vadd.f32 %v2950_v29, %v645_v27  ;;  %2215 = vmatpush.bf16.msra.mxu3 %v2602_v19  ;;  %v1957_v29 = vperm.slane %v1954_v14, 1 }
 0x246   : > { %2959 = vtanh.f32 %v650_v38 }
 0x24c   : > { %v2960_v32 = vpop.eup %2959 }
 0x275   : > { %v1926_v48 = vpop.permute.xlu2 %1925 }
 0x276   : > { %v1918_v10 = vpop.permute.xlu0 %1917 }
 0x277   : > { %v1932_v44 = vsel %vm577_vm0, %v2960_v32, %v1918_v10 }
 0x278   : > { %v1933_v37 = vsel %vm807_vm1, %v1932_v44, %v1922_v46 }
 0x279   : > { %v1934_v36 = vsel %vm1465_vm3, %v1933_v37, %v1926_v48 }
 0x28c   : > { %v1930_v49 = vpop.permute.xlu0 %1929 }
 0x28d   : > { %v3706_v50 = vsel %vm1935_vm5, %v1934_v36, %v1930_v49  ;;  %v2594_v36 = vld [vmem:[%s3812_s12 + $0x2] sm:$0x3] }
 0x28e   : > { %v1937_v41 = vpack.c.bf16 %v3706_v50, %v3706_v50  ;;  %v2112_v34 = vperm.slane %v2594_v36, 1 }
 0x290   : > { %2048 = vmatmul.bf16.vlgmr.msrb.gmra.mxu3 %v1937_v41  ;;  %2061 = vmatmul.bf16.vlgmr.msrb.gmra.mxu0 %v1937_v41  ;;  %v2111_v41 = vperm.slane %v2594_v36, 0 }
 0x30d   : > { %v2062_v0 = vpop.f32.mrf.mxu0 }
 0x30e   : > { %v2063_v43 = vadd.f32 %v2062_v0, %v1957_v29 }
 0x310   : > { %v2085_v32 = vmax.f32 %v2063_v43, 0.0 }
 0x313   : > { %v2049_v11 = vpop.f32.mrf.mxu3 }
 0x314   : > { %v2050_v18 = vadd.f32 %v2049_v11, %v1956_v28 }
 0x315   : > { %v2064_v20 = vpop.f32.mrf.mxu0 }
 0x316   : > { %v2577_v21 = vmul.f32 -1.442695, %v2050_v18 }
 0x318   : > { %2961 = vpow2.f32 %v2577_v21 }
 0x31b   : > { %v2051_v23 = vpop.f32.mrf.mxu3 }
 0x31e   : > { %v2962_v25 = vpop.eup %2961 }
 0x31f   : > { %v2069_v26 = vadd.f32 1.0, %v2962_v25 }
 0x321   : > { %2963 = vrcp.f32 %v2069_v26  ;;  %v2081_v33 = vand.u32 2147483648, %v2069_v26  ;;  %v2079_v38 = vand.u32 2147483647, %v2069_v26  ;;  %vm2075_vm7 = vweird.f32 %v2069_v26 }
 0x323   : > { %v2082_v40 = vor.u32 1.1754944e-38, %v2081_v33  ;;  %vm2080_vm9 = vcmp.eq.f32.partialorder %v2079_v38, 8.507059e+37 }
 0x327   : > { %v2964_v22 = vpop.eup %2963 }
 0x328   : > { %v2071_v27 = vmul.f32 %v2964_v22, %v2069_v26  ;;  %vm2076_vm6 = vweird.f32 %v2964_v22 }
 0x329   : > { %vm2077_vm8 = vmor %vm2075_vm7, %vm2076_vm6 }
 0x32a   : > { %v2072_v31 = vsub.f32 1.0, %v2071_v27 }
 0x32c   : > { %v2073_v35 = vmul.f32 %v2964_v22, %v2072_v31 }
 0x32e   : > { %v2074_v39 = vadd.f32 %v2964_v22, %v2073_v35 }
 0x330   : > { %v2078_v42 = vsel %vm2077_vm8, %v2964_v22, %v2074_v39 }
 0x331   : > { %v2083_v10 = vsel %vm2080_vm9, %v2082_v40, %v2078_v42 }
 0x332   : > { %v2087_v44 = vsub.f32 1.0, %v2083_v10  ;;  %v2086_v46 = vmul.f32 %v2085_v32, %v2083_v10 }
 0x334   : > { %v2088_v37 = vmul.f32 %v2087_v44, %v3706_v50 }
 0x336   : > { %v2089_v48 = vadd.f32 %v2088_v37, %v2086_v46 }
 0x338   : > { %v2090_v49 = vpack.c.bf16 %v2089_v48, %v2089_v48 }
 0x33a   : > { %2203 = vmatmul.bf16.vlgmr.msrb.gmra.mxu1 %v2090_v49  ;;  %2216 = vmatmul.bf16.vlgmr.msra.gmra.mxu3 %v2090_v49 }
 0x3b7   : > { %v2204_v45 = vpop.f32.mrf.mxu1 }
 0x3b8   : > { %v2205_v52 = vadd.f32 %v2204_v45, %v2111_v41 }
 0x3ba   : > { %v2659_v51 = vmul.f32 -1.442695, %v2205_v52 }
 0x3bc   : > { %2965 = vpow2.f32 %v2659_v51 }
 0x3bd   : > { %v2217_v53 = vpop.f32.mrf.mxu3 }
 0x3be   : > { %v2218_v62 = vadd.f32 %v2217_v53, %v2112_v34 }
 0x3bf   : > { %v2206_v54 = vpop.f32.mrf.mxu1 }
 0x3c0   : > { %v2240_v4 = vmax.f32 %v2218_v62, 0.0 }
 0x3c2   : > { %v2966_v55 = vpop.eup %2965 }
 0x3c3   : > { %v2224_v56 = vadd.f32 1.0, %v2966_v55 }
 0x3c5   : > { %2967 = vrcp.f32 %v2224_v56  ;;  %v2219_v50 = vpop.f32.mrf.mxu3  ;;  %v2236_v60 = vand.u32 2147483648, %v2224_v56  ;;  %v2234_v61 = vand.u32 2147483647, %v2224_v56  ;;  %vm2230_vm11 = vweird.f32 %v2224_v56 }
 0x3c7   : > { %v2237_v1 = vor.u32 1.1754944e-38, %v2236_v60  ;;  %vm2235_vm13 = vcmp.eq.f32.partialorder %v2234_v61, 8.507059e+37 }
 0x3cb   : > { %v2968_v57 = vpop.eup %2967 }
 0x3cc   : > { %v2226_v58 = vmul.f32 %v2968_v57, %v2224_v56  ;;  %vm2231_vm10 = vweird.f32 %v2968_v57 }
 0x3cd   : > { %vm2232_vm12 = vmor %vm2230_vm11, %vm2231_vm10 }
 0x3ce   : > { %v2227_v59 = vsub.f32 1.0, %v2226_v58 }
 0x3d0   : > { %v2228_v47 = vmul.f32 %v2968_v57, %v2227_v59 }
 0x3d2   : > { %v2229_v63 = vadd.f32 %v2968_v57, %v2228_v47 }
 0x3d4   : > { %v2233_v2 = vsel %vm2232_vm12, %v2968_v57, %v2229_v63 }
 0x3d5   : > { %v2238_v3 = vsel %vm2235_vm13, %v2237_v1, %v2233_v2 }
 0x3d6   : > { %v2242_v5 = vsub.f32 1.0, %v2238_v3  ;;  %v2241_v7 = vmul.f32 %v2240_v4, %v2238_v3 }
 0x3d8   : > { %v2243_v0 = vmul.f32 %v2242_v5, %v2089_v48 }
 0x3da   : > { %v2244_v8 = vadd.f32 %v2243_v0, %v2241_v7 }
 0x3dc   : > { %v2245_v6 = vpack.c.bf16 %v2244_v8, %v2244_v8 }
 0x3de   : > { %2246 = vst [vmem:[%s525_s28] sm:$0xf] %v2245_v6 }
 0x3df PF: > { %p20_p9 = scmp.ge.s32.totalorder %s3085_s29, 4   ;;  %s3816_s25 = smov %s2987_s26 }
 0x3e0   : > { %s3817_s26 = smov %s3094_s15  ;;  %s3818_s27 = smov %s3085_s29 }
 0x3e1   :  { %22 = sbr.rel (!%p20_p9) target bundleno = 2 (0x2), region = 154 }

</bundles_post_ra>
